<compile_context>
chip_gen: v7x
topology: tpu7x:2x2x1
jax: 0.10.0
libtpu: 0.0.40
codegen_flags: <defaults>
</compile_context>

<pallas_src>
import jax
import jax.numpy as jnp
import numpy as np
from jax import lax
from jax.experimental import pallas as pl
from jax.experimental.pallas import tpu as pltpu

B   = 2      # logical batch
Bp  = 8      # batch padded to one sublane tile (rows B..7 are zero / never read back)
T   = 70     # sequence length (fixed by fc = Linear(64*70, 1))
IN  = 50     # LSTM input_size
H   = 64     # LSTM hidden_size
L   = 3      # num_layers
F   = 64     # padded feature dim (50 -> 64)
G   = 4 * H  # gate dim (256), packed [i, f, o, g] in the kernel
U   = 4      # unroll of the steady-state wavefront loop; (T - 2) % U == 0
assert (T - 2) % U == 0


def lstm_fc_kernel(x_ref, wih_ref, whh_ref, b_ref, fcw_ref, fcb_ref,
                   out_ref, gx_ref):
    """x_ref:(T*Bp,F)  wih_ref:(L,F,G)  whh_ref:(L,H,G)  b_ref:(L,1,G)
       fcw_ref:(T,1,H)  fcb_ref:(1,) SMEM  out_ref:(Bp,1)
       scratch: gx_ref:(T*Bp,G) hoisted layer-0 input gates."""

    # ---- Layer-0 input-to-hidden gates for ALL timesteps: one bulk MXU call ----
    gx_ref[...] = (jnp.dot(x_ref[...], wih_ref[0],
                           preferred_element_type=jnp.float32) + b_ref[0])

    def gx_row(t):
        start = t * Bp if isinstance(t, int) else pl.multiple_of(t * Bp, Bp)
        return gx_ref[pl.ds(start, Bp), :]                      # (Bp, G)

    def in_gates(x, layer):
        # Per-step input gates for layers 1/2 (input = lower layer's h).
        return (jnp.dot(x, wih_ref[layer], preferred_element_type=jnp.float32)
                + b_ref[layer])                                 # (Bp, G)

    def cell(x_gates, h, c, layer):
        gates = x_gates + jnp.dot(h, whh_ref[layer],
                                  preferred_element_type=jnp.float32)
        sig = jax.nn.sigmoid(gates[:, :3 * H])                  # [i | f | o]
        g_g = jnp.tanh(gates[:, 3 * H:])
        c_new = sig[:, H:2 * H] * c + sig[:, :H] * g_g
        h_new = sig[:, 2 * H:3 * H] * jnp.tanh(c_new)
        return h_new, c_new

    zeros = jnp.zeros((Bp, H), jnp.float32)
    h0 = c0 = h1 = c1 = h2 = c2 = zeros
    acc = zeros

    # ---- Wavefront fill (static): step s=0 and s=1 ----
    h0, c0 = cell(gx_row(0), h0, c0, 0)                         # s=0: L0 t=0
    nh1, nc1 = cell(in_gates(h0, 1), h1, c1, 1)                 # s=1: L1 t=0
    nh0, nc0 = cell(gx_row(1), h0, c0, 0)                       #       L0 t=1
    h0, c0, h1, c1 = nh0, nc0, nh1, nc1

    # ---- Steady-state wavefront: steps s=2..T-1, all 3 layers active ----
    def wave_body(k, carry):
        h0, c0, h1, c1, h2, c2, acc = carry
        for u in range(U):                                      # partial unroll
            s = 2 + k * U + u
            # Three independent cells per wavefront step (3-way ILP):
            nh1, nc1 = cell(in_gates(h0, 1), h1, c1, 1)         # L1 @ t = s-1
            nh2, nc2 = cell(in_gates(h1, 2), h2, c2, 2)         # L2 @ t = s-2
            nh0, nc0 = cell(gx_row(s), h0, c0, 0)               # L0 @ t = s
            acc = acc + nh2 * fcw_ref[s - 2]                    # fused FC
            h0, c0, h1, c1, h2, c2 = nh0, nc0, nh1, nc1, nh2, nc2
        return (h0, c0, h1, c1, h2, c2, acc)

    h0, c0, h1, c1, h2, c2, acc = lax.fori_loop(
        0, (T - 2) // U, wave_body, (h0, c0, h1, c1, h2, c2, acc))

    # ---- Wavefront drain (static): steps s=T and s=T+1 ----
    nh1, nc1 = cell(in_gates(h0, 1), h1, c1, 1)                 # L1 t=T-1
    nh2, nc2 = cell(in_gates(h1, 2), h2, c2, 2)                 # L2 t=T-2
    acc = acc + nh2 * fcw_ref[T - 2]
    h1, c1, h2, c2 = nh1, nc1, nh2, nc2
    nh2, nc2 = cell(in_gates(h1, 2), h2, c2, 2)                 # L2 t=T-1
    acc = acc + nh2 * fcw_ref[T - 1]

    # ---- Linear bias + lane reduction + sigmoid ----
    logits = jnp.sum(acc, axis=1, keepdims=True) + fcb_ref[0]   # (Bp, 1)
    out_ref[...] = jax.nn.sigmoid(logits).astype(out_ref.dtype)


def sentiment_lstm_forward(x, wih_k, whh_k, b_k, fcw_k, fcb_k):
    """x: (B, T, IN) batch-first float32, exactly like the PyTorch module."""
    # Glue: time-major, pad batch 2 -> 8 and features 50 -> 64, flatten (T*Bp, F).
    x_tm  = jnp.transpose(x.astype(jnp.float32), (1, 0, 2))          # (T, B, IN)
    x_pad = jnp.zeros((T, Bp, F), jnp.float32).at[:, :B, :IN].set(x_tm)
    x2d   = x_pad.reshape(T * Bp, F)

    vmem = pl.BlockSpec(memory_space=pltpu.MemorySpace.VMEM)
    smem = pl.BlockSpec(memory_space=pltpu.MemorySpace.SMEM)

    out = pl.pallas_call(
        lstm_fc_kernel,
        out_shape=jax.ShapeDtypeStruct((Bp, 1), jnp.float32),
        in_specs=[vmem, vmem, vmem, vmem, vmem, smem],
        out_specs=vmem,
        scratch_shapes=[pltpu.VMEM((T * Bp, G), jnp.float32)],   # hoisted layer-0 gates
    )(x2d, wih_k, whh_k, b_k, fcw_k, fcb_k)
    return out[:B]


def make_params(key):
    """Deterministic params with PyTorch-style uniform(-1/sqrt(H), 1/sqrt(H)) init."""
    k_lstm = 1.0 / np.sqrt(H)
    k_fc = 1.0 / np.sqrt(T * H)
    keys = jax.random.split(key, 4 * L + 2)
    lstm = []
    for l in range(L):
        in_l = IN if l == 0 else H
        w_ih = jax.random.uniform(keys[4 * l + 0], (G, in_l), jnp.float32, -k_lstm, k_lstm)
        w_hh = jax.random.uniform(keys[4 * l + 1], (G, H), jnp.float32, -k_lstm, k_lstm)
        b_ih = jax.random.uniform(keys[4 * l + 2], (G,), jnp.float32, -k_lstm, k_lstm)
        b_hh = jax.random.uniform(keys[4 * l + 3], (G,), jnp.float32, -k_lstm, k_lstm)
        lstm.append((w_ih, w_hh, b_ih, b_hh))
    fc_w = jax.random.uniform(keys[-2], (1, T * H), jnp.float32, -k_fc, k_fc)
    fc_b = jax.random.uniform(keys[-1], (1,), jnp.float32, -k_fc, k_fc)
    return lstm, fc_w, fc_b


def _reorder_gates(w):
    """PyTorch gate order [i, f, g, o] along axis 0 -> kernel order [i, f, o, g]."""
    i, f, g, o = jnp.split(w, 4, axis=0)
    return jnp.concatenate([i, f, o, g], axis=0)


def pack_params_for_kernel(lstm, fc_w, fc_b):
    wih_k, whh_k, b_k = [], [], []
    for (w_ih, w_hh, b_ih, b_hh) in lstm:
        w_ih_r = _reorder_gates(w_ih)                  # (G, in)
        w_hh_r = _reorder_gates(w_hh)                  # (G, H)
        b_r    = _reorder_gates(b_ih + b_hh)           # (G,)
        w_ih_pad = jnp.zeros((G, F), jnp.float32).at[:, :w_ih.shape[1]].set(w_ih_r)
        wih_k.append(w_ih_pad.T)                       # (F, G)
        whh_k.append(w_hh_r.T)                         # (H, G)
        b_k.append(b_r[None, :])                       # (1, G)
    wih_k = jnp.stack(wih_k)                           # (L, F, G)
    whh_k = jnp.stack(whh_k)                           # (L, H, G)
    b_k   = jnp.stack(b_k)                             # (L, 1, G)
    fcw_k = fc_w.reshape(T, 1, H)                      # torch Flatten order (t*H + h)
    fcb_k = fc_b.reshape(1)                            # (1,) scalar in SMEM
    return wih_k, whh_k, b_k, fcw_k, fcb_k


def ref_forward(x, lstm, fc_w, fc_b):
    """Pure-JAX reference of the PyTorch forward (inference; no dropout)."""
    h_seq = x.astype(jnp.float32)
    for (w_ih, w_hh, b_ih, b_hh) in lstm:
        h = jnp.zeros((B, H), jnp.float32)
        c = jnp.zeros((B, H), jnp.float32)
        hs = []
        for t in range(T):
            gates = h_seq[:, t, :] @ w_ih.T + b_ih + h @ w_hh.T + b_hh
            i = jax.nn.sigmoid(gates[:, :H])
            f = jax.nn.sigmoid(gates[:, H:2 * H])
            g = jnp.tanh(gates[:, 2 * H:3 * H])
            o = jax.nn.sigmoid(gates[:, 3 * H:])
            c = f * c + i * g
            h = o * jnp.tanh(c)
            hs.append(h)
        h_seq = jnp.stack(hs, axis=1)
    flat = h_seq.reshape(B, T * H)
    return jax.nn.sigmoid(flat @ fc_w.T + fc_b)


if __name__ == "__main__":
    key = jax.random.PRNGKey(0)
    k_x, k_p = jax.random.split(key)
    x = jax.random.normal(k_x, (B, T, IN), jnp.float32)

    lstm, fc_w, fc_b = make_params(k_p)
    wih_k, whh_k, b_k, fcw_k, fcb_k = pack_params_for_kernel(lstm, fc_w, fc_b)

    out = sentiment_lstm_forward(x, wih_k, whh_k, b_k, fcw_k, fcb_k)
    out = jax.block_until_ready(out)

    ref = jax.block_until_ready(ref_forward(x, lstm, fc_w, fc_b))
    assert out.shape == (B, 1), out.shape
    np.testing.assert_allclose(np.asarray(out), np.asarray(ref), rtol=5e-3, atol=5e-3)

    print("KERNEL_OK")
</pallas_src>

<mosaic_0001>
module attributes {stable_mosaic.version = 11 : i64} {
  func.func @lstm_fc_kernel(%arg0: memref<560x64xf32, #tpu.memory_space<vmem>>, %arg1: memref<3x64x256xf32, #tpu.memory_space<vmem>>, %arg2: memref<3x64x256xf32, #tpu.memory_space<vmem>>, %arg3: memref<3x1x256xf32, #tpu.memory_space<vmem>>, %arg4: memref<70x1x64xf32, #tpu.memory_space<vmem>>, %arg5: memref<1xf32, #tpu.memory_space<smem>>, %arg6: memref<8x1xf32, #tpu.memory_space<vmem>>, %arg7: memref<560x256xf32, #tpu.memory_space<vmem>>) attributes {dimension_semantics = [], scalar_prefetch = 0 : i64, scratch_operands = 1 : i64, tpu.core_type = #tpu.core_type<tc>} {
    %c0 = arith.constant 0 : index
    %c0_0 = arith.constant 0 : index
    %0 = vector.load %arg0[%c0, %c0_0] : memref<560x64xf32, #tpu.memory_space<vmem>>, vector<560x64xf32>
    %c0_1 = arith.constant 0 : index
    %c0_2 = arith.constant 0 : index
    %c0_3 = arith.constant 0 : index
    %1 = vector.load %arg1[%c0_1, %c0_2, %c0_3] : memref<3x64x256xf32, #tpu.memory_space<vmem>>, vector<1x64x256xf32>
    %2 = vector.shape_cast %1 : vector<1x64x256xf32> to vector<64x256xf32>
    %cst = arith.constant dense<0.000000e+00> : vector<560x256xf32>
    %3 = tpu.matmul %0, %2, %cst {dimension_numbers = #tpu.dot_dimension_numbers<[1], [0], [0], [1], [0, 0, 1, 1], [], []>} : vector<560x64xf32>, vector<64x256xf32>, vector<560x256xf32> -> vector<560x256xf32>
    %c0_4 = arith.constant 0 : index
    %c0_5 = arith.constant 0 : index
    %c0_6 = arith.constant 0 : index
    %4 = vector.load %arg3[%c0_4, %c0_5, %c0_6] : memref<3x1x256xf32, #tpu.memory_space<vmem>>, vector<1x1x256xf32>
    %5 = vector.shape_cast %4 : vector<1x1x256xf32> to vector<1x256xf32>
    %6 = vector.broadcast %5 : vector<1x256xf32> to vector<560x256xf32>
    %7 = arith.addf %3, %6 : vector<560x256xf32>
    %c0_7 = arith.constant 0 : index
    %c0_8 = arith.constant 0 : index
    %8 = vector.load %arg7[%c0_7, %c0_8] : memref<560x256xf32, #tpu.memory_space<vmem>>, vector<560x256xf32>
    tpu.vector_store %arg7[%c0_7, %c0_8], %7 {strides = array<i32>} : memref<560x256xf32, #tpu.memory_space<vmem>>, vector<560x256xf32>,
    %cst_9 = arith.constant 0.000000e+00 : f32
    %9 = vector.broadcast %cst_9 : f32 to vector<8x64xf32>
    %c0_10 = arith.constant 0 : index
    %c0_11 = arith.constant 0 : index
    %10 = vector.load %arg7[%c0_10, %c0_11] : memref<560x256xf32, #tpu.memory_space<vmem>>, vector<8x256xf32>
    %c0_12 = arith.constant 0 : index
    %c0_13 = arith.constant 0 : index
    %c0_14 = arith.constant 0 : index
    %11 = vector.load %arg2[%c0_12, %c0_13, %c0_14] : memref<3x64x256xf32, #tpu.memory_space<vmem>>, vector<1x64x256xf32>
    %12 = vector.shape_cast %11 : vector<1x64x256xf32> to vector<64x256xf32>
    %cst_15 = arith.constant dense<0.000000e+00> : vector<8x256xf32>
    %13 = tpu.matmul %9, %12, %cst_15 {dimension_numbers = #tpu.dot_dimension_numbers<[1], [0], [0], [1], [0, 0, 1, 1], [], []>} : vector<8x64xf32>, vector<64x256xf32>, vector<8x256xf32> -> vector<8x256xf32>
    %14 = arith.addf %10, %13 : vector<8x256xf32>
    %15 = vector.extract_strided_slice %14 {offsets = [0, 0], sizes = [8, 192], strides = [1, 1]} : vector<8x256xf32> to vector<8x192xf32>
    %16 = arith.negf %15 : vector<8x192xf32>
    %17 = math.exp %16 : vector<8x192xf32>
    %cst_16 = arith.constant 1.000000e+00 : f32
    %18 = vector.broadcast %cst_16 : f32 to vector<8x192xf32>
    %19 = arith.addf %18, %17 : vector<8x192xf32>
    %20 = arith.divf %18, %19 : vector<8x192xf32>
    %21 = vector.extract_strided_slice %14 {offsets = [0, 192], sizes = [8, 64], strides = [1, 1]} : vector<8x256xf32> to vector<8x64xf32>
    %22 = math.tanh %21 : vector<8x64xf32>
    %23 = vector.extract_strided_slice %20 {offsets = [0, 64], sizes = [8, 64], strides = [1, 1]} : vector<8x192xf32> to vector<8x64xf32>
    %24 = arith.mulf %23, %9 : vector<8x64xf32>
    %25 = vector.extract_strided_slice %20 {offsets = [0, 0], sizes = [8, 64], strides = [1, 1]} : vector<8x192xf32> to vector<8x64xf32>
    %26 = arith.mulf %25, %22 : vector<8x64xf32>
    %27 = arith.addf %24, %26 : vector<8x64xf32>
    %28 = vector.extract_strided_slice %20 {offsets = [0, 128], sizes = [8, 64], strides = [1, 1]} : vector<8x192xf32> to vector<8x64xf32>
    %29 = math.tanh %27 : vector<8x64xf32>
    %30 = arith.mulf %28, %29 : vector<8x64xf32>
    %c1 = arith.constant 1 : index
    %c0_17 = arith.constant 0 : index
    %c0_18 = arith.constant 0 : index
    %31 = vector.load %arg1[%c1, %c0_17, %c0_18] : memref<3x64x256xf32, #tpu.memory_space<vmem>>, vector<1x64x256xf32>
    %32 = vector.shape_cast %31 : vector<1x64x256xf32> to vector<64x256xf32>
    %cst_19 = arith.constant dense<0.000000e+00> : vector<8x256xf32>
    %33 = tpu.matmul %30, %32, %cst_19 {dimension_numbers = #tpu.dot_dimension_numbers<[1], [0], [0], [1], [0, 0, 1, 1], [], []>} : vector<8x64xf32>, vector<64x256xf32>, vector<8x256xf32> -> vector<8x256xf32>
    %c1_20 = arith.constant 1 : index
    %c0_21 = arith.constant 0 : index
    %c0_22 = arith.constant 0 : index
    %34 = vector.load %arg3[%c1_20, %c0_21, %c0_22] : memref<3x1x256xf32, #tpu.memory_space<vmem>>, vector<1x1x256xf32>
    %35 = vector.shape_cast %34 : vector<1x1x256xf32> to vector<1x256xf32>
    %36 = vector.broadcast %35 : vector<1x256xf32> to vector<8x256xf32>
    %37 = arith.addf %33, %36 : vector<8x256xf32>
    %c1_23 = arith.constant 1 : index
    %c0_24 = arith.constant 0 : index
    %c0_25 = arith.constant 0 : index
    %38 = vector.load %arg2[%c1_23, %c0_24, %c0_25] : memref<3x64x256xf32, #tpu.memory_space<vmem>>, vector<1x64x256xf32>
    %39 = vector.shape_cast %38 : vector<1x64x256xf32> to vector<64x256xf32>
    %cst_26 = arith.constant dense<0.000000e+00> : vector<8x256xf32>
    %40 = tpu.matmul %9, %39, %cst_26 {dimension_numbers = #tpu.dot_dimension_numbers<[1], [0], [0], [1], [0, 0, 1, 1], [], []>} : vector<8x64xf32>, vector<64x256xf32>, vector<8x256xf32> -> vector<8x256xf32>
    %41 = arith.addf %37, %40 : vector<8x256xf32>
    %42 = vector.extract_strided_slice %41 {offsets = [0, 0], sizes = [8, 192], strides = [1, 1]} : vector<8x256xf32> to vector<8x192xf32>
    %43 = arith.negf %42 : vector<8x192xf32>
    %44 = math.exp %43 : vector<8x192xf32>
    %cst_27 = arith.constant 1.000000e+00 : f32
    %45 = vector.broadcast %cst_27 : f32 to vector<8x192xf32>
    %46 = arith.addf %45, %44 : vector<8x192xf32>
    %47 = arith.divf %45, %46 : vector<8x192xf32>
    %48 = vector.extract_strided_slice %41 {offsets = [0, 192], sizes = [8, 64], strides = [1, 1]} : vector<8x256xf32> to vector<8x64xf32>
    %49 = math.tanh %48 : vector<8x64xf32>
    %50 = vector.extract_strided_slice %47 {offsets = [0, 64], sizes = [8, 64], strides = [1, 1]} : vector<8x192xf32> to vector<8x64xf32>
    %51 = arith.mulf %50, %9 : vector<8x64xf32>
    %52 = vector.extract_strided_slice %47 {offsets = [0, 0], sizes = [8, 64], strides = [1, 1]} : vector<8x192xf32> to vector<8x64xf32>
    %53 = arith.mulf %52, %49 : vector<8x64xf32>
    %54 = arith.addf %51, %53 : vector<8x64xf32>
    %55 = vector.extract_strided_slice %47 {offsets = [0, 128], sizes = [8, 64], strides = [1, 1]} : vector<8x192xf32> to vector<8x64xf32>
    %56 = math.tanh %54 : vector<8x64xf32>
    %57 = arith.mulf %55, %56 : vector<8x64xf32>
    %c8 = arith.constant 8 : index
    %c0_28 = arith.constant 0 : index
    %58 = vector.load %arg7[%c8, %c0_28] : memref<560x256xf32, #tpu.memory_space<vmem>>, vector<8x256xf32>
    %c0_29 = arith.constant 0 : index
    %c0_30 = arith.constant 0 : index
    %c0_31 = arith.constant 0 : index
    %59 = vector.load %arg2[%c0_29, %c0_30, %c0_31] : memref<3x64x256xf32, #tpu.memory_space<vmem>>, vector<1x64x256xf32>
    %60 = vector.shape_cast %59 : vector<1x64x256xf32> to vector<64x256xf32>
    %cst_32 = arith.constant dense<0.000000e+00> : vector<8x256xf32>
    %61 = tpu.matmul %30, %60, %cst_32 {dimension_numbers = #tpu.dot_dimension_numbers<[1], [0], [0], [1], [0, 0, 1, 1], [], []>} : vector<8x64xf32>, vector<64x256xf32>, vector<8x256xf32> -> vector<8x256xf32>
    %62 = arith.addf %58, %61 : vector<8x256xf32>
    %63 = vector.extract_strided_slice %62 {offsets = [0, 0], sizes = [8, 192], strides = [1, 1]} : vector<8x256xf32> to vector<8x192xf32>
    %64 = arith.negf %63 : vector<8x192xf32>
    %65 = math.exp %64 : vector<8x192xf32>
    %cst_33 = arith.constant 1.000000e+00 : f32
    %66 = vector.broadcast %cst_33 : f32 to vector<8x192xf32>
    %67 = arith.addf %66, %65 : vector<8x192xf32>
    %68 = arith.divf %66, %67 : vector<8x192xf32>
    %69 = vector.extract_strided_slice %62 {offsets = [0, 192], sizes = [8, 64], strides = [1, 1]} : vector<8x256xf32> to vector<8x64xf32>
    %70 = math.tanh %69 : vector<8x64xf32>
    %71 = vector.extract_strided_slice %68 {offsets = [0, 64], sizes = [8, 64], strides = [1, 1]} : vector<8x192xf32> to vector<8x64xf32>
    %72 = arith.mulf %71, %27 : vector<8x64xf32>
    %73 = vector.extract_strided_slice %68 {offsets = [0, 0], sizes = [8, 64], strides = [1, 1]} : vector<8x192xf32> to vector<8x64xf32>
    %74 = arith.mulf %73, %70 : vector<8x64xf32>
    %75 = arith.addf %72, %74 : vector<8x64xf32>
    %76 = vector.extract_strided_slice %68 {offsets = [0, 128], sizes = [8, 64], strides = [1, 1]} : vector<8x192xf32> to vector<8x64xf32>
    %77 = math.tanh %75 : vector<8x64xf32>
    %78 = arith.mulf %76, %77 : vector<8x64xf32>
    %c0_i32 = arith.constant 0 : i32
    %c17_i32 = arith.constant 17 : i32
    %79 = arith.addi %c0_i32, %c17_i32 : i32
    %c1_i32 = arith.constant 1 : i32
    %80:7 = scf.for %arg8 = %c0_i32 to %79 step %c1_i32 iter_args(%arg9 = %78, %arg10 = %75, %arg11 = %57, %arg12 = %54, %arg13 = %9, %arg14 = %9, %arg15 = %9) -> (vector<8x64xf32>, vector<8x64xf32>, vector<8x64xf32>, vector<8x64xf32>, vector<8x64xf32>, vector<8x64xf32>, vector<8x64xf32>)  : i32 {
      %c4_i32 = arith.constant 4 : i32
      %183 = arith.muli %arg8, %c4_i32 : i32
      %c2_i32 = arith.constant 2 : i32
      %184 = arith.addi %c2_i32, %183 : i32
      %c0_i32_79 = arith.constant 0 : i32
      %185 = arith.addi %184, %c0_i32_79 : i32
      %c1_80 = arith.constant 1 : index
      %c0_81 = arith.constant 0 : index
      %c0_82 = arith.constant 0 : index
      %186 = vector.load %arg1[%c1_80, %c0_81, %c0_82] : memref<3x64x256xf32, #tpu.memory_space<vmem>>, vector<1x64x256xf32>
      %187 = vector.shape_cast %186 : vector<1x64x256xf32> to vector<64x256xf32>
      %cst_83 = arith.constant dense<0.000000e+00> : vector<8x256xf32>
      %188 = tpu.matmul %arg9, %187, %cst_83 {dimension_numbers = #tpu.dot_dimension_numbers<[1], [0], [0], [1], [0, 0, 1, 1], [], []>} : vector<8x64xf32>, vector<64x256xf32>, vector<8x256xf32> -> vector<8x256xf32>
      %c1_84 = arith.constant 1 : index
      %c0_85 = arith.constant 0 : index
      %c0_86 = arith.constant 0 : index
      %189 = vector.load %arg3[%c1_84, %c0_85, %c0_86] : memref<3x1x256xf32, #tpu.memory_space<vmem>>, vector<1x1x256xf32>
      %190 = vector.shape_cast %189 : vector<1x1x256xf32> to vector<1x256xf32>
      %191 = vector.broadcast %190 : vector<1x256xf32> to vector<8x256xf32>
      %192 = arith.addf %188, %191 : vector<8x256xf32>
      %c1_87 = arith.constant 1 : index
      %c0_88 = arith.constant 0 : index
      %c0_89 = arith.constant 0 : index
      %193 = vector.load %arg2[%c1_87, %c0_88, %c0_89] : memref<3x64x256xf32, #tpu.memory_space<vmem>>, vector<1x64x256xf32>
      %194 = vector.shape_cast %193 : vector<1x64x256xf32> to vector<64x256xf32>
      %cst_90 = arith.constant dense<0.000000e+00> : vector<8x256xf32>
      %195 = tpu.matmul %arg11, %194, %cst_90 {dimension_numbers = #tpu.dot_dimension_numbers<[1], [0], [0], [1], [0, 0, 1, 1], [], []>} : vector<8x64xf32>, vector<64x256xf32>, vector<8x256xf32> -> vector<8x256xf32>
      %196 = arith.addf %192, %195 : vector<8x256xf32>
      %197 = vector.extract_strided_slice %196 {offsets = [0, 0], sizes = [8, 192], strides = [1, 1]} : vector<8x256xf32> to vector<8x192xf32>
      %198 = arith.negf %197 : vector<8x192xf32>
      %199 = math.exp %198 : vector<8x192xf32>
      %cst_91 = arith.constant 1.000000e+00 : f32
      %200 = vector.broadcast %cst_91 : f32 to vector<8x192xf32>
      %201 = arith.addf %200, %199 : vector<8x192xf32>
      %202 = arith.divf %200, %201 : vector<8x192xf32>
      %203 = vector.extract_strided_slice %196 {offsets = [0, 192], sizes = [8, 64], strides = [1, 1]} : vector<8x256xf32> to vector<8x64xf32>
      %204 = math.tanh %203 : vector<8x64xf32>
      %205 = vector.extract_strided_slice %202 {offsets = [0, 64], sizes = [8, 64], strides = [1, 1]} : vector<8x192xf32> to vector<8x64xf32>
      %206 = arith.mulf %205, %arg12 : vector<8x64xf32>
      %207 = vector.extract_strided_slice %202 {offsets = [0, 0], sizes = [8, 64], strides = [1, 1]} : vector<8x192xf32> to vector<8x64xf32>
      %208 = arith.mulf %207, %204 : vector<8x64xf32>
      %209 = arith.addf %206, %208 : vector<8x64xf32>
      %210 = vector.extract_strided_slice %202 {offsets = [0, 128], sizes = [8, 64], strides = [1, 1]} : vector<8x192xf32> to vector<8x64xf32>
      %211 = math.tanh %209 : vector<8x64xf32>
      %212 = arith.mulf %210, %211 : vector<8x64xf32>
      %c2_92 = arith.constant 2 : index
      %c0_93 = arith.constant 0 : index
      %c0_94 = arith.constant 0 : index
      %213 = vector.load %arg1[%c2_92, %c0_93, %c0_94] : memref<3x64x256xf32, #tpu.memory_space<vmem>>, vector<1x64x256xf32>
      %214 = vector.shape_cast %213 : vector<1x64x256xf32> to vector<64x256xf32>
      %cst_95 = arith.constant dense<0.000000e+00> : vector<8x256xf32>
      %215 = tpu.matmul %arg11, %214, %cst_95 {dimension_numbers = #tpu.dot_dimension_numbers<[1], [0], [0], [1], [0, 0, 1, 1], [], []>} : vector<8x64xf32>, vector<64x256xf32>, vector<8x256xf32> -> vector<8x256xf32>
      %c2_96 = arith.constant 2 : index
      %c0_97 = arith.constant 0 : index
      %c0_98 = arith.constant 0 : index
      %216 = vector.load %arg3[%c2_96, %c0_97, %c0_98] : memref<3x1x256xf32, #tpu.memory_space<vmem>>, vector<1x1x256xf32>
      %217 = vector.shape_cast %216 : vector<1x1x256xf32> to vector<1x256xf32>
      %218 = vector.broadcast %217 : vector<1x256xf32> to vector<8x256xf32>
      %219 = arith.addf %215, %218 : vector<8x256xf32>
      %c2_99 = arith.constant 2 : index
      %c0_100 = arith.constant 0 : index
      %c0_101 = arith.constant 0 : index
      %220 = vector.load %arg2[%c2_99, %c0_100, %c0_101] : memref<3x64x256xf32, #tpu.memory_space<vmem>>, vector<1x64x256xf32>
      %221 = vector.shape_cast %220 : vector<1x64x256xf32> to vector<64x256xf32>
      %cst_102 = arith.constant dense<0.000000e+00> : vector<8x256xf32>
      %222 = tpu.matmul %arg13, %221, %cst_102 {dimension_numbers = #tpu.dot_dimension_numbers<[1], [0], [0], [1], [0, 0, 1, 1], [], []>} : vector<8x64xf32>, vector<64x256xf32>, vector<8x256xf32> -> vector<8x256xf32>
      %223 = arith.addf %219, %222 : vector<8x256xf32>
      %224 = vector.extract_strided_slice %223 {offsets = [0, 0], sizes = [8, 192], strides = [1, 1]} : vector<8x256xf32> to vector<8x192xf32>
      %225 = arith.negf %224 : vector<8x192xf32>
      %226 = math.exp %225 : vector<8x192xf32>
      %cst_103 = arith.constant 1.000000e+00 : f32
      %227 = vector.broadcast %cst_103 : f32 to vector<8x192xf32>
      %228 = arith.addf %227, %226 : vector<8x192xf32>
      %229 = arith.divf %227, %228 : vector<8x192xf32>
      %230 = vector.extract_strided_slice %223 {offsets = [0, 192], sizes = [8, 64], strides = [1, 1]} : vector<8x256xf32> to vector<8x64xf32>
      %231 = math.tanh %230 : vector<8x64xf32>
      %232 = vector.extract_strided_slice %229 {offsets = [0, 64], sizes = [8, 64], strides = [1, 1]} : vector<8x192xf32> to vector<8x64xf32>
      %233 = arith.mulf %232, %arg14 : vector<8x64xf32>
      %234 = vector.extract_strided_slice %229 {offsets = [0, 0], sizes = [8, 64], strides = [1, 1]} : vector<8x192xf32> to vector<8x64xf32>
      %235 = arith.mulf %234, %231 : vector<8x64xf32>
      %236 = arith.addf %233, %235 : vector<8x64xf32>
      %237 = vector.extract_strided_slice %229 {offsets = [0, 128], sizes = [8, 64], strides = [1, 1]} : vector<8x192xf32> to vector<8x64xf32>
      %238 = math.tanh %236 : vector<8x64xf32>
      %239 = arith.mulf %237, %238 : vector<8x64xf32>
      %c8_i32 = arith.constant 8 : i32
      %240 = arith.muli %185, %c8_i32 : i32
      %241 = tpu.assume_multiple %240, 8 : i32
      %242 = arith.index_cast %241 : i32 to index
      %c0_104 = arith.constant 0 : index
      %243 = vector.load %arg7[%242, %c0_104] : memref<560x256xf32, #tpu.memory_space<vmem>>, vector<8x256xf32>
      %c0_105 = arith.constant 0 : index
      %c0_106 = arith.constant 0 : index
      %c0_107 = arith.constant 0 : index
      %244 = vector.load %arg2[%c0_105, %c0_106, %c0_107] : memref<3x64x256xf32, #tpu.memory_space<vmem>>, vector<1x64x256xf32>
      %245 = vector.shape_cast %244 : vector<1x64x256xf32> to vector<64x256xf32>
      %cst_108 = arith.constant dense<0.000000e+00> : vector<8x256xf32>
      %246 = tpu.matmul %arg9, %245, %cst_108 {dimension_numbers = #tpu.dot_dimension_numbers<[1], [0], [0], [1], [0, 0, 1, 1], [], []>} : vector<8x64xf32>, vector<64x256xf32>, vector<8x256xf32> -> vector<8x256xf32>
      %247 = arith.addf %243, %246 : vector<8x256xf32>
      %248 = vector.extract_strided_slice %247 {offsets = [0, 0], sizes = [8, 192], strides = [1, 1]} : vector<8x256xf32> to vector<8x192xf32>
      %249 = arith.negf %248 : vector<8x192xf32>
      %250 = math.exp %249 : vector<8x192xf32>
      %cst_109 = arith.constant 1.000000e+00 : f32
      %251 = vector.broadcast %cst_109 : f32 to vector<8x192xf32>
      %252 = arith.addf %251, %250 : vector<8x192xf32>
      %253 = arith.divf %251, %252 : vector<8x192xf32>
      %254 = vector.extract_strided_slice %247 {offsets = [0, 192], sizes = [8, 64], strides = [1, 1]} : vector<8x256xf32> to vector<8x64xf32>
      %255 = math.tanh %254 : vector<8x64xf32>
      %256 = vector.extract_strided_slice %253 {offsets = [0, 64], sizes = [8, 64], strides = [1, 1]} : vector<8x192xf32> to vector<8x64xf32>
      %257 = arith.mulf %256, %arg10 : vector<8x64xf32>
      %258 = vector.extract_strided_slice %253 {offsets = [0, 0], sizes = [8, 64], strides = [1, 1]} : vector<8x192xf32> to vector<8x64xf32>
      %259 = arith.mulf %258, %255 : vector<8x64xf32>
      %260 = arith.addf %257, %259 : vector<8x64xf32>
      %261 = vector.extract_strided_slice %253 {offsets = [0, 128], sizes = [8, 64], strides = [1, 1]} : vector<8x192xf32> to vector<8x64xf32>
      %262 = math.tanh %260 : vector<8x64xf32>
      %263 = arith.mulf %261, %262 : vector<8x64xf32>
      %c2_i32_110 = arith.constant 2 : i32
      %264 = arith.subi %185, %c2_i32_110 : i32
      %265 = arith.index_cast %264 : i32 to index
      %c0_111 = arith.constant 0 : index
      %c0_112 = arith.constant 0 : index
      %266 = vector.load %arg4[%265, %c0_111, %c0_112] : memref<70x1x64xf32, #tpu.memory_space<vmem>>, vector<1x1x64xf32>
      %267 = vector.shape_cast %266 : vector<1x1x64xf32> to vector<1x64xf32>
      %268 = vector.broadcast %267 : vector<1x64xf32> to vector<8x64xf32>
      %269 = arith.mulf %239, %268 : vector<8x64xf32>
      %270 = arith.addf %arg15, %269 : vector<8x64xf32>
      %c4_i32_113 = arith.constant 4 : i32
      %271 = arith.muli %arg8, %c4_i32_113 : i32
      %c2_i32_114 = arith.constant 2 : i32
      %272 = arith.addi %c2_i32_114, %271 : i32
      %c1_i32_115 = arith.constant 1 : i32
      %273 = arith.addi %272, %c1_i32_115 : i32
      %c1_116 = arith.constant 1 : index
      %c0_117 = arith.constant 0 : index
      %c0_118 = arith.constant 0 : index
      %274 = vector.load %arg1[%c1_116, %c0_117, %c0_118] : memref<3x64x256xf32, #tpu.memory_space<vmem>>, vector<1x64x256xf32>
      %275 = vector.shape_cast %274 : vector<1x64x256xf32> to vector<64x256xf32>
      %cst_119 = arith.constant dense<0.000000e+00> : vector<8x256xf32>
      %276 = tpu.matmul %263, %275, %cst_119 {dimension_numbers = #tpu.dot_dimension_numbers<[1], [0], [0], [1], [0, 0, 1, 1], [], []>} : vector<8x64xf32>, vector<64x256xf32>, vector<8x256xf32> -> vector<8x256xf32>
      %c1_120 = arith.constant 1 : index
      %c0_121 = arith.constant 0 : index
      %c0_122 = arith.constant 0 : index
      %277 = vector.load %arg3[%c1_120, %c0_121, %c0_122] : memref<3x1x256xf32, #tpu.memory_space<vmem>>, vector<1x1x256xf32>
      %278 = vector.shape_cast %277 : vector<1x1x256xf32> to vector<1x256xf32>
      %279 = vector.broadcast %278 : vector<1x256xf32> to vector<8x256xf32>
      %280 = arith.addf %276, %279 : vector<8x256xf32>
      %c1_123 = arith.constant 1 : index
      %c0_124 = arith.constant 0 : index
      %c0_125 = arith.constant 0 : index
      %281 = vector.load %arg2[%c1_123, %c0_124, %c0_125] : memref<3x64x256xf32, #tpu.memory_space<vmem>>, vector<1x64x256xf32>
      %282 = vector.shape_cast %281 : vector<1x64x256xf32> to vector<64x256xf32>
      %cst_126 = arith.constant dense<0.000000e+00> : vector<8x256xf32>
      %283 = tpu.matmul %212, %282, %cst_126 {dimension_numbers = #tpu.dot_dimension_numbers<[1], [0], [0], [1], [0, 0, 1, 1], [], []>} : vector<8x64xf32>, vector<64x256xf32>, vector<8x256xf32> -> vector<8x256xf32>
      %284 = arith.addf %280, %283 : vector<8x256xf32>
      %285 = vector.extract_strided_slice %284 {offsets = [0, 0], sizes = [8, 192], strides = [1, 1]} : vector<8x256xf32> to vector<8x192xf32>
      %286 = arith.negf %285 : vector<8x192xf32>
      %287 = math.exp %286 : vector<8x192xf32>
      %cst_127 = arith.constant 1.000000e+00 : f32
      %288 = vector.broadcast %cst_127 : f32 to vector<8x192xf32>
      %289 = arith.addf %288, %287 : vector<8x192xf32>
      %290 = arith.divf %288, %289 : vector<8x192xf32>
      %291 = vector.extract_strided_slice %284 {offsets = [0, 192], sizes = [8, 64], strides = [1, 1]} : vector<8x256xf32> to vector<8x64xf32>
      %292 = math.tanh %291 : vector<8x64xf32>
      %293 = vector.extract_strided_slice %290 {offsets = [0, 64], sizes = [8, 64], strides = [1, 1]} : vector<8x192xf32> to vector<8x64xf32>
      %294 = arith.mulf %293, %209 : vector<8x64xf32>
      %295 = vector.extract_strided_slice %290 {offsets = [0, 0], sizes = [8, 64], strides = [1, 1]} : vector<8x192xf32> to vector<8x64xf32>
      %296 = arith.mulf %295, %292 : vector<8x64xf32>
      %297 = arith.addf %294, %296 : vector<8x64xf32>
      %298 = vector.extract_strided_slice %290 {offsets = [0, 128], sizes = [8, 64], strides = [1, 1]} : vector<8x192xf32> to vector<8x64xf32>
      %299 = math.tanh %297 : vector<8x64xf32>
      %300 = arith.mulf %298, %299 : vector<8x64xf32>
      %c2_128 = arith.constant 2 : index
      %c0_129 = arith.constant 0 : index
      %c0_130 = arith.constant 0 : index
      %301 = vector.load %arg1[%c2_128, %c0_129, %c0_130] : memref<3x64x256xf32, #tpu.memory_space<vmem>>, vector<1x64x256xf32>
      %302 = vector.shape_cast %301 : vector<1x64x256xf32> to vector<64x256xf32>
      %cst_131 = arith.constant dense<0.000000e+00> : vector<8x256xf32>
      %303 = tpu.matmul %212, %302, %cst_131 {dimension_numbers = #tpu.dot_dimension_numbers<[1], [0], [0], [1], [0, 0, 1, 1], [], []>} : vector<8x64xf32>, vector<64x256xf32>, vector<8x256xf32> -> vector<8x256xf32>
      %c2_132 = arith.constant 2 : index
      %c0_133 = arith.constant 0 : index
      %c0_134 = arith.constant 0 : index
      %304 = vector.load %arg3[%c2_132, %c0_133, %c0_134] : memref<3x1x256xf32, #tpu.memory_space<vmem>>, vector<1x1x256xf32>
      %305 = vector.shape_cast %304 : vector<1x1x256xf32> to vector<1x256xf32>
      %306 = vector.broadcast %305 : vector<1x256xf32> to vector<8x256xf32>
      %307 = arith.addf %303, %306 : vector<8x256xf32>
      %c2_135 = arith.constant 2 : index
      %c0_136 = arith.constant 0 : index
      %c0_137 = arith.constant 0 : index
      %308 = vector.load %arg2[%c2_135, %c0_136, %c0_137] : memref<3x64x256xf32, #tpu.memory_space<vmem>>, vector<1x64x256xf32>
      %309 = vector.shape_cast %308 : vector<1x64x256xf32> to vector<64x256xf32>
      %cst_138 = arith.constant dense<0.000000e+00> : vector<8x256xf32>
      %310 = tpu.matmul %239, %309, %cst_138 {dimension_numbers = #tpu.dot_dimension_numbers<[1], [0], [0], [1], [0, 0, 1, 1], [], []>} : vector<8x64xf32>, vector<64x256xf32>, vector<8x256xf32> -> vector<8x256xf32>
      %311 = arith.addf %307, %310 : vector<8x256xf32>
      %312 = vector.extract_strided_slice %311 {offsets = [0, 0], sizes = [8, 192], strides = [1, 1]} : vector<8x256xf32> to vector<8x192xf32>
      %313 = arith.negf %312 : vector<8x192xf32>
      %314 = math.exp %313 : vector<8x192xf32>
      %cst_139 = arith.constant 1.000000e+00 : f32
      %315 = vector.broadcast %cst_139 : f32 to vector<8x192xf32>
      %316 = arith.addf %315, %314 : vector<8x192xf32>
      %317 = arith.divf %315, %316 : vector<8x192xf32>
      %318 = vector.extract_strided_slice %311 {offsets = [0, 192], sizes = [8, 64], strides = [1, 1]} : vector<8x256xf32> to vector<8x64xf32>
      %319 = math.tanh %318 : vector<8x64xf32>
      %320 = vector.extract_strided_slice %317 {offsets = [0, 64], sizes = [8, 64], strides = [1, 1]} : vector<8x192xf32> to vector<8x64xf32>
      %321 = arith.mulf %320, %236 : vector<8x64xf32>
      %322 = vector.extract_strided_slice %317 {offsets = [0, 0], sizes = [8, 64], strides = [1, 1]} : vector<8x192xf32> to vector<8x64xf32>
      %323 = arith.mulf %322, %319 : vector<8x64xf32>
      %324 = arith.addf %321, %323 : vector<8x64xf32>
      %325 = vector.extract_strided_slice %317 {offsets = [0, 128], sizes = [8, 64], strides = [1, 1]} : vector<8x192xf32> to vector<8x64xf32>
      %326 = math.tanh %324 : vector<8x64xf32>
      %327 = arith.mulf %325, %326 : vector<8x64xf32>
      %c8_i32_140 = arith.constant 8 : i32
      %328 = arith.muli %273, %c8_i32_140 : i32
      %329 = tpu.assume_multiple %328, 8 : i32
      %330 = arith.index_cast %329 : i32 to index
      %c0_141 = arith.constant 0 : index
      %331 = vector.load %arg7[%330, %c0_141] : memref<560x256xf32, #tpu.memory_space<vmem>>, vector<8x256xf32>
      %c0_142 = arith.constant 0 : index
      %c0_143 = arith.constant 0 : index
      %c0_144 = arith.constant 0 : index
      %332 = vector.load %arg2[%c0_142, %c0_143, %c0_144] : memref<3x64x256xf32, #tpu.memory_space<vmem>>, vector<1x64x256xf32>
      %333 = vector.shape_cast %332 : vector<1x64x256xf32> to vector<64x256xf32>
      %cst_145 = arith.constant dense<0.000000e+00> : vector<8x256xf32>
      %334 = tpu.matmul %263, %333, %cst_145 {dimension_numbers = #tpu.dot_dimension_numbers<[1], [0], [0], [1], [0, 0, 1, 1], [], []>} : vector<8x64xf32>, vector<64x256xf32>, vector<8x256xf32> -> vector<8x256xf32>
      %335 = arith.addf %331, %334 : vector<8x256xf32>
      %336 = vector.extract_strided_slice %335 {offsets = [0, 0], sizes = [8, 192], strides = [1, 1]} : vector<8x256xf32> to vector<8x192xf32>
      %337 = arith.negf %336 : vector<8x192xf32>
      %338 = math.exp %337 : vector<8x192xf32>
      %cst_146 = arith.constant 1.000000e+00 : f32
      %339 = vector.broadcast %cst_146 : f32 to vector<8x192xf32>
      %340 = arith.addf %339, %338 : vector<8x192xf32>
      %341 = arith.divf %339, %340 : vector<8x192xf32>
      %342 = vector.extract_strided_slice %335 {offsets = [0, 192], sizes = [8, 64], strides = [1, 1]} : vector<8x256xf32> to vector<8x64xf32>
      %343 = math.tanh %342 : vector<8x64xf32>
      %344 = vector.extract_strided_slice %341 {offsets = [0, 64], sizes = [8, 64], strides = [1, 1]} : vector<8x192xf32> to vector<8x64xf32>
      %345 = arith.mulf %344, %260 : vector<8x64xf32>
      %346 = vector.extract_strided_slice %341 {offsets = [0, 0], sizes = [8, 64], strides = [1, 1]} : vector<8x192xf32> to vector<8x64xf32>
      %347 = arith.mulf %346, %343 : vector<8x64xf32>
      %348 = arith.addf %345, %347 : vector<8x64xf32>
      %349 = vector.extract_strided_slice %341 {offsets = [0, 128], sizes = [8, 64], strides = [1, 1]} : vector<8x192xf32> to vector<8x64xf32>
      %350 = math.tanh %348 : vector<8x64xf32>
      %351 = arith.mulf %349, %350 : vector<8x64xf32>
      %c2_i32_147 = arith.constant 2 : i32
      %352 = arith.subi %273, %c2_i32_147 : i32
      %353 = arith.index_cast %352 : i32 to index
      %c0_148 = arith.constant 0 : index
      %c0_149 = arith.constant 0 : index
      %354 = vector.load %arg4[%353, %c0_148, %c0_149] : memref<70x1x64xf32, #tpu.memory_space<vmem>>, vector<1x1x64xf32>
      %355 = vector.shape_cast %354 : vector<1x1x64xf32> to vector<1x64xf32>
      %356 = vector.broadcast %355 : vector<1x64xf32> to vector<8x64xf32>
      %357 = arith.mulf %327, %356 : vector<8x64xf32>
      %358 = arith.addf %270, %357 : vector<8x64xf32>
      %c4_i32_150 = arith.constant 4 : i32
      %359 = arith.muli %arg8, %c4_i32_150 : i32
      %c2_i32_151 = arith.constant 2 : i32
      %360 = arith.addi %c2_i32_151, %359 : i32
      %c2_i32_152 = arith.constant 2 : i32
      %361 = arith.addi %360, %c2_i32_152 : i32
      %c1_153 = arith.constant 1 : index
      %c0_154 = arith.constant 0 : index
      %c0_155 = arith.constant 0 : index
      %362 = vector.load %arg1[%c1_153, %c0_154, %c0_155] : memref<3x64x256xf32, #tpu.memory_space<vmem>>, vector<1x64x256xf32>
      %363 = vector.shape_cast %362 : vector<1x64x256xf32> to vector<64x256xf32>
      %cst_156 = arith.constant dense<0.000000e+00> : vector<8x256xf32>
      %364 = tpu.matmul %351, %363, %cst_156 {dimension_numbers = #tpu.dot_dimension_numbers<[1], [0], [0], [1], [0, 0, 1, 1], [], []>} : vector<8x64xf32>, vector<64x256xf32>, vector<8x256xf32> -> vector<8x256xf32>
      %c1_157 = arith.constant 1 : index
      %c0_158 = arith.constant 0 : index
      %c0_159 = arith.constant 0 : index
      %365 = vector.load %arg3[%c1_157, %c0_158, %c0_159] : memref<3x1x256xf32, #tpu.memory_space<vmem>>, vector<1x1x256xf32>
      %366 = vector.shape_cast %365 : vector<1x1x256xf32> to vector<1x256xf32>
      %367 = vector.broadcast %366 : vector<1x256xf32> to vector<8x256xf32>
      %368 = arith.addf %364, %367 : vector<8x256xf32>
      %c1_160 = arith.constant 1 : index
      %c0_161 = arith.constant 0 : index
      %c0_162 = arith.constant 0 : index
      %369 = vector.load %arg2[%c1_160, %c0_161, %c0_162] : memref<3x64x256xf32, #tpu.memory_space<vmem>>, vector<1x64x256xf32>
      %370 = vector.shape_cast %369 : vector<1x64x256xf32> to vector<64x256xf32>
      %cst_163 = arith.constant dense<0.000000e+00> : vector<8x256xf32>
      %371 = tpu.matmul %300, %370, %cst_163 {dimension_numbers = #tpu.dot_dimension_numbers<[1], [0], [0], [1], [0, 0, 1, 1], [], []>} : vector<8x64xf32>, vector<64x256xf32>, vector<8x256xf32> -> vector<8x256xf32>
      %372 = arith.addf %368, %371 : vector<8x256xf32>
      %373 = vector.extract_strided_slice %372 {offsets = [0, 0], sizes = [8, 192], strides = [1, 1]} : vector<8x256xf32> to vector<8x192xf32>
      %374 = arith.negf %373 : vector<8x192xf32>
      %375 = math.exp %374 : vector<8x192xf32>
      %cst_164 = arith.constant 1.000000e+00 : f32
      %376 = vector.broadcast %cst_164 : f32 to vector<8x192xf32>
      %377 = arith.addf %376, %375 : vector<8x192xf32>
      %378 = arith.divf %376, %377 : vector<8x192xf32>
      %379 = vector.extract_strided_slice %372 {offsets = [0, 192], sizes = [8, 64], strides = [1, 1]} : vector<8x256xf32> to vector<8x64xf32>
      %380 = math.tanh %379 : vector<8x64xf32>
      %381 = vector.extract_strided_slice %378 {offsets = [0, 64], sizes = [8, 64], strides = [1, 1]} : vector<8x192xf32> to vector<8x64xf32>
      %382 = arith.mulf %381, %297 : vector<8x64xf32>
      %383 = vector.extract_strided_slice %378 {offsets = [0, 0], sizes = [8, 64], strides = [1, 1]} : vector<8x192xf32> to vector<8x64xf32>
      %384 = arith.mulf %383, %380 : vector<8x64xf32>
      %385 = arith.addf %382, %384 : vector<8x64xf32>
      %386 = vector.extract_strided_slice %378 {offsets = [0, 128], sizes = [8, 64], strides = [1, 1]} : vector<8x192xf32> to vector<8x64xf32>
      %387 = math.tanh %385 : vector<8x64xf32>
      %388 = arith.mulf %386, %387 : vector<8x64xf32>
      %c2_165 = arith.constant 2 : index
      %c0_166 = arith.constant 0 : index
      %c0_167 = arith.constant 0 : index
      %389 = vector.load %arg1[%c2_165, %c0_166, %c0_167] : memref<3x64x256xf32, #tpu.memory_space<vmem>>, vector<1x64x256xf32>
      %390 = vector.shape_cast %389 : vector<1x64x256xf32> to vector<64x256xf32>
      %cst_168 = arith.constant dense<0.000000e+00> : vector<8x256xf32>
      %391 = tpu.matmul %300, %390, %cst_168 {dimension_numbers = #tpu.dot_dimension_numbers<[1], [0], [0], [1], [0, 0, 1, 1], [], []>} : vector<8x64xf32>, vector<64x256xf32>, vector<8x256xf32> -> vector<8x256xf32>
      %c2_169 = arith.constant 2 : index
      %c0_170 = arith.constant 0 : index
      %c0_171 = arith.constant 0 : index
      %392 = vector.load %arg3[%c2_169, %c0_170, %c0_171] : memref<3x1x256xf32, #tpu.memory_space<vmem>>, vector<1x1x256xf32>
      %393 = vector.shape_cast %392 : vector<1x1x256xf32> to vector<1x256xf32>
      %394 = vector.broadcast %393 : vector<1x256xf32> to vector<8x256xf32>
      %395 = arith.addf %391, %394 : vector<8x256xf32>
      %c2_172 = arith.constant 2 : index
      %c0_173 = arith.constant 0 : index
      %c0_174 = arith.constant 0 : index
      %396 = vector.load %arg2[%c2_172, %c0_173, %c0_174] : memref<3x64x256xf32, #tpu.memory_space<vmem>>, vector<1x64x256xf32>
      %397 = vector.shape_cast %396 : vector<1x64x256xf32> to vector<64x256xf32>
      %cst_175 = arith.constant dense<0.000000e+00> : vector<8x256xf32>
      %398 = tpu.matmul %327, %397, %cst_175 {dimension_numbers = #tpu.dot_dimension_numbers<[1], [0], [0], [1], [0, 0, 1, 1], [], []>} : vector<8x64xf32>, vector<64x256xf32>, vector<8x256xf32> -> vector<8x256xf32>
      %399 = arith.addf %395, %398 : vector<8x256xf32>
      %400 = vector.extract_strided_slice %399 {offsets = [0, 0], sizes = [8, 192], strides = [1, 1]} : vector<8x256xf32> to vector<8x192xf32>
      %401 = arith.negf %400 : vector<8x192xf32>
      %402 = math.exp %401 : vector<8x192xf32>
      %cst_176 = arith.constant 1.000000e+00 : f32
      %403 = vector.broadcast %cst_176 : f32 to vector<8x192xf32>
      %404 = arith.addf %403, %402 : vector<8x192xf32>
      %405 = arith.divf %403, %404 : vector<8x192xf32>
      %406 = vector.extract_strided_slice %399 {offsets = [0, 192], sizes = [8, 64], strides = [1, 1]} : vector<8x256xf32> to vector<8x64xf32>
      %407 = math.tanh %406 : vector<8x64xf32>
      %408 = vector.extract_strided_slice %405 {offsets = [0, 64], sizes = [8, 64], strides = [1, 1]} : vector<8x192xf32> to vector<8x64xf32>
      %409 = arith.mulf %408, %324 : vector<8x64xf32>
      %410 = vector.extract_strided_slice %405 {offsets = [0, 0], sizes = [8, 64], strides = [1, 1]} : vector<8x192xf32> to vector<8x64xf32>
      %411 = arith.mulf %410, %407 : vector<8x64xf32>
      %412 = arith.addf %409, %411 : vector<8x64xf32>
      %413 = vector.extract_strided_slice %405 {offsets = [0, 128], sizes = [8, 64], strides = [1, 1]} : vector<8x192xf32> to vector<8x64xf32>
      %414 = math.tanh %412 : vector<8x64xf32>
      %415 = arith.mulf %413, %414 : vector<8x64xf32>
      %c8_i32_177 = arith.constant 8 : i32
      %416 = arith.muli %361, %c8_i32_177 : i32
      %417 = tpu.assume_multiple %416, 8 : i32
      %418 = arith.index_cast %417 : i32 to index
      %c0_178 = arith.constant 0 : index
      %419 = vector.load %arg7[%418, %c0_178] : memref<560x256xf32, #tpu.memory_space<vmem>>, vector<8x256xf32>
      %c0_179 = arith.constant 0 : index
      %c0_180 = arith.constant 0 : index
      %c0_181 = arith.constant 0 : index
      %420 = vector.load %arg2[%c0_179, %c0_180, %c0_181] : memref<3x64x256xf32, #tpu.memory_space<vmem>>, vector<1x64x256xf32>
      %421 = vector.shape_cast %420 : vector<1x64x256xf32> to vector<64x256xf32>
      %cst_182 = arith.constant dense<0.000000e+00> : vector<8x256xf32>
      %422 = tpu.matmul %351, %421, %cst_182 {dimension_numbers = #tpu.dot_dimension_numbers<[1], [0], [0], [1], [0, 0, 1, 1], [], []>} : vector<8x64xf32>, vector<64x256xf32>, vector<8x256xf32> -> vector<8x256xf32>
      %423 = arith.addf %419, %422 : vector<8x256xf32>
      %424 = vector.extract_strided_slice %423 {offsets = [0, 0], sizes = [8, 192], strides = [1, 1]} : vector<8x256xf32> to vector<8x192xf32>
      %425 = arith.negf %424 : vector<8x192xf32>
      %426 = math.exp %425 : vector<8x192xf32>
      %cst_183 = arith.constant 1.000000e+00 : f32
      %427 = vector.broadcast %cst_183 : f32 to vector<8x192xf32>
      %428 = arith.addf %427, %426 : vector<8x192xf32>
      %429 = arith.divf %427, %428 : vector<8x192xf32>
      %430 = vector.extract_strided_slice %423 {offsets = [0, 192], sizes = [8, 64], strides = [1, 1]} : vector<8x256xf32> to vector<8x64xf32>
      %431 = math.tanh %430 : vector<8x64xf32>
      %432 = vector.extract_strided_slice %429 {offsets = [0, 64], sizes = [8, 64], strides = [1, 1]} : vector<8x192xf32> to vector<8x64xf32>
      %433 = arith.mulf %432, %348 : vector<8x64xf32>
      %434 = vector.extract_strided_slice %429 {offsets = [0, 0], sizes = [8, 64], strides = [1, 1]} : vector<8x192xf32> to vector<8x64xf32>
      %435 = arith.mulf %434, %431 : vector<8x64xf32>
      %436 = arith.addf %433, %435 : vector<8x64xf32>
      %437 = vector.extract_strided_slice %429 {offsets = [0, 128], sizes = [8, 64], strides = [1, 1]} : vector<8x192xf32> to vector<8x64xf32>
      %438 = math.tanh %436 : vector<8x64xf32>
      %439 = arith.mulf %437, %438 : vector<8x64xf32>
      %c2_i32_184 = arith.constant 2 : i32
      %440 = arith.subi %361, %c2_i32_184 : i32
      %441 = arith.index_cast %440 : i32 to index
      %c0_185 = arith.constant 0 : index
      %c0_186 = arith.constant 0 : index
      %442 = vector.load %arg4[%441, %c0_185, %c0_186] : memref<70x1x64xf32, #tpu.memory_space<vmem>>, vector<1x1x64xf32>
      %443 = vector.shape_cast %442 : vector<1x1x64xf32> to vector<1x64xf32>
      %444 = vector.broadcast %443 : vector<1x64xf32> to vector<8x64xf32>
      %445 = arith.mulf %415, %444 : vector<8x64xf32>
      %446 = arith.addf %358, %445 : vector<8x64xf32>
      %c4_i32_187 = arith.constant 4 : i32
      %447 = arith.muli %arg8, %c4_i32_187 : i32
      %c2_i32_188 = arith.constant 2 : i32
      %448 = arith.addi %c2_i32_188, %447 : i32
      %c3_i32 = arith.constant 3 : i32
      %449 = arith.addi %448, %c3_i32 : i32
      %c1_189 = arith.constant 1 : index
      %c0_190 = arith.constant 0 : index
      %c0_191 = arith.constant 0 : index
      %450 = vector.load %arg1[%c1_189, %c0_190, %c0_191] : memref<3x64x256xf32, #tpu.memory_space<vmem>>, vector<1x64x256xf32>
      %451 = vector.shape_cast %450 : vector<1x64x256xf32> to vector<64x256xf32>
      %cst_192 = arith.constant dense<0.000000e+00> : vector<8x256xf32>
      %452 = tpu.matmul %439, %451, %cst_192 {dimension_numbers = #tpu.dot_dimension_numbers<[1], [0], [0], [1], [0, 0, 1, 1], [], []>} : vector<8x64xf32>, vector<64x256xf32>, vector<8x256xf32> -> vector<8x256xf32>
      %c1_193 = arith.constant 1 : index
      %c0_194 = arith.constant 0 : index
      %c0_195 = arith.constant 0 : index
      %453 = vector.load %arg3[%c1_193, %c0_194, %c0_195] : memref<3x1x256xf32, #tpu.memory_space<vmem>>, vector<1x1x256xf32>
      %454 = vector.shape_cast %453 : vector<1x1x256xf32> to vector<1x256xf32>
      %455 = vector.broadcast %454 : vector<1x256xf32> to vector<8x256xf32>
      %456 = arith.addf %452, %455 : vector<8x256xf32>
      %c1_196 = arith.constant 1 : index
      %c0_197 = arith.constant 0 : index
      %c0_198 = arith.constant 0 : index
      %457 = vector.load %arg2[%c1_196, %c0_197, %c0_198] : memref<3x64x256xf32, #tpu.memory_space<vmem>>, vector<1x64x256xf32>
      %458 = vector.shape_cast %457 : vector<1x64x256xf32> to vector<64x256xf32>
      %cst_199 = arith.constant dense<0.000000e+00> : vector<8x256xf32>
      %459 = tpu.matmul %388, %458, %cst_199 {dimension_numbers = #tpu.dot_dimension_numbers<[1], [0], [0], [1], [0, 0, 1, 1], [], []>} : vector<8x64xf32>, vector<64x256xf32>, vector<8x256xf32> -> vector<8x256xf32>
      %460 = arith.addf %456, %459 : vector<8x256xf32>
      %461 = vector.extract_strided_slice %460 {offsets = [0, 0], sizes = [8, 192], strides = [1, 1]} : vector<8x256xf32> to vector<8x192xf32>
      %462 = arith.negf %461 : vector<8x192xf32>
      %463 = math.exp %462 : vector<8x192xf32>
      %cst_200 = arith.constant 1.000000e+00 : f32
      %464 = vector.broadcast %cst_200 : f32 to vector<8x192xf32>
      %465 = arith.addf %464, %463 : vector<8x192xf32>
      %466 = arith.divf %464, %465 : vector<8x192xf32>
      %467 = vector.extract_strided_slice %460 {offsets = [0, 192], sizes = [8, 64], strides = [1, 1]} : vector<8x256xf32> to vector<8x64xf32>
      %468 = math.tanh %467 : vector<8x64xf32>
      %469 = vector.extract_strided_slice %466 {offsets = [0, 64], sizes = [8, 64], strides = [1, 1]} : vector<8x192xf32> to vector<8x64xf32>
      %470 = arith.mulf %469, %385 : vector<8x64xf32>
      %471 = vector.extract_strided_slice %466 {offsets = [0, 0], sizes = [8, 64], strides = [1, 1]} : vector<8x192xf32> to vector<8x64xf32>
      %472 = arith.mulf %471, %468 : vector<8x64xf32>
      %473 = arith.addf %470, %472 : vector<8x64xf32>
      %474 = vector.extract_strided_slice %466 {offsets = [0, 128], sizes = [8, 64], strides = [1, 1]} : vector<8x192xf32> to vector<8x64xf32>
      %475 = math.tanh %473 : vector<8x64xf32>
      %476 = arith.mulf %474, %475 : vector<8x64xf32>
      %c2_201 = arith.constant 2 : index
      %c0_202 = arith.constant 0 : index
      %c0_203 = arith.constant 0 : index
      %477 = vector.load %arg1[%c2_201, %c0_202, %c0_203] : memref<3x64x256xf32, #tpu.memory_space<vmem>>, vector<1x64x256xf32>
      %478 = vector.shape_cast %477 : vector<1x64x256xf32> to vector<64x256xf32>
      %cst_204 = arith.constant dense<0.000000e+00> : vector<8x256xf32>
      %479 = tpu.matmul %388, %478, %cst_204 {dimension_numbers = #tpu.dot_dimension_numbers<[1], [0], [0], [1], [0, 0, 1, 1], [], []>} : vector<8x64xf32>, vector<64x256xf32>, vector<8x256xf32> -> vector<8x256xf32>
      %c2_205 = arith.constant 2 : index
      %c0_206 = arith.constant 0 : index
      %c0_207 = arith.constant 0 : index
      %480 = vector.load %arg3[%c2_205, %c0_206, %c0_207] : memref<3x1x256xf32, #tpu.memory_space<vmem>>, vector<1x1x256xf32>
      %481 = vector.shape_cast %480 : vector<1x1x256xf32> to vector<1x256xf32>
      %482 = vector.broadcast %481 : vector<1x256xf32> to vector<8x256xf32>
      %483 = arith.addf %479, %482 : vector<8x256xf32>
      %c2_208 = arith.constant 2 : index
      %c0_209 = arith.constant 0 : index
      %c0_210 = arith.constant 0 : index
      %484 = vector.load %arg2[%c2_208, %c0_209, %c0_210] : memref<3x64x256xf32, #tpu.memory_space<vmem>>, vector<1x64x256xf32>
      %485 = vector.shape_cast %484 : vector<1x64x256xf32> to vector<64x256xf32>
      %cst_211 = arith.constant dense<0.000000e+00> : vector<8x256xf32>
      %486 = tpu.matmul %415, %485, %cst_211 {dimension_numbers = #tpu.dot_dimension_numbers<[1], [0], [0], [1], [0, 0, 1, 1], [], []>} : vector<8x64xf32>, vector<64x256xf32>, vector<8x256xf32> -> vector<8x256xf32>
      %487 = arith.addf %483, %486 : vector<8x256xf32>
      %488 = vector.extract_strided_slice %487 {offsets = [0, 0], sizes = [8, 192], strides = [1, 1]} : vector<8x256xf32> to vector<8x192xf32>
      %489 = arith.negf %488 : vector<8x192xf32>
      %490 = math.exp %489 : vector<8x192xf32>
      %cst_212 = arith.constant 1.000000e+00 : f32
      %491 = vector.broadcast %cst_212 : f32 to vector<8x192xf32>
      %492 = arith.addf %491, %490 : vector<8x192xf32>
      %493 = arith.divf %491, %492 : vector<8x192xf32>
      %494 = vector.extract_strided_slice %487 {offsets = [0, 192], sizes = [8, 64], strides = [1, 1]} : vector<8x256xf32> to vector<8x64xf32>
      %495 = math.tanh %494 : vector<8x64xf32>
      %496 = vector.extract_strided_slice %493 {offsets = [0, 64], sizes = [8, 64], strides = [1, 1]} : vector<8x192xf32> to vector<8x64xf32>
      %497 = arith.mulf %496, %412 : vector<8x64xf32>
      %498 = vector.extract_strided_slice %493 {offsets = [0, 0], sizes = [8, 64], strides = [1, 1]} : vector<8x192xf32> to vector<8x64xf32>
      %499 = arith.mulf %498, %495 : vector<8x64xf32>
      %500 = arith.addf %497, %499 : vector<8x64xf32>
      %501 = vector.extract_strided_slice %493 {offsets = [0, 128], sizes = [8, 64], strides = [1, 1]} : vector<8x192xf32> to vector<8x64xf32>
      %502 = math.tanh %500 : vector<8x64xf32>
      %503 = arith.mulf %501, %502 : vector<8x64xf32>
      %c8_i32_213 = arith.constant 8 : i32
      %504 = arith.muli %449, %c8_i32_213 : i32
      %505 = tpu.assume_multiple %504, 8 : i32
      %506 = arith.index_cast %505 : i32 to index
      %c0_214 = arith.constant 0 : index
      %507 = vector.load %arg7[%506, %c0_214] : memref<560x256xf32, #tpu.memory_space<vmem>>, vector<8x256xf32>
      %c0_215 = arith.constant 0 : index
      %c0_216 = arith.constant 0 : index
      %c0_217 = arith.constant 0 : index
      %508 = vector.load %arg2[%c0_215, %c0_216, %c0_217] : memref<3x64x256xf32, #tpu.memory_space<vmem>>, vector<1x64x256xf32>
      %509 = vector.shape_cast %508 : vector<1x64x256xf32> to vector<64x256xf32>
      %cst_218 = arith.constant dense<0.000000e+00> : vector<8x256xf32>
      %510 = tpu.matmul %439, %509, %cst_218 {dimension_numbers = #tpu.dot_dimension_numbers<[1], [0], [0], [1], [0, 0, 1, 1], [], []>} : vector<8x64xf32>, vector<64x256xf32>, vector<8x256xf32> -> vector<8x256xf32>
      %511 = arith.addf %507, %510 : vector<8x256xf32>
      %512 = vector.extract_strided_slice %511 {offsets = [0, 0], sizes = [8, 192], strides = [1, 1]} : vector<8x256xf32> to vector<8x192xf32>
      %513 = arith.negf %512 : vector<8x192xf32>
      %514 = math.exp %513 : vector<8x192xf32>
      %cst_219 = arith.constant 1.000000e+00 : f32
      %515 = vector.broadcast %cst_219 : f32 to vector<8x192xf32>
      %516 = arith.addf %515, %514 : vector<8x192xf32>
      %517 = arith.divf %515, %516 : vector<8x192xf32>
      %518 = vector.extract_strided_slice %511 {offsets = [0, 192], sizes = [8, 64], strides = [1, 1]} : vector<8x256xf32> to vector<8x64xf32>
      %519 = math.tanh %518 : vector<8x64xf32>
      %520 = vector.extract_strided_slice %517 {offsets = [0, 64], sizes = [8, 64], strides = [1, 1]} : vector<8x192xf32> to vector<8x64xf32>
      %521 = arith.mulf %520, %436 : vector<8x64xf32>
      %522 = vector.extract_strided_slice %517 {offsets = [0, 0], sizes = [8, 64], strides = [1, 1]} : vector<8x192xf32> to vector<8x64xf32>
      %523 = arith.mulf %522, %519 : vector<8x64xf32>
      %524 = arith.addf %521, %523 : vector<8x64xf32>
      %525 = vector.extract_strided_slice %517 {offsets = [0, 128], sizes = [8, 64], strides = [1, 1]} : vector<8x192xf32> to vector<8x64xf32>
      %526 = math.tanh %524 : vector<8x64xf32>
      %527 = arith.mulf %525, %526 : vector<8x64xf32>
      %c2_i32_220 = arith.constant 2 : i32
      %528 = arith.subi %449, %c2_i32_220 : i32
      %529 = arith.index_cast %528 : i32 to index
      %c0_221 = arith.constant 0 : index
      %c0_222 = arith.constant 0 : index
      %530 = vector.load %arg4[%529, %c0_221, %c0_222] : memref<70x1x64xf32, #tpu.memory_space<vmem>>, vector<1x1x64xf32>
      %531 = vector.shape_cast %530 : vector<1x1x64xf32> to vector<1x64xf32>
      %532 = vector.broadcast %531 : vector<1x64xf32> to vector<8x64xf32>
      %533 = arith.mulf %503, %532 : vector<8x64xf32>
      %534 = arith.addf %446, %533 : vector<8x64xf32>
      scf.yield %527, %524, %476, %473, %503, %500, %534 : vector<8x64xf32>, vector<8x64xf32>, vector<8x64xf32>, vector<8x64xf32>, vector<8x64xf32>, vector<8x64xf32>, vector<8x64xf32>
    }
    %c17_i32_34 = arith.constant 17 : i32
    %c1_35 = arith.constant 1 : index
    %c0_36 = arith.constant 0 : index
    %c0_37 = arith.constant 0 : index
    %81 = vector.load %arg1[%c1_35, %c0_36, %c0_37] : memref<3x64x256xf32, #tpu.memory_space<vmem>>, vector<1x64x256xf32>
    %82 = vector.shape_cast %81 : vector<1x64x256xf32> to vector<64x256xf32>
    %cst_38 = arith.constant dense<0.000000e+00> : vector<8x256xf32>
    %83 = tpu.matmul %80#0, %82, %cst_38 {dimension_numbers = #tpu.dot_dimension_numbers<[1], [0], [0], [1], [0, 0, 1, 1], [], []>} : vector<8x64xf32>, vector<64x256xf32>, vector<8x256xf32> -> vector<8x256xf32>
    %c1_39 = arith.constant 1 : index
    %c0_40 = arith.constant 0 : index
    %c0_41 = arith.constant 0 : index
    %84 = vector.load %arg3[%c1_39, %c0_40, %c0_41] : memref<3x1x256xf32, #tpu.memory_space<vmem>>, vector<1x1x256xf32>
    %85 = vector.shape_cast %84 : vector<1x1x256xf32> to vector<1x256xf32>
    %86 = vector.broadcast %85 : vector<1x256xf32> to vector<8x256xf32>
    %87 = arith.addf %83, %86 : vector<8x256xf32>
    %c1_42 = arith.constant 1 : index
    %c0_43 = arith.constant 0 : index
    %c0_44 = arith.constant 0 : index
    %88 = vector.load %arg2[%c1_42, %c0_43, %c0_44] : memref<3x64x256xf32, #tpu.memory_space<vmem>>, vector<1x64x256xf32>
    %89 = vector.shape_cast %88 : vector<1x64x256xf32> to vector<64x256xf32>
    %cst_45 = arith.constant dense<0.000000e+00> : vector<8x256xf32>
    %90 = tpu.matmul %80#2, %89, %cst_45 {dimension_numbers = #tpu.dot_dimension_numbers<[1], [0], [0], [1], [0, 0, 1, 1], [], []>} : vector<8x64xf32>, vector<64x256xf32>, vector<8x256xf32> -> vector<8x256xf32>
    %91 = arith.addf %87, %90 : vector<8x256xf32>
    %92 = vector.extract_strided_slice %91 {offsets = [0, 0], sizes = [8, 192], strides = [1, 1]} : vector<8x256xf32> to vector<8x192xf32>
    %93 = arith.negf %92 : vector<8x192xf32>
    %94 = math.exp %93 : vector<8x192xf32>
    %cst_46 = arith.constant 1.000000e+00 : f32
    %95 = vector.broadcast %cst_46 : f32 to vector<8x192xf32>
    %96 = arith.addf %95, %94 : vector<8x192xf32>
    %97 = arith.divf %95, %96 : vector<8x192xf32>
    %98 = vector.extract_strided_slice %91 {offsets = [0, 192], sizes = [8, 64], strides = [1, 1]} : vector<8x256xf32> to vector<8x64xf32>
    %99 = math.tanh %98 : vector<8x64xf32>
    %100 = vector.extract_strided_slice %97 {offsets = [0, 64], sizes = [8, 64], strides = [1, 1]} : vector<8x192xf32> to vector<8x64xf32>
    %101 = arith.mulf %100, %80#3 : vector<8x64xf32>
    %102 = vector.extract_strided_slice %97 {offsets = [0, 0], sizes = [8, 64], strides = [1, 1]} : vector<8x192xf32> to vector<8x64xf32>
    %103 = arith.mulf %102, %99 : vector<8x64xf32>
    %104 = arith.addf %101, %103 : vector<8x64xf32>
    %105 = vector.extract_strided_slice %97 {offsets = [0, 128], sizes = [8, 64], strides = [1, 1]} : vector<8x192xf32> to vector<8x64xf32>
    %106 = math.tanh %104 : vector<8x64xf32>
    %107 = arith.mulf %105, %106 : vector<8x64xf32>
    %c2 = arith.constant 2 : index
    %c0_47 = arith.constant 0 : index
    %c0_48 = arith.constant 0 : index
    %108 = vector.load %arg1[%c2, %c0_47, %c0_48] : memref<3x64x256xf32, #tpu.memory_space<vmem>>, vector<1x64x256xf32>
    %109 = vector.shape_cast %108 : vector<1x64x256xf32> to vector<64x256xf32>
    %cst_49 = arith.constant dense<0.000000e+00> : vector<8x256xf32>
    %110 = tpu.matmul %80#2, %109, %cst_49 {dimension_numbers = #tpu.dot_dimension_numbers<[1], [0], [0], [1], [0, 0, 1, 1], [], []>} : vector<8x64xf32>, vector<64x256xf32>, vector<8x256xf32> -> vector<8x256xf32>
    %c2_50 = arith.constant 2 : index
    %c0_51 = arith.constant 0 : index
    %c0_52 = arith.constant 0 : index
    %111 = vector.load %arg3[%c2_50, %c0_51, %c0_52] : memref<3x1x256xf32, #tpu.memory_space<vmem>>, vector<1x1x256xf32>
    %112 = vector.shape_cast %111 : vector<1x1x256xf32> to vector<1x256xf32>
    %113 = vector.broadcast %112 : vector<1x256xf32> to vector<8x256xf32>
    %114 = arith.addf %110, %113 : vector<8x256xf32>
    %c2_53 = arith.constant 2 : index
    %c0_54 = arith.constant 0 : index
    %c0_55 = arith.constant 0 : index
    %115 = vector.load %arg2[%c2_53, %c0_54, %c0_55] : memref<3x64x256xf32, #tpu.memory_space<vmem>>, vector<1x64x256xf32>
    %116 = vector.shape_cast %115 : vector<1x64x256xf32> to vector<64x256xf32>
    %cst_56 = arith.constant dense<0.000000e+00> : vector<8x256xf32>
    %117 = tpu.matmul %80#4, %116, %cst_56 {dimension_numbers = #tpu.dot_dimension_numbers<[1], [0], [0], [1], [0, 0, 1, 1], [], []>} : vector<8x64xf32>, vector<64x256xf32>, vector<8x256xf32> -> vector<8x256xf32>
    %118 = arith.addf %114, %117 : vector<8x256xf32>
    %119 = vector.extract_strided_slice %118 {offsets = [0, 0], sizes = [8, 192], strides = [1, 1]} : vector<8x256xf32> to vector<8x192xf32>
    %120 = arith.negf %119 : vector<8x192xf32>
    %121 = math.exp %120 : vector<8x192xf32>
    %cst_57 = arith.constant 1.000000e+00 : f32
    %122 = vector.broadcast %cst_57 : f32 to vector<8x192xf32>
    %123 = arith.addf %122, %121 : vector<8x192xf32>
    %124 = arith.divf %122, %123 : vector<8x192xf32>
    %125 = vector.extract_strided_slice %118 {offsets = [0, 192], sizes = [8, 64], strides = [1, 1]} : vector<8x256xf32> to vector<8x64xf32>
    %126 = math.tanh %125 : vector<8x64xf32>
    %127 = vector.extract_strided_slice %124 {offsets = [0, 64], sizes = [8, 64], strides = [1, 1]} : vector<8x192xf32> to vector<8x64xf32>
    %128 = arith.mulf %127, %80#5 : vector<8x64xf32>
    %129 = vector.extract_strided_slice %124 {offsets = [0, 0], sizes = [8, 64], strides = [1, 1]} : vector<8x192xf32> to vector<8x64xf32>
    %130 = arith.mulf %129, %126 : vector<8x64xf32>
    %131 = arith.addf %128, %130 : vector<8x64xf32>
    %132 = vector.extract_strided_slice %124 {offsets = [0, 128], sizes = [8, 64], strides = [1, 1]} : vector<8x192xf32> to vector<8x64xf32>
    %133 = math.tanh %131 : vector<8x64xf32>
    %134 = arith.mulf %132, %133 : vector<8x64xf32>
    %c68 = arith.constant 68 : index
    %c0_58 = arith.constant 0 : index
    %c0_59 = arith.constant 0 : index
    %135 = vector.load %arg4[%c68, %c0_58, %c0_59] : memref<70x1x64xf32, #tpu.memory_space<vmem>>, vector<1x1x64xf32>
    %136 = vector.shape_cast %135 : vector<1x1x64xf32> to vector<1x64xf32>
    %137 = vector.broadcast %136 : vector<1x64xf32> to vector<8x64xf32>
    %138 = arith.mulf %134, %137 : vector<8x64xf32>
    %139 = arith.addf %80#6, %138 : vector<8x64xf32>
    %c2_60 = arith.constant 2 : index
    %c0_61 = arith.constant 0 : index
    %c0_62 = arith.constant 0 : index
    %140 = vector.load %arg1[%c2_60, %c0_61, %c0_62] : memref<3x64x256xf32, #tpu.memory_space<vmem>>, vector<1x64x256xf32>
    %141 = vector.shape_cast %140 : vector<1x64x256xf32> to vector<64x256xf32>
    %cst_63 = arith.constant dense<0.000000e+00> : vector<8x256xf32>
    %142 = tpu.matmul %107, %141, %cst_63 {dimension_numbers = #tpu.dot_dimension_numbers<[1], [0], [0], [1], [0, 0, 1, 1], [], []>} : vector<8x64xf32>, vector<64x256xf32>, vector<8x256xf32> -> vector<8x256xf32>
    %c2_64 = arith.constant 2 : index
    %c0_65 = arith.constant 0 : index
    %c0_66 = arith.constant 0 : index
    %143 = vector.load %arg3[%c2_64, %c0_65, %c0_66] : memref<3x1x256xf32, #tpu.memory_space<vmem>>, vector<1x1x256xf32>
    %144 = vector.shape_cast %143 : vector<1x1x256xf32> to vector<1x256xf32>
    %145 = vector.broadcast %144 : vector<1x256xf32> to vector<8x256xf32>
    %146 = arith.addf %142, %145 : vector<8x256xf32>
    %c2_67 = arith.constant 2 : index
    %c0_68 = arith.constant 0 : index
    %c0_69 = arith.constant 0 : index
    %147 = vector.load %arg2[%c2_67, %c0_68, %c0_69] : memref<3x64x256xf32, #tpu.memory_space<vmem>>, vector<1x64x256xf32>
    %148 = vector.shape_cast %147 : vector<1x64x256xf32> to vector<64x256xf32>
    %cst_70 = arith.constant dense<0.000000e+00> : vector<8x256xf32>
    %149 = tpu.matmul %134, %148, %cst_70 {dimension_numbers = #tpu.dot_dimension_numbers<[1], [0], [0], [1], [0, 0, 1, 1], [], []>} : vector<8x64xf32>, vector<64x256xf32>, vector<8x256xf32> -> vector<8x256xf32>
    %150 = arith.addf %146, %149 : vector<8x256xf32>
    %151 = vector.extract_strided_slice %150 {offsets = [0, 0], sizes = [8, 192], strides = [1, 1]} : vector<8x256xf32> to vector<8x192xf32>
    %152 = arith.negf %151 : vector<8x192xf32>
    %153 = math.exp %152 : vector<8x192xf32>
    %cst_71 = arith.constant 1.000000e+00 : f32
    %154 = vector.broadcast %cst_71 : f32 to vector<8x192xf32>
    %155 = arith.addf %154, %153 : vector<8x192xf32>
    %156 = arith.divf %154, %155 : vector<8x192xf32>
    %157 = vector.extract_strided_slice %150 {offsets = [0, 192], sizes = [8, 64], strides = [1, 1]} : vector<8x256xf32> to vector<8x64xf32>
    %158 = math.tanh %157 : vector<8x64xf32>
    %159 = vector.extract_strided_slice %156 {offsets = [0, 64], sizes = [8, 64], strides = [1, 1]} : vector<8x192xf32> to vector<8x64xf32>
    %160 = arith.mulf %159, %131 : vector<8x64xf32>
    %161 = vector.extract_strided_slice %156 {offsets = [0, 0], sizes = [8, 64], strides = [1, 1]} : vector<8x192xf32> to vector<8x64xf32>
    %162 = arith.mulf %161, %158 : vector<8x64xf32>
    %163 = arith.addf %160, %162 : vector<8x64xf32>
    %164 = vector.extract_strided_slice %156 {offsets = [0, 128], sizes = [8, 64], strides = [1, 1]} : vector<8x192xf32> to vector<8x64xf32>
    %165 = math.tanh %163 : vector<8x64xf32>
    %166 = arith.mulf %164, %165 : vector<8x64xf32>
    %c69 = arith.constant 69 : index
    %c0_72 = arith.constant 0 : index
    %c0_73 = arith.constant 0 : index
    %167 = vector.load %arg4[%c69, %c0_72, %c0_73] : memref<70x1x64xf32, #tpu.memory_space<vmem>>, vector<1x1x64xf32>
    %168 = vector.shape_cast %167 : vector<1x1x64xf32> to vector<1x64xf32>
    %169 = vector.broadcast %168 : vector<1x64xf32> to vector<8x64xf32>
    %170 = arith.mulf %166, %169 : vector<8x64xf32>
    %171 = arith.addf %139, %170 : vector<8x64xf32>
    %cst_74 = arith.constant dense<0.000000e+00> : vector<8xf32>
    %172 = vector.multi_reduction <add>, %171, %cst_74 [1] : vector<8x64xf32> to vector<8xf32>
    %173 = vector.shape_cast %172 : vector<8xf32> to vector<8x1xf32>
    %c0_75 = arith.constant 0 : index
    %174 = memref.load %arg5[%c0_75] : memref<1xf32, #tpu.memory_space<smem>>
    %175 = vector.broadcast %174 : f32 to vector<8x1xf32>
    %176 = arith.addf %173, %175 : vector<8x1xf32>
    %177 = arith.negf %176 : vector<8x1xf32>
    %178 = math.exp %177 : vector<8x1xf32>
    %cst_76 = arith.constant 1.000000e+00 : f32
    %179 = vector.broadcast %cst_76 : f32 to vector<8x1xf32>
    %180 = arith.addf %179, %178 : vector<8x1xf32>
    %181 = arith.divf %179, %180 : vector<8x1xf32>
    %c0_77 = arith.constant 0 : index
    %c0_78 = arith.constant 0 : index
    %182 = vector.load %arg6[%c0_77, %c0_78] : memref<8x1xf32, #tpu.memory_space<vmem>>, vector<8x1xf32>
    tpu.vector_store %arg6[%c0_77, %c0_78], %181 {strides = array<i32>} : memref<8x1xf32, #tpu.memory_space<vmem>>, vector<8x1xf32>,
    return
  }
}

</mosaic_0001>

<bundles_post_ra>
// kernel: tpu_custom_call.1
= control target key start
LH: loop header
LB: loop body
LE: loop exit
PB: predicated region body
PF: predicated region fallthrough
CT: control target
= control target key end

     0   :  { %v7171_v3 = vmov 0.0   ;;  %vm122_vm0 = vcmask 523264   ;;  %s5331_s22 = smov 64   ;;  %s7164_s1 = inlined_call_operand.vmem [shape: f32[3,64,256], index: 1, kind: input, shape index: {}]   ;;  %s7165_s4 = inlined_call_operand.vmem [shape: f32[70,1,64], index: 4, kind: input, shape index: {}]   ;;  %s7166_s5 = inlined_call_operand.<no memory space> [shape: f32[1], index: 5, kind: input, shape index: {}]   ;;  %s7167_s6 = inlined_call_operand.vmem [shape: f32[8,1], index: 6, kind: output, shape index: {}]   ;;  %s7168_s2 = inlined_call_operand.vmem [shape: f32[3,64,256], index: 2, kind: input, shape index: {}]   ;;  %s7169_s0 = inlined_call_operand.vmem [shape: f32[560,64], index: 0, kind: input, shape index: {}]   ;;  %s7170_s3 = inlined_call_operand.vmem [shape: f32[3,1,256], index: 3, kind: input, shape index: {}]  }
   0x1   :  { %v95_v0 = vld [vmem:[%s7164_s1 + $0x8] sm:$0xff]  ;;  %v97_v1 = vld [vmem:[%s7164_s1 + $0x18] sm:$0xff]  ;;  %v94_v2 = vld [vmem:[%s7164_s1] sm:$0xff]  ;;  %649 = vmatprep.mubr.f32.mxu1 %v7171_v3  ;;  %11 = sst [smem:[#allocation3]] %s7166_s5  ;;  %397 = vmatprep.mubr.f32.mxu0 %v7171_v3 }
   0x2   :  { %v4426_v4 = vpack.c.bf16 %v97_v1, %v95_v0  ;;  %v96_v5 = vld [vmem:[%s7164_s1 + $0x10] sm:$0xff]  ;;  %v99_v6 = vld [vmem:[%s7164_s1 + $0x28] sm:$0xff]  ;;  %v101_v7 = vld [vmem:[%s7164_s1 + $0x38] sm:$0xff] }
   0x3   :  { %v4428_v8 = vpack.c.bf16 %v96_v5, %v94_v2  ;;  %v4430_v9 = vpack.c.bf16 %v101_v7, %v99_v6  ;;  %v98_v10 = vld [vmem:[%s7164_s1 + $0x20] sm:$0xff]  ;;  %v100_v11 = vld [vmem:[%s7164_s1 + $0x30] sm:$0xff]  ;;  %v103_v12 = vld [vmem:[%s7164_s1 + $0x48] sm:$0xff] }
   0x4   :  { %4922 = vmatprep.subr.bf16.mxu1 %v4426_v4  ;;  %v105_v13 = vld [vmem:[%s7164_s1 + $0x58] sm:$0xff]  ;;  %4427 = vmatprep.subr.bf16.mxu0 %v4426_v4  ;;  %v4432_v14 = vpack.c.bf16 %v100_v11, %v98_v10  ;;  %v102_v16 = vld [vmem:[%s7164_s1 + $0x40] sm:$0xff]  ;;  %v104_v17 = vld [vmem:[%s7164_s1 + $0x50] sm:$0xff] }
   0x5   :  { %4926 = vmatpush1.bf16.msra.mxu1 %v4428_v8  ;;  %4429 = vmatpush1.bf16.msra.mxu0 %v4428_v8  ;;  %v4434_v15 = vpack.c.bf16 %v105_v13, %v103_v12  ;;  %v107_v18 = vld [vmem:[%s7164_s1 + $0x68] sm:$0xff]  ;;  %v109_v19 = vld [vmem:[%s7164_s1 + $0x78] sm:$0xff]  ;;  %v4436_v20 = vpack.c.bf16 %v104_v17, %v102_v16  ;;  %v106_v22 = vld [vmem:[%s7164_s1 + $0x60] sm:$0xff] }
   0x6   :  { %4923 = vmatprep.subr.bf16.mxu1 %v4430_v9  ;;  %4431 = vmatprep.subr.bf16.mxu0 %v4430_v9  ;;  %v4438_v21 = vpack.c.bf16 %v109_v19, %v107_v18  ;;  %v108_v23 = vld [vmem:[%s7164_s1 + $0x70] sm:$0xff]  ;;  %v961_v24 = vld [vmem:[%s7168_s2 + $0x8] sm:$0xff]  ;;  %v963_v25 = vld [vmem:[%s7168_s2 + $0x18] sm:$0xff] }
   0x7   :  { %v4440_v26 = vpack.c.bf16 %v108_v23, %v106_v22  ;;  %v5428_v27 = vpack.c.bf16 %v963_v25, %v961_v24  ;;  %v960_v28 = vld [vmem:[%s7168_s2] sm:$0xff]  ;;  %v962_v29 = vld [vmem:[%s7168_s2 + $0x10] sm:$0xff]  ;;  %v965_v30 = vld [vmem:[%s7168_s2 + $0x28] sm:$0xff] }
   0x8   :  { %v967_v31 = vld [vmem:[%s7168_s2 + $0x38] sm:$0xff]  ;;  %v66_v32 = vld [vmem:[%s7169_s0 + $0x150] sm:$0xff]  ;;  %v5445_v33 = vpack.c.bf16 %v962_v29, %v960_v28  ;;  %v964_v35 = vld [vmem:[%s7168_s2 + $0x20] sm:$0xff] }
   0x9   :  { %4927 = vmatpush1.bf16.msra.mxu1 %v4432_v14  ;;  %4433 = vmatpush1.bf16.msra.mxu0 %v4432_v14  ;;  %v5448_v34 = vpack.c.bf16 %v967_v31, %v965_v30  ;;  %v966_v36 = vld [vmem:[%s7168_s2 + $0x30] sm:$0xff]  ;;  %v969_v37 = vld [vmem:[%s7168_s2 + $0x48] sm:$0xff]  ;;  %v971_v38 = vld [vmem:[%s7168_s2 + $0x58] sm:$0xff] }
   0xa   :  { %4924 = vmatprep.subr.bf16.mxu1 %v4434_v15  ;;  %4435 = vmatprep.subr.bf16.mxu0 %v4434_v15  ;;  %v24_v39 = vld [vmem:[%s7169_s0] sm:$0xff]  ;;  %v67_v40 = vld [vmem:[%s7169_s0 + $0x158] sm:$0xff]  ;;  %v5471_v41 = vpack.c.bf16 %v966_v36, %v964_v35  ;;  %v5474_v42 = vpack.c.bf16 %v971_v38, %v969_v37  ;;  %v970_v44 = vld [vmem:[%s7168_s2 + $0x50] sm:$0xff]  ;;  %v112_v15 = vlaneseq }
   0xb   :  { %v968_v43 = vld [vmem:[%s7168_s2 + $0x40] sm:$0xff]  ;;  %v973_v45 = vld [vmem:[%s7168_s2 + $0x68] sm:$0xff]  ;;  %v975_v46 = vld [vmem:[%s7168_s2 + $0x78] sm:$0xff] }
   0xc   :  { %v68_v47 = vld [vmem:[%s7169_s0 + $0x160] sm:$0xff]  ;;  %v5496_v48 = vpack.c.bf16 %v970_v44, %v968_v43  ;;  %v5499_v49 = vpack.c.bf16 %v975_v46, %v973_v45  ;;  %v974_v51 = vld [vmem:[%s7168_s2 + $0x70] sm:$0xff]  ;;  %v69_v52 = vld [vmem:[%s7169_s0 + $0x168] sm:$0xff]  ;;  %v113_v16 = vshrl.u32 %v112_v15, 7 }
   0xd   :  { %4928 = vmatpush1.bf16.msra.mxu1 %v4436_v20  ;;  %4437 = vmatpush1.bf16.msra.mxu0 %v4436_v20  ;;  %v972_v50 = vld [vmem:[%s7168_s2 + $0x60] sm:$0xff]  ;;  %v70_v54 = vld [vmem:[%s7169_s0 + $0x170] sm:$0xff]  ;;  %v71_v55 = vld [vmem:[%s7169_s0 + $0x178] sm:$0xff] }
   0xe   :  { %4925 = vmatprep.subr.bf16.mxu1 %v4438_v21  ;;  %4439 = vmatprep.subr.bf16.mxu0 %v4438_v21  ;;  %v5513_v53 = vpack.c.bf16 %v974_v51, %v972_v50  ;;  %v72_v56 = vld [vmem:[%s7169_s0 + $0x180] sm:$0xff]  ;;  %v73_v57 = vld [vmem:[%s7169_s0 + $0x188] sm:$0xff]  ;;  %v74_v58 = vld [vmem:[%s7169_s0 + $0x190] sm:$0xff]  ;;  %v5641_v17 = vsub.s32 0, %v113_v16  ;;  %v5646_v19 = vsub.s32 1, %v113_v16 }
   0xf   :  { %v75_v59 = vld [vmem:[%s7169_s0 + $0x198] sm:$0xff]  ;;  %v76_v60 = vld [vmem:[%s7169_s0 + $0x1a0] sm:$0xff]  ;;  %v77_v61 = vld [vmem:[%s7169_s0 + $0x1a8] sm:$0xff] }
  0x10   :  { %v78_v62 = vld [vmem:[%s7169_s0 + $0x1b0] sm:$0xff]  ;;  %v79_v63 = vld [vmem:[%s7169_s0 + $0x1b8] sm:$0xff]  ;;  %v80_v0 = vld [vmem:[%s7169_s0 + $0x1c0] sm:$0xff]  ;;  %7207 = vst [vmem:[#allocation4_spill] sm:$0xff] %v5641_v17 }
  0x11   :  { %4929 = vmatpush1.bf16.msra.mxu1 %v4440_v26  ;;  %4441 = vmatpush1.bf16.msra.mxu0 %v4440_v26  ;;  %v81_v1 = vld [vmem:[%s7169_s0 + $0x1c8] sm:$0xff]  ;;  %v82_v2 = vld [vmem:[%s7169_s0 + $0x1d0] sm:$0xff]  ;;  %v83_v4 = vld [vmem:[%s7169_s0 + $0x1d8] sm:$0xff]  ;;  %7208 = vst [vmem:[#allocation5_spill] sm:$0xff] %v5646_v19 }
  0x12   :  { %4443 = vmatprep.subr.bf16.mxu1 %v5428_v27  ;;  %v84_v5 = vld [vmem:[%s7169_s0 + $0x1e0] sm:$0xff]  ;;  %v85_v6 = vld [vmem:[%s7169_s0 + $0x1e8] sm:$0xff]  ;;  %v86_v7 = vld [vmem:[%s7169_s0 + $0x1f0] sm:$0xff] }
  0x13   :  { %v87_v8 = vld [vmem:[%s7169_s0 + $0x1f8] sm:$0xff]  ;;  %v88_v9 = vld [vmem:[%s7169_s0 + $0x200] sm:$0xff]  ;;  %v89_v10 = vld [vmem:[%s7169_s0 + $0x208] sm:$0xff] }
  0x14   :  { %4158 = vmatmul.mubr.msk.f32.vlgmr.msra.gmra.mrb[0].mxu1 %vm122_vm0, %v66_v32  ;;  %4116 = vmatmul.mubr.msk.f32.vlgmr.msra.gmra.mrb[0].mxu0 %vm122_vm0, %v24_v39  ;;  %v90_v11 = vld [vmem:[%s7169_s0 + $0x210] sm:$0xff]  ;;  %v91_v12 = vld [vmem:[%s7169_s0 + $0x218] sm:$0xff]  ;;  %v92_v13 = vld [vmem:[%s7169_s0 + $0x220] sm:$0xff] }
  0x15   :  { %4445 = vmatpush1.bf16.msra.mxu1 %v5445_v33  ;;  %655 = vmatprep.mubr.f32.mxu1 %v7171_v3  ;;  %v93_v14 = vld [vmem:[%s7169_s0 + $0x228] sm:$0xff]  ;;  %v110_v18 = vld [vmem:[%s7170_s3] sm:$0x3] }
  0x16   :  { %4447 = vmatprep.subr.bf16.mxu1 %v5448_v34  ;;  %403 = vmatprep.mubr.f32.mxu0 %v7171_v3  ;;  %v5649_v20 = vrot.slane %v110_v18, %v5641_v17  ;;  %v5652_v21 = vrot.slane %v110_v18, %v5646_v19 }
  0x18   :  { %4159 = vmatmul.mubr.msk.f32.gmra.mrb[2].mxu1 %vm122_vm0, %v67_v40 }
  0x19   :  { %661 = vmatprep.mubr.f32.mxu1 %v7171_v3  ;;  %4449 = vmatpush1.bf16.msra.mxu1 %v5471_v41 }
  0x1a   :  { %4451 = vmatprep.subr.bf16.mxu1 %v5474_v42 }
  0x1c   :  { %4160 = vmatmul.mubr.msk.f32.gmra.mrb[4].mxu1 %vm122_vm0, %v68_v47 }
  0x1d   :  { %667 = vmatprep.mubr.f32.mxu1 %v7171_v3  ;;  %4453 = vmatpush1.bf16.msra.mxu1 %v5496_v48 }
  0x1e   :  { %4455 = vmatprep.subr.bf16.mxu1 %v5499_v49 }
  0x20   :  { %4161 = vmatmul.mubr.msk.f32.gmra.mrb[6].mxu1 %vm122_vm0, %v69_v52 }
  0x21   :  { %673 = vmatprep.mubr.f32.mxu1 %v7171_v3  ;;  %4457 = vmatpush1.bf16.msra.mxu1 %v5513_v53 }
  0x24   :  { %4162 = vmatmul.mubr.msk.f32.gmra.mrb[8].mxu1 %vm122_vm0, %v70_v54 }
  0x25   :  { %679 = vmatprep.mubr.f32.mxu1 %v7171_v3 }
  0x28   :  { %4163 = vmatmul.mubr.msk.f32.gmra.mrb[10].mxu1 %vm122_vm0, %v71_v55 }
  0x29   :  { %685 = vmatprep.mubr.f32.mxu1 %v7171_v3 }
  0x2c   :  { %4164 = vmatmul.mubr.msk.f32.gmra.mrb[12].mxu1 %vm122_vm0, %v72_v56 }
  0x2d   :  { %691 = vmatprep.mubr.f32.mxu1 %v7171_v3 }
  0x30   :  { %4165 = vmatmul.mubr.msk.f32.gmra.mrb[14].mxu1 %vm122_vm0, %v73_v57 }
  0x31   :  { %697 = vmatprep.mubr.f32.mxu1 %v7171_v3 }
  0x34   :  { %4166 = vmatmul.mubr.msk.f32.gmra.mrb[16].mxu1 %vm122_vm0, %v74_v58 }
  0x35   :  { %703 = vmatprep.mubr.f32.mxu1 %v7171_v3 }
  0x38   :  { %4167 = vmatmul.mubr.msk.f32.gmra.mrb[18].mxu1 %vm122_vm0, %v75_v59 }
  0x39   :  { %709 = vmatprep.mubr.f32.mxu1 %v7171_v3 }
  0x3c   :  { %4168 = vmatmul.mubr.msk.f32.gmra.mrb[20].mxu1 %vm122_vm0, %v76_v60 }
  0x3d   :  { %715 = vmatprep.mubr.f32.mxu1 %v7171_v3 }
  0x40   :  { %4169 = vmatmul.mubr.msk.f32.gmra.mrb[22].mxu1 %vm122_vm0, %v77_v61 }
  0x41   :  { %721 = vmatprep.mubr.f32.mxu1 %v7171_v3 }
  0x44   :  { %4170 = vmatmul.mubr.msk.f32.gmra.mrb[24].mxu1 %vm122_vm0, %v78_v62 }
  0x45   :  { %727 = vmatprep.mubr.f32.mxu1 %v7171_v3 }
  0x48   :  { %4171 = vmatmul.mubr.msk.f32.gmra.mrb[26].mxu1 %vm122_vm0, %v79_v63 }
  0x49   :  { %733 = vmatprep.mubr.f32.mxu1 %v7171_v3 }
  0x4c   :  { %4172 = vmatmul.mubr.msk.f32.gmra.mrb[28].mxu1 %vm122_vm0, %v80_v0 }
  0x4d   :  { %739 = vmatprep.mubr.f32.mxu1 %v7171_v3 }
  0x50   :  { %4173 = vmatmul.mubr.msk.f32.gmra.mrb[30].mxu1 %vm122_vm0, %v81_v1 }
  0x51   :  { %745 = vmatprep.mubr.f32.mxu1 %v7171_v3 }
  0x54   :  { %4174 = vmatmul.mubr.msk.f32.gmra.mrb[32].mxu1 %vm122_vm0, %v82_v2 }
  0x55   :  { %751 = vmatprep.mubr.f32.mxu1 %v7171_v3 }
  0x58   :  { %4175 = vmatmul.mubr.msk.f32.gmra.mrb[34].mxu1 %vm122_vm0, %v83_v4 }
  0x59   :  { %757 = vmatprep.mubr.f32.mxu1 %v7171_v3 }
  0x5c   :  { %4176 = vmatmul.mubr.msk.f32.gmra.mrb[36].mxu1 %vm122_vm0, %v84_v5 }
  0x5d   :  { %763 = vmatprep.mubr.f32.mxu1 %v7171_v3 }
  0x60   :  { %4177 = vmatmul.mubr.msk.f32.gmra.mrb[38].mxu1 %vm122_vm0, %v85_v6 }
  0x61   :  { %769 = vmatprep.mubr.f32.mxu1 %v7171_v3 }
  0x64   :  { %4178 = vmatmul.mubr.msk.f32.gmra.mrb[40].mxu1 %vm122_vm0, %v86_v7 }
  0x65   :  { %775 = vmatprep.mubr.f32.mxu1 %v7171_v3 }
  0x68   :  { %4179 = vmatmul.mubr.msk.f32.gmra.mrb[42].mxu1 %vm122_vm0, %v87_v8 }
  0x69   :  { %781 = vmatprep.mubr.f32.mxu1 %v7171_v3 }
  0x6c   :  { %4180 = vmatmul.mubr.msk.f32.gmra.mrb[44].mxu1 %vm122_vm0, %v88_v9 }
  0x6d   :  { %787 = vmatprep.mubr.f32.mxu1 %v7171_v3 }
  0x70   :  { %4181 = vmatmul.mubr.msk.f32.gmra.mrb[46].mxu1 %vm122_vm0, %v89_v10 }
  0x71   :  { %793 = vmatprep.mubr.f32.mxu1 %v7171_v3 }
  0x74   :  { %4182 = vmatmul.mubr.msk.f32.gmra.mrb[48].mxu1 %vm122_vm0, %v90_v11 }
  0x75   :  { %799 = vmatprep.mubr.f32.mxu1 %v7171_v3 }
  0x78   :  { %4183 = vmatmul.mubr.msk.f32.gmra.mrb[50].mxu1 %vm122_vm0, %v91_v12 }
  0x79   :  { %805 = vmatprep.mubr.f32.mxu1 %v7171_v3 }
  0x7c   :  { %4184 = vmatmul.mubr.msk.f32.gmra.mrb[52].mxu1 %vm122_vm0, %v92_v13 }
  0x7d   :  { %811 = vmatprep.mubr.f32.mxu1 %v7171_v3 }
  0x80   :  { %4185 = vmatmul.mubr.msk.f32.gmra.mrb[54].mxu1 %vm122_vm0, %v93_v14 }
  0x81   :  { %1043 = vmatprep.mubr.f32.mxu1 %v7171_v3 }
  0x84   :  { %1044 = vmatmul.mubr.f32.vlgmr.msra.gmra.mrb[56].mxu1 %v7171_v3 }
  0x85   :  { %1179 = vmatprep.mubr.f32.mxu1 %v7171_v3 }
  0xe7   :  { %v651_v22 = vpop.f32.mrb[0].mxu1  ;;  %v399_v26 = vpop.f32.mrb[0].mxu0 }
  0xe8   :  { %v652_v23 = vadd.f32 %v651_v22, %v5649_v20  ;;  %v653_v24 = vpop.f32.mrb[1].mxu1  ;;  %v5657_v28 = vadd.f32 %v399_v26, %v5649_v20  ;;  %v401_v29 = vpop.f32.mrb[1].mxu0 }
  0xe9   :  { %v654_v25 = vadd.f32 %v653_v24, %v5652_v21  ;;  %v5660_v31 = vadd.f32 %v401_v29, %v5652_v21 }
  0xea   :  { %902 = vst [vmem:[#allocation2 + $0x2a0] sm:$0xff] %v652_v23  ;;  %818 = vst [vmem:[#allocation2] sm:$0xff] %v5657_v28 }
  0xeb   :  { %903 = vst [vmem:[#allocation2 + $0x2a8] sm:$0xff] %v654_v25  ;;  %v657_v30 = vpop.f32.mrb[2].mxu1  ;;  %819 = vst [vmem:[#allocation2 + $0x8] sm:$0xff] %v5660_v31 }
  0xec   :  { %v658_v32 = vadd.f32 %v657_v30, %v5649_v20  ;;  %v659_v35 = vpop.f32.mrb[3].mxu1 }
  0xed   :  { %v660_v36 = vadd.f32 %v659_v35, %v5652_v21 }
  0xee   :  { %904 = vst [vmem:[#allocation2 + $0x2b0] sm:$0xff] %v658_v32 }
  0xef   :  { %905 = vst [vmem:[#allocation2 + $0x2b8] sm:$0xff] %v660_v36  ;;  %v663_v37 = vpop.f32.mrb[4].mxu1 }
  0xf0   :  { %v664_v38 = vadd.f32 %v663_v37, %v5649_v20  ;;  %v665_v39 = vpop.f32.mrb[5].mxu1 }
  0xf1   :  { %v666_v40 = vadd.f32 %v665_v39, %v5652_v21 }
  0xf2   :  { %906 = vst [vmem:[#allocation2 + $0x2c0] sm:$0xff] %v664_v38 }
  0xf3   :  { %907 = vst [vmem:[#allocation2 + $0x2c8] sm:$0xff] %v666_v40  ;;  %v669_v43 = vpop.f32.mrb[6].mxu1 }
  0xf4   :  { %v670_v44 = vadd.f32 %v669_v43, %v5649_v20  ;;  %v671_v45 = vpop.f32.mrb[7].mxu1 }
  0xf5   :  { %v672_v46 = vadd.f32 %v671_v45, %v5652_v21 }
  0xf6   :  { %908 = vst [vmem:[#allocation2 + $0x2d0] sm:$0xff] %v670_v44 }
  0xf7   :  { %909 = vst [vmem:[#allocation2 + $0x2d8] sm:$0xff] %v672_v46  ;;  %v675_v47 = vpop.f32.mrb[8].mxu1 }
  0xf8   :  { %v676_v50 = vadd.f32 %v675_v47, %v5649_v20  ;;  %v677_v51 = vpop.f32.mrb[9].mxu1 }
  0xf9   :  { %v678_v52 = vadd.f32 %v677_v51, %v5652_v21 }
  0xfa   :  { %910 = vst [vmem:[#allocation2 + $0x2e0] sm:$0xff] %v676_v50 }
  0xfb   :  { %911 = vst [vmem:[#allocation2 + $0x2e8] sm:$0xff] %v678_v52  ;;  %v681_v54 = vpop.f32.mrb[10].mxu1 }
  0xfc   :  { %v682_v55 = vadd.f32 %v681_v54, %v5649_v20  ;;  %v683_v56 = vpop.f32.mrb[11].mxu1 }
  0xfd   :  { %v684_v57 = vadd.f32 %v683_v56, %v5652_v21 }
  0xfe   :  { %912 = vst [vmem:[#allocation2 + $0x2f0] sm:$0xff] %v682_v55 }
  0xff   :  { %913 = vst [vmem:[#allocation2 + $0x2f8] sm:$0xff] %v684_v57  ;;  %v687_v58 = vpop.f32.mrb[12].mxu1 }
 0x100   :  { %v688_v59 = vadd.f32 %v687_v58, %v5649_v20  ;;  %v689_v60 = vpop.f32.mrb[13].mxu1 }
 0x101   :  { %v690_v61 = vadd.f32 %v689_v60, %v5652_v21 }
 0x102   :  { %914 = vst [vmem:[#allocation2 + $0x300] sm:$0xff] %v688_v59 }
 0x103   :  { %915 = vst [vmem:[#allocation2 + $0x308] sm:$0xff] %v690_v61  ;;  %v693_v62 = vpop.f32.mrb[14].mxu1 }
 0x104   :  { %v694_v63 = vadd.f32 %v693_v62, %v5649_v20  ;;  %v695_v0 = vpop.f32.mrb[15].mxu1 }
 0x105   :  { %v696_v1 = vadd.f32 %v695_v0, %v5652_v21 }
 0x106   :  { %916 = vst [vmem:[#allocation2 + $0x310] sm:$0xff] %v694_v63 }
 0x107   :  { %917 = vst [vmem:[#allocation2 + $0x318] sm:$0xff] %v696_v1  ;;  %v699_v2 = vpop.f32.mrb[16].mxu1 }
 0x108   :  { %v700_v4 = vadd.f32 %v699_v2, %v5649_v20  ;;  %v701_v5 = vpop.f32.mrb[17].mxu1 }
 0x109   :  { %v702_v6 = vadd.f32 %v701_v5, %v5652_v21 }
 0x10a   :  { %918 = vst [vmem:[#allocation2 + $0x320] sm:$0xff] %v700_v4 }
 0x10b   :  { %919 = vst [vmem:[#allocation2 + $0x328] sm:$0xff] %v702_v6  ;;  %v705_v7 = vpop.f32.mrb[18].mxu1 }
 0x10c   :  { %v706_v8 = vadd.f32 %v705_v7, %v5649_v20  ;;  %v707_v9 = vpop.f32.mrb[19].mxu1 }
 0x10d   :  { %v708_v10 = vadd.f32 %v707_v9, %v5652_v21 }
 0x10e   :  { %920 = vst [vmem:[#allocation2 + $0x330] sm:$0xff] %v706_v8 }
 0x10f   :  { %921 = vst [vmem:[#allocation2 + $0x338] sm:$0xff] %v708_v10  ;;  %v711_v11 = vpop.f32.mrb[20].mxu1 }
 0x110   :  { %v712_v12 = vadd.f32 %v711_v11, %v5649_v20  ;;  %v713_v13 = vpop.f32.mrb[21].mxu1 }
 0x111   :  { %v714_v14 = vadd.f32 %v713_v13, %v5652_v21 }
 0x112   :  { %922 = vst [vmem:[#allocation2 + $0x340] sm:$0xff] %v712_v12 }
 0x113   :  { %923 = vst [vmem:[#allocation2 + $0x348] sm:$0xff] %v714_v14  ;;  %v717_v15 = vpop.f32.mrb[22].mxu1 }
 0x114   :  { %v718_v16 = vadd.f32 %v717_v15, %v5649_v20  ;;  %v719_v18 = vpop.f32.mrb[23].mxu1 }
 0x115   :  { %v720_v22 = vadd.f32 %v719_v18, %v5652_v21 }
 0x116   :  { %924 = vst [vmem:[#allocation2 + $0x350] sm:$0xff] %v718_v16 }
 0x117   :  { %925 = vst [vmem:[#allocation2 + $0x358] sm:$0xff] %v720_v22  ;;  %v723_v23 = vpop.f32.mrb[24].mxu1 }
 0x118   :  { %v724_v24 = vadd.f32 %v723_v23, %v5649_v20  ;;  %v725_v25 = vpop.f32.mrb[25].mxu1 }
 0x119   :  { %v726_v26 = vadd.f32 %v725_v25, %v5652_v21 }
 0x11a   :  { %926 = vst [vmem:[#allocation2 + $0x360] sm:$0xff] %v724_v24 }
 0x11b   :  { %927 = vst [vmem:[#allocation2 + $0x368] sm:$0xff] %v726_v26  ;;  %v729_v29 = vpop.f32.mrb[26].mxu1 }
 0x11c   :  { %v730_v30 = vadd.f32 %v729_v29, %v5649_v20  ;;  %v731_v32 = vpop.f32.mrb[27].mxu1 }
 0x11d   :  { %v732_v35 = vadd.f32 %v731_v32, %v5652_v21 }
 0x11e   :  { %928 = vst [vmem:[#allocation2 + $0x370] sm:$0xff] %v730_v30 }
 0x11f   :  { %929 = vst [vmem:[#allocation2 + $0x378] sm:$0xff] %v732_v35  ;;  %v735_v36 = vpop.f32.mrb[28].mxu1 }
 0x120   :  { %v736_v37 = vadd.f32 %v735_v36, %v5649_v20  ;;  %v737_v38 = vpop.f32.mrb[29].mxu1 }
 0x121   :  { %v738_v39 = vadd.f32 %v737_v38, %v5652_v21 }
 0x122   :  { %930 = vst [vmem:[#allocation2 + $0x380] sm:$0xff] %v736_v37 }
 0x123   :  { %931 = vst [vmem:[#allocation2 + $0x388] sm:$0xff] %v738_v39  ;;  %v741_v40 = vpop.f32.mrb[30].mxu1 }
 0x124   :  { %v742_v43 = vadd.f32 %v741_v40, %v5649_v20  ;;  %v743_v44 = vpop.f32.mrb[31].mxu1 }
 0x125   :  { %v744_v45 = vadd.f32 %v743_v44, %v5652_v21 }
 0x126   :  { %932 = vst [vmem:[#allocation2 + $0x390] sm:$0xff] %v742_v43 }
 0x127   :  { %933 = vst [vmem:[#allocation2 + $0x398] sm:$0xff] %v744_v45  ;;  %v747_v46 = vpop.f32.mrb[32].mxu1 }
 0x128   :  { %v748_v47 = vadd.f32 %v747_v46, %v5649_v20  ;;  %v749_v50 = vpop.f32.mrb[33].mxu1 }
 0x129   :  { %v750_v51 = vadd.f32 %v749_v50, %v5652_v21 }
 0x12a   :  { %934 = vst [vmem:[#allocation2 + $0x3a0] sm:$0xff] %v748_v47 }
 0x12b   :  { %935 = vst [vmem:[#allocation2 + $0x3a8] sm:$0xff] %v750_v51  ;;  %v753_v52 = vpop.f32.mrb[34].mxu1 }
 0x12c   :  { %v754_v54 = vadd.f32 %v753_v52, %v5649_v20  ;;  %v755_v55 = vpop.f32.mrb[35].mxu1 }
 0x12d   :  { %v756_v56 = vadd.f32 %v755_v55, %v5652_v21 }
 0x12e   :  { %936 = vst [vmem:[#allocation2 + $0x3b0] sm:$0xff] %v754_v54 }
 0x12f   :  { %937 = vst [vmem:[#allocation2 + $0x3b8] sm:$0xff] %v756_v56  ;;  %v759_v57 = vpop.f32.mrb[36].mxu1 }
 0x130   :  { %v760_v58 = vadd.f32 %v759_v57, %v5649_v20  ;;  %v761_v59 = vpop.f32.mrb[37].mxu1 }
 0x131   :  { %v762_v60 = vadd.f32 %v761_v59, %v5652_v21  ;;  %v4191_v59 = vld [vmem:[%s7164_s1 + $0x98] sm:$0xff] }
 0x132   :  { %938 = vst [vmem:[#allocation2 + $0x3c0] sm:$0xff] %v760_v58 }
 0x133   :  { %939 = vst [vmem:[#allocation2 + $0x3c8] sm:$0xff] %v762_v60  ;;  %v765_v61 = vpop.f32.mrb[38].mxu1 }
 0x134   :  { %v766_v62 = vadd.f32 %v765_v61, %v5649_v20  ;;  %v767_v63 = vpop.f32.mrb[39].mxu1  ;;  %v4190_v61 = vld [vmem:[%s7164_s1 + $0x90] sm:$0xff] }
 0x135   :  { %v768_v0 = vadd.f32 %v767_v63, %v5652_v21  ;;  %v4195_v63 = vld [vmem:[%s7164_s1 + $0xb8] sm:$0xff] }
 0x136   :  { %940 = vst [vmem:[#allocation2 + $0x3d0] sm:$0xff] %v766_v62  ;;  %v4193_v62 = vld [vmem:[%s7164_s1 + $0xa8] sm:$0xff] }
 0x137   :  { %941 = vst [vmem:[#allocation2 + $0x3d8] sm:$0xff] %v768_v0  ;;  %v771_v1 = vpop.f32.mrb[40].mxu1 }
 0x138   :  { %v772_v2 = vadd.f32 %v771_v1, %v5649_v20  ;;  %v773_v4 = vpop.f32.mrb[41].mxu1  ;;  %v5744_v1 = vpack.c.bf16 %v4195_v63, %v4193_v62  ;;  %v4218_v63 = vld [vmem:[%s7168_s2 + $0xe0] sm:$0xff] }
 0x139   :  { %v774_v5 = vadd.f32 %v773_v4, %v5652_v21  ;;  %v4194_v4 = vld [vmem:[%s7164_s1 + $0xb0] sm:$0xff] }
 0x13a   :  { %942 = vst [vmem:[#allocation2 + $0x3e0] sm:$0xff] %v772_v2  ;;  %7211 = vst [vmem:[#allocation8_spill] sm:$0xff] %v5744_v1  ;;  %v4192_v2 = vld [vmem:[%s7164_s1 + $0xa0] sm:$0xff] }
 0x13b   :  { %943 = vst [vmem:[#allocation2 + $0x3e8] sm:$0xff] %v774_v5  ;;  %v777_v6 = vpop.f32.mrb[42].mxu1  ;;  %v4197_v5 = vld [vmem:[%s7164_s1 + $0xc8] sm:$0xff] }
 0x13c   :  { %v778_v7 = vadd.f32 %v777_v6, %v5649_v20  ;;  %v779_v8 = vpop.f32.mrb[43].mxu1  ;;  %v4199_v6 = vld [vmem:[%s7164_s1 + $0xd8] sm:$0xff] }
 0x13d   :  { %v780_v9 = vadd.f32 %v779_v8, %v5652_v21  ;;  %v5763_v8 = vpack.c.bf16 %v4199_v6, %v4197_v5 }
 0x13e   :  { %944 = vst [vmem:[#allocation2 + $0x3f0] sm:$0xff] %v778_v7  ;;  %v5760_v7 = vpack.c.bf16 %v4194_v4, %v4192_v2  ;;  %v4220_v2 = vld [vmem:[%s7168_s2 + $0xf0] sm:$0xff] }
 0x13f   :  { %945 = vst [vmem:[#allocation2 + $0x3f8] sm:$0xff] %v780_v9  ;;  %v783_v10 = vpop.f32.mrb[44].mxu1  ;;  %7213 = vst [vmem:[#allocation10_spill] sm:$0xff] %v5763_v8  ;;  %v4196_v9 = vld [vmem:[%s7164_s1 + $0xc0] sm:$0xff]  ;;  %v5873_v4 = vpack.c.bf16 %v4220_v2, %v4218_v63  ;;  %v57_v63 = vld [vmem:[%s7169_s0 + $0x108] sm:$0xff] }
 0x140   :  { %v784_v11 = vadd.f32 %v783_v10, %v5649_v20  ;;  %v785_v12 = vpop.f32.mrb[45].mxu1  ;;  %7212 = vst [vmem:[#allocation9_spill] sm:$0xff] %v5760_v7  ;;  %v4198_v10 = vld [vmem:[%s7164_s1 + $0xd0] sm:$0xff] }
 0x141   :  { %v786_v13 = vadd.f32 %v785_v12, %v5652_v21  ;;  %v4203_v12 = vld [vmem:[%s7164_s1 + $0xf8] sm:$0xff]  ;;  %7224 = vst [vmem:[#allocation21_spill] sm:$0xff] %v5873_v4 }
 0x142   :  { %946 = vst [vmem:[#allocation2 + $0x400] sm:$0xff] %v784_v11  ;;  %v4201_v11 = vld [vmem:[%s7164_s1 + $0xe8] sm:$0xff] }
 0x143   :  { %947 = vst [vmem:[#allocation2 + $0x408] sm:$0xff] %v786_v13  ;;  %v789_v14 = vpop.f32.mrb[46].mxu1  ;;  %v5778_v13 = vpack.c.bf16 %v4198_v10, %v4196_v9  ;;  %v32_v9 = vld [vmem:[%s7169_s0 + $0x40] sm:$0xff]  ;;  %v33_v10 = vld [vmem:[%s7169_s0 + $0x48] sm:$0xff] }
 0x144   :  { %v790_v15 = vadd.f32 %v789_v14, %v5649_v20  ;;  %v791_v16 = vpop.f32.mrb[47].mxu1  ;;  %v5781_v14 = vpack.c.bf16 %v4203_v12, %v4201_v11  ;;  %v34_v11 = vld [vmem:[%s7169_s0 + $0x50] sm:$0xff]  ;;  %v35_v12 = vld [vmem:[%s7169_s0 + $0x58] sm:$0xff] }
 0x145   :  { %v792_v18 = vadd.f32 %v791_v16, %v5652_v21  ;;  %7214 = vst [vmem:[#allocation11_spill] sm:$0xff] %v5778_v13  ;;  %v4202_v16 = vld [vmem:[%s7164_s1 + $0xf0] sm:$0xff] }
 0x146   :  { %948 = vst [vmem:[#allocation2 + $0x410] sm:$0xff] %v790_v15  ;;  %7215 = vst [vmem:[#allocation12_spill] sm:$0xff] %v5781_v14  ;;  %v4200_v15 = vld [vmem:[%s7164_s1 + $0xe0] sm:$0xff] }
 0x147   :  { %949 = vst [vmem:[#allocation2 + $0x418] sm:$0xff] %v792_v18  ;;  %v795_v22 = vpop.f32.mrb[48].mxu1  ;;  %v5790_v18 = vpack.c.bf16 %v4202_v16, %v4200_v15  ;;  %v36_v15 = vld [vmem:[%s7169_s0 + $0x60] sm:$0xff]  ;;  %v37_v16 = vld [vmem:[%s7169_s0 + $0x68] sm:$0xff] }
 0x148   :  { %v796_v23 = vadd.f32 %v795_v22, %v5649_v20  ;;  %v797_v24 = vpop.f32.mrb[49].mxu1 }
 0x149   :  { %v798_v25 = vadd.f32 %v797_v24, %v5652_v21  ;;  %7216 = vst [vmem:[#allocation13_spill] sm:$0xff] %v5790_v18  ;;  %v4209_v24 = vld [vmem:[%s7168_s2 + $0x98] sm:$0xff] }
 0x14a   :  { %950 = vst [vmem:[#allocation2 + $0x420] sm:$0xff] %v796_v23  ;;  %v4207_v23 = vld [vmem:[%s7168_s2 + $0x88] sm:$0xff] }
 0x14b   :  { %951 = vst [vmem:[#allocation2 + $0x428] sm:$0xff] %v798_v25  ;;  %v801_v26 = vpop.f32.mrb[50].mxu1 }
 0x14c   :  { %v802_v29 = vadd.f32 %v801_v26, %v5649_v20  ;;  %v803_v30 = vpop.f32.mrb[51].mxu1  ;;  %v5800_v26 = vpack.c.bf16 %v4209_v24, %v4207_v23  ;;  %v39_v23 = vld [vmem:[%s7169_s0 + $0x78] sm:$0xff]  ;;  %v40_v24 = vld [vmem:[%s7169_s0 + $0x80] sm:$0xff] }
 0x14d   :  { %v804_v32 = vadd.f32 %v803_v30, %v5652_v21 }
 0x14e   :  { %952 = vst [vmem:[#allocation2 + $0x430] sm:$0xff] %v802_v29  ;;  %7217 = vst [vmem:[#allocation14_spill] sm:$0xff] %v5800_v26 }
 0x14f   :  { %953 = vst [vmem:[#allocation2 + $0x438] sm:$0xff] %v804_v32  ;;  %v807_v35 = vpop.f32.mrb[52].mxu1  ;;  %v25_v32 = vld [vmem:[%s7169_s0 + $0x8] sm:$0xff] }
 0x150   :  { %v808_v36 = vadd.f32 %v807_v35, %v5649_v20  ;;  %v809_v37 = vpop.f32.mrb[53].mxu1  ;;  %4117 = vmatmul.mubr.msk.f32.gmra.mrb[2].mxu0 %vm122_vm0, %v25_v32  ;;  %v43_v32 = vld [vmem:[%s7169_s0 + $0x98] sm:$0xff] }
 0x151   :  { %v810_v38 = vadd.f32 %v809_v37, %v5652_v21  ;;  %409 = vmatprep.mubr.f32.mxu0 %v7171_v3 }
 0x152   :  { %954 = vst [vmem:[#allocation2 + $0x440] sm:$0xff] %v808_v36 }
 0x153   :  { %955 = vst [vmem:[#allocation2 + $0x448] sm:$0xff] %v810_v38  ;;  %v813_v39 = vpop.f32.mrb[54].mxu1  ;;  %v4206_v38 = vld [vmem:[%s7168_s2 + $0x80] sm:$0xff] }
 0x154   :  { %v814_v40 = vadd.f32 %v813_v39, %v5649_v20  ;;  %v815_v43 = vpop.f32.mrb[55].mxu1  ;;  %v4208_v39 = vld [vmem:[%s7168_s2 + $0x90] sm:$0xff] }
 0x155   :  { %v816_v44 = vadd.f32 %v815_v43, %v5652_v21  ;;  %v4213_v43 = vld [vmem:[%s7168_s2 + $0xb8] sm:$0xff] }
 0x156   :  { %956 = vst [vmem:[#allocation2 + $0x450] sm:$0xff] %v814_v40  ;;  %v4211_v40 = vld [vmem:[%s7168_s2 + $0xa8] sm:$0xff] }
 0x157   :  { %957 = vst [vmem:[#allocation2 + $0x458] sm:$0xff] %v816_v44  ;;  %v1045_v45 = vpop.f32.mrb[56].mxu1 }
 0x158   :  { %v1047_v46 = vpop.f32.mrb[57].mxu1  ;;  %v1050_v51 = vadd.f32 %v1045_v45, %v5657_v28  ;;  %v4188_v28 = vld [vmem:[%s7164_s1 + $0x80] sm:$0xff] }
 0x159   :  { %v1051_v47 = vadd.f32 %v1047_v46, %v5660_v31  ;;  %v4189_v31 = vld [vmem:[%s7164_s1 + $0x88] sm:$0xff]  ;;  %v5742_v0 = vpack.c.bf16 %v4190_v61, %v4188_v28  ;;  %v5824_v46 = vpack.c.bf16 %v4208_v39, %v4206_v38  ;;  %v4221_v28 = vld [vmem:[%s7168_s2 + $0xf8] sm:$0xff]  ;;  %v48_v39 = vld [vmem:[%s7169_s0 + $0xc0] sm:$0xff] }
 0x15a   :  { %v4186_v52 = vmul.f32 -1.442695, %v1050_v51  ;;  %v5731_v60 = vpack.c.bf16 %v4191_v59, %v4189_v31  ;;  %v4210_v51 = vld [vmem:[%s7168_s2 + $0xa0] sm:$0xff]  ;;  %v4216_v31 = vld [vmem:[%s7168_s2 + $0xd0] sm:$0xff]  ;;  %v4219_v59 = vld [vmem:[%s7168_s2 + $0xe8] sm:$0xff] }
 0x15b   :  { %5046 = vtanh.f32 %v1051_v47  ;;  %7210 = vst [vmem:[#allocation7_spill] sm:$0xff] %v5742_v0  ;;  %v4187_v35 = vmul.f32 -1.442695, %v1051_v47  ;;  %7218 = vst [vmem:[#allocation15_spill] sm:$0xff] %v5824_v46  ;;  %v5864_v62 = vpack.c.bf16 %v4221_v28, %v4219_v59  ;;  %v47_v38 = vld [vmem:[%s7169_s0 + $0xb8] sm:$0xff]  ;;  %v56_v28 = vld [vmem:[%s7169_s0 + $0x100] sm:$0xff] }
 0x15c   :  { %5048 = vpow2.f32 %v4186_v52  ;;  %7209 = vst [vmem:[#allocation6_spill] sm:$0xff] %v5731_v60  ;;  %4459 = vmatprep.subr.bf16.mxu1 %v5731_v60  ;;  %v4212_v52 = vld [vmem:[%s7168_s2 + $0xb0] sm:$0xff]  ;;  %v55_v59 = vld [vmem:[%s7169_s0 + $0xf8] sm:$0xff] }
 0x15d   :  { %4461 = vmatpush1.bf16.msra.mxu1 %v5742_v0  ;;  %7223 = vst [vmem:[#allocation20_spill] sm:$0xff] %v5864_v62 }
 0x15e   :  { %4463 = vmatprep.subr.bf16.mxu1 %v5744_v1 }
 0x161   :  { %4465 = vmatpush1.bf16.msra.mxu1 %v5760_v7 }
 0x162   :  { %4467 = vmatprep.subr.bf16.mxu1 %v5763_v8 }
 0x165   :  { %v5047_v50 = vpop.eup %5046  ;;  %4469 = vmatpush1.bf16.msra.mxu1 %v5778_v13 }
 0x166   :  { %1067 = vrot.lane.b32.xlu0 %v5047_v50, %s5331_s22  ;;  %v5049_v54 = vpop.eup %5048  ;;  %4471 = vmatprep.subr.bf16.mxu1 %v5781_v14  ;;  %v5826_v50 = vpack.c.bf16 %v4213_v43, %v4211_v40  ;;  %v49_v40 = vld [vmem:[%s7169_s0 + $0xc8] sm:$0xff]  ;;  %v50_v43 = vld [vmem:[%s7169_s0 + $0xd0] sm:$0xff] }
 0x167   :  { %v1058_v55 = vadd.f32 1.0, %v5049_v54  ;;  %v4215_v54 = vld [vmem:[%s7168_s2 + $0xc8] sm:$0xff] }
 0x168   :  { %7219 = vst [vmem:[#allocation16_spill] sm:$0xff] %v5826_v50 }
 0x169   :  { %5050 = vrcp.f32 %v1058_v55  ;;  %4473 = vmatpush1.bf16.msra.mxu1 %v5790_v18  ;;  %v4217_v55 = vld [vmem:[%s7168_s2 + $0xd8] sm:$0xff] }
 0x16a   :  { %4475 = vmatprep.subr.bf16.mxu1 %v5800_v26 }
 0x173   :  { %v5051_v56 = vpop.eup %5050 }
 0x174   :  { %v1065_v22 = vmul.f32 0.0, %v5051_v56 }
 0x1d8   :  { %v1068_v57 = vpop.permute.xlu0 %1067 }
 0x1d9   :  { %v1070_v58 = vmul.f32 %v5051_v56, %v1068_v57  ;;  %v5842_v56 = vpack.c.bf16 %v4212_v52, %v4210_v51  ;;  %v5846_v57 = vpack.c.bf16 %v4217_v55, %v4215_v54  ;;  %v53_v51 = vld [vmem:[%s7169_s0 + $0xe8] sm:$0xff] }
 0x1db   :  { %1072 = vrot.lane.b32.xlu0 %v1070_v58, %s5331_s22  ;;  %7220 = vst [vmem:[#allocation17_spill] sm:$0xff] %v5842_v56  ;;  %7221 = vst [vmem:[#allocation18_spill] sm:$0xff] %v5846_v57  ;;  %v4214_v58 = vld [vmem:[%s7168_s2 + $0xc0] sm:$0xff] }
 0x1dc   :  { %v5861_v61 = vpack.c.bf16 %v4216_v31, %v4214_v58  ;;  %v54_v31 = vld [vmem:[%s7169_s0 + $0xf0] sm:$0xff] }
 0x1de   :  { %7222 = vst [vmem:[#allocation19_spill] sm:$0xff] %v5861_v61 }
 0x24d   :  { %v1073_v25 = vpop.permute.xlu0 %1072 }
 0x24e   :  { %v5802_v29 = vadd.f32 %v1073_v25, %v1065_v22  ;;  %v38_v22 = vld [vmem:[%s7169_s0 + $0x70] sm:$0xff]  ;;  %v41_v25 = vld [vmem:[%s7169_s0 + $0x88] sm:$0xff] }
 0x250   :  { %5052 = vtanh.f32 %v5802_v29 }
 0x251   :  { %5054 = vpow2.f32 %v4187_v35  ;;  %v44_v35 = vld [vmem:[%s7169_s0 + $0xa0] sm:$0xff] }
 0x25a   :  { %v5053_v30 = vpop.eup %5052 }
 0x25b   :  { %1078 = vrot.lane.b32.xlu1 %v5053_v30, %s5331_s22  ;;  %v5055_v36 = vpop.eup %5054  ;;  %v42_v30 = vld [vmem:[%s7169_s0 + $0x90] sm:$0xff] }
 0x25c   :  { %v1059_v37 = vadd.f32 1.0, %v5055_v36  ;;  %v45_v36 = vld [vmem:[%s7169_s0 + $0xa8] sm:$0xff] }
 0x25e   :  { %5056 = vrcp.f32 %v1059_v37  ;;  %v46_v37 = vld [vmem:[%s7169_s0 + $0xb0] sm:$0xff] }
 0x268   :  { %v5057_v44 = vpop.eup %5056 }
 0x2cd   :  { %v1079_v45 = vpop.permute.xlu1 %1078 }
 0x2ce   :  { %v1081_v47 = vmul.f32 %v5057_v44, %v1079_v45  ;;  %v51_v44 = vld [vmem:[%s7169_s0 + $0xd8] sm:$0xff]  ;;  %v52_v45 = vld [vmem:[%s7169_s0 + $0xe0] sm:$0xff] }
 0x2d0   :  { %4205 = vmatmul.mubr.msk.f32.vlgmr.msra.gmra.mrb[58].mxu1 %vm122_vm0, %v1081_v47 }
 0x2d1   :  { %4477 = vmatpush1.bf16.msra.mxu1 %v5824_v46  ;;  %1267 = vmatprep.mubr.f32.mxu1 %v7171_v3 }
 0x2d2   :  { %4479 = vmatprep.subr.bf16.mxu1 %v5826_v50 }
 0x2d5   :  { %4481 = vmatpush1.bf16.msra.mxu1 %v5842_v56 }
 0x2d6   :  { %4483 = vmatprep.subr.bf16.mxu1 %v5846_v57 }
 0x2d9   :  { %4485 = vmatpush1.bf16.msra.mxu1 %v5861_v61 }
 0x2da   :  { %4487 = vmatprep.subr.bf16.mxu1 %v5864_v62 }
 0x2dd   :  { %4489 = vmatpush1.bf16.msra.mxu1 %v5873_v4 }
 0x2de   :  { %4491 = vmatprep.subr.bf16.mxu1 %v5428_v27  ;;  %v405_v27 = vpop.f32.mrb[2].mxu0 }
 0x2df   :  { %v407_v5 = vpop.f32.mrb[3].mxu0 }
 0x2e0   :  { %1268 = vmatmul.mubr.f32.vlgmr.msra.gmra.mrb[58].mxu1 %v7171_v3  ;;  %v5892_v6 = vadd.f32 %v407_v5, %v5652_v21 }
 0x2e1   :  { %4493 = vmatpush1.bf16.msra.mxu1 %v5445_v33  ;;  %1372 = vmatprep.mubr.f32.mxu1 %v7171_v3  ;;  %v5889_v33 = vadd.f32 %v405_v27, %v5649_v20 }
 0x2e2   :  { %4495 = vmatprep.subr.bf16.mxu1 %v5448_v34  ;;  %821 = vst [vmem:[#allocation2 + $0x18] sm:$0xff] %v5892_v6  ;;  %v26_v34 = vld [vmem:[%s7169_s0 + $0x10] sm:$0xff] }
 0x2e3   :  { %820 = vst [vmem:[#allocation2 + $0x10] sm:$0xff] %v5889_v33  ;;  %4118 = vmatmul.mubr.msk.f32.gmra.mrb[4].mxu0 %vm122_vm0, %v26_v34 }
 0x2e4   :  { %415 = vmatprep.mubr.f32.mxu0 %v7171_v3 }
 0x2e5   :  { %4497 = vmatpush1.bf16.msra.mxu1 %v5471_v41  ;;  %v27_v41 = vld [vmem:[%s7169_s0 + $0x18] sm:$0xff] }
 0x2e6   :  { %4499 = vmatprep.subr.bf16.mxu1 %v5474_v42  ;;  %v28_v42 = vld [vmem:[%s7169_s0 + $0x20] sm:$0xff] }
 0x2e7   :  { %4119 = vmatmul.mubr.msk.f32.gmra.mrb[6].mxu0 %vm122_vm0, %v27_v41  ;;  %v58_v41 = vld [vmem:[%s7169_s0 + $0x110] sm:$0xff] }
 0x2e8   :  { %421 = vmatprep.mubr.f32.mxu0 %v7171_v3 }
 0x2e9   :  { %4501 = vmatpush1.bf16.msra.mxu1 %v5496_v48  ;;  %v29_v48 = vld [vmem:[%s7169_s0 + $0x28] sm:$0xff] }
 0x2ea   :  { %4503 = vmatprep.subr.bf16.mxu1 %v5499_v49  ;;  %v30_v49 = vld [vmem:[%s7169_s0 + $0x30] sm:$0xff] }
 0x2eb   :  { %4120 = vmatmul.mubr.msk.f32.gmra.mrb[8].mxu0 %vm122_vm0, %v28_v42  ;;  %v59_v42 = vld [vmem:[%s7169_s0 + $0x118] sm:$0xff] }
 0x2ec   :  { %427 = vmatprep.mubr.f32.mxu0 %v7171_v3 }
 0x2ed   :  { %4505 = vmatpush1.bf16.msra.mxu1 %v5513_v53  ;;  %v31_v53 = vld [vmem:[%s7169_s0 + $0x38] sm:$0xff] }
 0x2ef   :  { %4121 = vmatmul.mubr.msk.f32.gmra.mrb[10].mxu0 %vm122_vm0, %v29_v48  ;;  %v61_v48 = vld [vmem:[%s7169_s0 + $0x128] sm:$0xff] }
 0x2f0   :  { %4224 = vmatmul.mubr.msk.f32.vlgmr.msra.gmra.mrb[60].mxu1 %vm122_vm0, %v1081_v47  ;;  %433 = vmatprep.mubr.f32.mxu0 %v7171_v3  ;;  %v4204_v47 = vld [vmem:[%s7170_s3 + $0x2] sm:$0x3] }
 0x2f1   :  { %v6038_v52 = vrot.slane %v4204_v47, %v5646_v19 }
 0x2f3   :  { %4122 = vmatmul.mubr.msk.f32.gmra.mrb[12].mxu0 %vm122_vm0, %v30_v49  ;;  %7225 = vst [vmem:[#allocation22_spill] sm:$0xff] %v6038_v52 }
 0x2f4   :  { %439 = vmatprep.mubr.f32.mxu0 %v7171_v3 }
 0x2f7   :  { %4123 = vmatmul.mubr.msk.f32.gmra.mrb[14].mxu0 %vm122_vm0, %v31_v53  ;;  %v62_v53 = vld [vmem:[%s7169_s0 + $0x130] sm:$0xff] }
 0x2f8   :  { %445 = vmatprep.mubr.f32.mxu0 %v7171_v3 }
 0x2fb   :  { %4124 = vmatmul.mubr.msk.f32.gmra.mrb[16].mxu0 %vm122_vm0, %v32_v9  ;;  %v63_v9 = vld [vmem:[%s7169_s0 + $0x138] sm:$0xff] }
 0x2fc   :  { %451 = vmatprep.mubr.f32.mxu0 %v7171_v3 }
 0x2ff   :  { %4125 = vmatmul.mubr.msk.f32.gmra.mrb[18].mxu0 %vm122_vm0, %v33_v10  ;;  %v64_v10 = vld [vmem:[%s7169_s0 + $0x140] sm:$0xff] }
 0x300   :  { %457 = vmatprep.mubr.f32.mxu0 %v7171_v3 }
 0x303   :  { %4126 = vmatmul.mubr.msk.f32.gmra.mrb[20].mxu0 %vm122_vm0, %v34_v11  ;;  %v65_v11 = vld [vmem:[%s7169_s0 + $0x148] sm:$0xff] }
 0x304   :  { %463 = vmatprep.mubr.f32.mxu0 %v7171_v3 }
 0x307   :  { %4127 = vmatmul.mubr.msk.f32.gmra.mrb[22].mxu0 %vm122_vm0, %v35_v12  ;;  %v6112_v12 = vrot.slane %v4204_v47, %v5641_v17 }
 0x308   :  { %469 = vmatprep.mubr.f32.mxu0 %v7171_v3 }
 0x309   :  { %7226 = vst [vmem:[#allocation23_spill] sm:$0xff] %v6112_v12 }
 0x30b   :  { %4128 = vmatmul.mubr.msk.f32.gmra.mrb[24].mxu0 %vm122_vm0, %v36_v15 }
 0x30c   :  { %475 = vmatprep.mubr.f32.mxu0 %v7171_v3 }
 0x30f   :  { %4129 = vmatmul.mubr.msk.f32.gmra.mrb[26].mxu0 %vm122_vm0, %v37_v16 }
 0x310   :  { %481 = vmatprep.mubr.f32.mxu0 %v7171_v3 }
 0x313   :  { %4130 = vmatmul.mubr.msk.f32.gmra.mrb[28].mxu0 %vm122_vm0, %v38_v22 }
 0x314   :  { %487 = vmatprep.mubr.f32.mxu0 %v7171_v3 }
 0x317   :  { %4131 = vmatmul.mubr.msk.f32.gmra.mrb[30].mxu0 %vm122_vm0, %v39_v23 }
 0x318   :  { %493 = vmatprep.mubr.f32.mxu0 %v7171_v3 }
 0x31b   :  { %4132 = vmatmul.mubr.msk.f32.gmra.mrb[32].mxu0 %vm122_vm0, %v40_v24 }
 0x31c   :  { %499 = vmatprep.mubr.f32.mxu0 %v7171_v3 }
 0x31f   :  { %4133 = vmatmul.mubr.msk.f32.gmra.mrb[34].mxu0 %vm122_vm0, %v41_v25 }
 0x320   :  { %505 = vmatprep.mubr.f32.mxu0 %v7171_v3 }
 0x323   :  { %4134 = vmatmul.mubr.msk.f32.gmra.mrb[36].mxu0 %vm122_vm0, %v42_v30 }
 0x324   :  { %511 = vmatprep.mubr.f32.mxu0 %v7171_v3 }
 0x327   :  { %4135 = vmatmul.mubr.msk.f32.gmra.mrb[38].mxu0 %vm122_vm0, %v43_v32 }
 0x328   :  { %517 = vmatprep.mubr.f32.mxu0 %v7171_v3 }
 0x32b   :  { %4136 = vmatmul.mubr.msk.f32.gmra.mrb[40].mxu0 %vm122_vm0, %v44_v35 }
 0x32c   :  { %523 = vmatprep.mubr.f32.mxu0 %v7171_v3 }
 0x32f   :  { %4137 = vmatmul.mubr.msk.f32.gmra.mrb[42].mxu0 %vm122_vm0, %v45_v36 }
 0x330   :  { %529 = vmatprep.mubr.f32.mxu0 %v7171_v3 }
 0x333   :  { %4138 = vmatmul.mubr.msk.f32.gmra.mrb[44].mxu0 %vm122_vm0, %v46_v37 }
 0x334   :  { %535 = vmatprep.mubr.f32.mxu0 %v7171_v3 }
 0x337   :  { %4139 = vmatmul.mubr.msk.f32.gmra.mrb[46].mxu0 %vm122_vm0, %v47_v38 }
 0x338   :  { %541 = vmatprep.mubr.f32.mxu0 %v7171_v3 }
 0x33b   :  { %4140 = vmatmul.mubr.msk.f32.gmra.mrb[48].mxu0 %vm122_vm0, %v48_v39 }
 0x33c   :  { %547 = vmatprep.mubr.f32.mxu0 %v7171_v3 }
 0x33f   :  { %4141 = vmatmul.mubr.msk.f32.gmra.mrb[50].mxu0 %vm122_vm0, %v49_v40 }
 0x340   :  { %553 = vmatprep.mubr.f32.mxu0 %v7171_v3 }
 0x343   :  { %4142 = vmatmul.mubr.msk.f32.gmra.mrb[52].mxu0 %vm122_vm0, %v50_v43 }
 0x344   :  { %559 = vmatprep.mubr.f32.mxu0 %v7171_v3 }
 0x347   :  { %4143 = vmatmul.mubr.msk.f32.gmra.mrb[54].mxu0 %vm122_vm0, %v51_v44 }
 0x348   :  { %565 = vmatprep.mubr.f32.mxu0 %v7171_v3 }
 0x34b   :  { %4144 = vmatmul.mubr.msk.f32.gmra.mrb[56].mxu0 %vm122_vm0, %v52_v45 }
 0x34c   :  { %571 = vmatprep.mubr.f32.mxu0 %v7171_v3 }
 0x34f   :  { %4145 = vmatmul.mubr.msk.f32.gmra.mrb[58].mxu0 %vm122_vm0, %v53_v51 }
 0x350   :  { %577 = vmatprep.mubr.f32.mxu0 %v7171_v3 }
 0x353   :  { %4146 = vmatmul.mubr.msk.f32.gmra.mrb[60].mxu0 %vm122_vm0, %v54_v31 }
 0x354   :  { %583 = vmatprep.mubr.f32.mxu0 %v7171_v3 }
 0x357   :  { %4147 = vmatmul.mubr.msk.f32.gmra.mrb[62].mxu0 %vm122_vm0, %v55_v59 }
 0x358   :  { %589 = vmatprep.mubr.f32.mxu0 %v7171_v3 }
 0x35b   :  { %4148 = vmatmul.mubr.msk.f32.gmra.mrb[64].mxu0 %vm122_vm0, %v56_v28 }
 0x35c   :  { %595 = vmatprep.mubr.f32.mxu0 %v7171_v3 }
 0x35f   :  { %4149 = vmatmul.mubr.msk.f32.gmra.mrb[66].mxu0 %vm122_vm0, %v57_v63 }
 0x360   :  { %601 = vmatprep.mubr.f32.mxu0 %v7171_v3 }
 0x363   :  { %4150 = vmatmul.mubr.msk.f32.gmra.mrb[68].mxu0 %vm122_vm0, %v58_v41 }
 0x364   :  { %607 = vmatprep.mubr.f32.mxu0 %v7171_v3 }
 0x367   :  { %4151 = vmatmul.mubr.msk.f32.gmra.mrb[70].mxu0 %vm122_vm0, %v59_v42 }
 0x368   :  { %613 = vmatprep.mubr.f32.mxu0 %v7171_v3 }
 0x3b3   :  { %v1269_v54 = vpop.f32.mrb[58].mxu1 }
 0x3b4   :  { %v1271_v55 = vpop.f32.mrb[59].mxu1  ;;  %v4930_v15 = vadd.f32 %v1269_v54, %v6112_v12 }
 0x3b5   :  { %v6043_v58 = vadd.f32 %v1271_v55, %v6038_v52 }
 0x3b6   :  { %v4222_v16 = vmul.f32 -1.442695, %v4930_v15  ;;  %v411_v22 = vpop.f32.mrb[4].mxu0 }
 0x3b7   :  { %5058 = vtanh.f32 %v6043_v58  ;;  %v412_v23 = vadd.f32 %v411_v22, %v5649_v20  ;;  %v413_v24 = vpop.f32.mrb[5].mxu0 }
 0x3b8   :  { %v414_v25 = vadd.f32 %v413_v24, %v5652_v21 }
 0x3b9   :  { %822 = vst [vmem:[#allocation2 + $0x20] sm:$0xff] %v412_v23 }
 0x3ba   :  { %823 = vst [vmem:[#allocation2 + $0x28] sm:$0xff] %v414_v25  ;;  %v417_v30 = vpop.f32.mrb[6].mxu0 }
 0x3bb   :  { %v418_v32 = vadd.f32 %v417_v30, %v5649_v20  ;;  %v419_v35 = vpop.f32.mrb[7].mxu0 }
 0x3bc   :  { %v420_v36 = vadd.f32 %v419_v35, %v5652_v21 }
 0x3bd   :  { %824 = vst [vmem:[#allocation2 + $0x30] sm:$0xff] %v418_v32 }
 0x3be   :  { %825 = vst [vmem:[#allocation2 + $0x38] sm:$0xff] %v420_v36  ;;  %v423_v38 = vpop.f32.mrb[8].mxu0 }
 0x3bf   :  { %v424_v39 = vadd.f32 %v423_v38, %v5649_v20  ;;  %v425_v40 = vpop.f32.mrb[9].mxu0 }
 0x3c0   :  { %v426_v44 = vadd.f32 %v425_v40, %v5652_v21 }
 0x3c1   :  { %v5059_v2 = vpop.eup %5058  ;;  %826 = vst [vmem:[#allocation2 + $0x40] sm:$0xff] %v424_v39 }
 0x3c2   :  { %1291 = vrot.lane.b32.xlu1 %v5059_v2, %s5331_s22  ;;  %827 = vst [vmem:[#allocation2 + $0x48] sm:$0xff] %v426_v44  ;;  %v429_v47 = vpop.f32.mrb[10].mxu0 }
 0x3c3   :  { %v1374_v27 = vpop.f32.mrb[60].mxu1  ;;  %v430_v54 = vadd.f32 %v429_v47, %v5649_v20  ;;  %v431_v55 = vpop.f32.mrb[11].mxu0 }
 0x3c4   :  { %v1376_v5 = vpop.f32.mrb[61].mxu1  ;;  %v1379_v37 = vadd.f32 %v1374_v27, %v5889_v33  ;;  %v432_v31 = vadd.f32 %v431_v55, %v5652_v21 }
 0x3c5   :  { %v6068_v34 = vadd.f32 %v1376_v5, %v5892_v6  ;;  %v60_v6 = vld [vmem:[%s7169_s0 + $0x120] sm:$0xff]  ;;  %828 = vst [vmem:[#allocation2 + $0x50] sm:$0xff] %v430_v54  ;;  %s6225_s0 = smov 0  }
 0x3c6   :  { %4152 = vmatmul.mubr.msk.f32.gmra.mrb[72].mxu0 %vm122_vm0, %v60_v6  ;;  %v4225_v45 = vmul.f32 -1.442695, %v1379_v37  ;;  %829 = vst [vmem:[#allocation2 + $0x58] sm:$0xff] %v432_v31  ;;  %v435_v33 = vpop.f32.mrb[12].mxu0 }
 0x3c7   :  { %5060 = vtanh.f32 %v6068_v34  ;;  %619 = vmatprep.mubr.f32.mxu0 %v7171_v3  ;;  %v437_v59 = vpop.f32.mrb[13].mxu0  ;;  %v436_v28 = vadd.f32 %v435_v33, %v5649_v20 }
 0x3c8   :  { %5062 = vpow2.f32 %v4222_v16  ;;  %v438_v63 = vadd.f32 %v437_v59, %v5652_v21 }
 0x3c9   :  { %5064 = vpow2.f32 %v4225_v45  ;;  %830 = vst [vmem:[#allocation2 + $0x60] sm:$0xff] %v436_v28 }
 0x3ca   :  { %4153 = vmatmul.mubr.msk.f32.gmra.mrb[74].mxu0 %vm122_vm0, %v61_v48  ;;  %831 = vst [vmem:[#allocation2 + $0x68] sm:$0xff] %v438_v63  ;;  %v441_v2 = vpop.f32.mrb[14].mxu0 }
 0x3cb   :  { %625 = vmatprep.mubr.f32.mxu0 %v7171_v3  ;;  %v442_v27 = vadd.f32 %v441_v2, %v5649_v20  ;;  %v443_v5 = vpop.f32.mrb[15].mxu0 }
 0x3cc   :  { %v444_v41 = vadd.f32 %v443_v5, %v5652_v21 }
 0x3cd   :  { %832 = vst [vmem:[#allocation2 + $0x70] sm:$0xff] %v442_v27 }
 0x3ce   :  { %4154 = vmatmul.mubr.msk.f32.gmra.mrb[76].mxu0 %vm122_vm0, %v62_v53  ;;  %833 = vst [vmem:[#allocation2 + $0x78] sm:$0xff] %v444_v41  ;;  %v447_v42 = vpop.f32.mrb[16].mxu0 }
 0x3cf   :  { %631 = vmatprep.mubr.f32.mxu0 %v7171_v3  ;;  %v448_v6 = vadd.f32 %v447_v42, %v5649_v20  ;;  %v449_v48 = vpop.f32.mrb[17].mxu0 }
 0x3d0   :  { %v450_v53 = vadd.f32 %v449_v48, %v5652_v21 }
 0x3d1   :  { %v5061_v49 = vpop.eup %5060  ;;  %834 = vst [vmem:[#allocation2 + $0x80] sm:$0xff] %v448_v6 }
 0x3d2   :  { %1396 = vrot.lane.b32.xlu0 %v5061_v49, %s5331_s22  ;;  %4155 = vmatmul.mubr.msk.f32.gmra.mrb[78].mxu0 %vm122_vm0, %v63_v9  ;;  %v5063_v43 = vpop.eup %5062  ;;  %835 = vst [vmem:[#allocation2 + $0x88] sm:$0xff] %v450_v53  ;;  %v453_v15 = vpop.f32.mrb[18].mxu0 }
 0x3d3   :  { %637 = vmatprep.mubr.f32.mxu0 %v7171_v3  ;;  %v1282_v51 = vadd.f32 1.0, %v5063_v43  ;;  %v5065_v49 = vpop.eup %5064  ;;  %v454_v22 = vadd.f32 %v453_v15, %v5649_v20  ;;  %v455_v23 = vpop.f32.mrb[19].mxu0 }
 0x3d4   :  { %v1387_v16 = vadd.f32 1.0, %v5065_v49  ;;  %v456_v24 = vadd.f32 %v455_v23, %v5652_v21 }
 0x3d5   :  { %5066 = vrcp.f32 %v1282_v51  ;;  %836 = vst [vmem:[#allocation2 + $0x90] sm:$0xff] %v454_v22 }
 0x3d6   :  { %4156 = vmatmul.mubr.msk.f32.gmra.mrb[80].mxu0 %vm122_vm0, %v64_v10  ;;  %837 = vst [vmem:[#allocation2 + $0x98] sm:$0xff] %v456_v24  ;;  %v459_v25 = vpop.f32.mrb[20].mxu0  ;;  %5068 = vrcp.f32 %v1387_v16 }
 0x3d7   :  { %643 = vmatprep.mubr.f32.mxu0 %v7171_v3  ;;  %v461_v30 = vpop.f32.mrb[21].mxu0  ;;  %v460_v32 = vadd.f32 %v459_v25, %v5649_v20 }
 0x3d8   :  { %v462_v35 = vadd.f32 %v461_v30, %v5652_v21 }
 0x3d9   :  { %838 = vst [vmem:[#allocation2 + $0xa0] sm:$0xff] %v460_v32 }
 0x3da   :  { %4157 = vmatmul.mubr.msk.f32.gmra.mrb[82].mxu0 %vm122_vm0, %v65_v11  ;;  %839 = vst [vmem:[#allocation2 + $0xa8] sm:$0xff] %v462_v35  ;;  %v465_v36 = vpop.f32.mrb[22].mxu0 }
 0x3db   :  { %v466_v37 = vadd.f32 %v465_v36, %v5649_v20  ;;  %v467_v38 = vpop.f32.mrb[23].mxu0 }
 0x3dc   :  { %v468_v39 = vadd.f32 %v467_v38, %v5652_v21 }
 0x3dd   :  { %840 = vst [vmem:[#allocation2 + $0xb0] sm:$0xff] %v466_v37 }
 0x3de   :  { %841 = vst [vmem:[#allocation2 + $0xb8] sm:$0xff] %v468_v39  ;;  %v471_v40 = vpop.f32.mrb[24].mxu0 }
 0x3df   :  { %v6130_v9 = vpop.eup %5066  ;;  %v472_v43 = vadd.f32 %v471_v40, %v5649_v20  ;;  %v473_v44 = vpop.f32.mrb[25].mxu0 }
 0x3e0   :  { %v474_v45 = vadd.f32 %v473_v44, %v5652_v21  ;;  %v6142_v47 = vpop.eup %5068 }
 0x3e1   :  { %842 = vst [vmem:[#allocation2 + $0xc0] sm:$0xff] %v472_v43 }
 0x3e2   :  { %843 = vst [vmem:[#allocation2 + $0xc8] sm:$0xff] %v474_v45  ;;  %v477_v55 = vpop.f32.mrb[26].mxu0 }
 0x3e3   :  { %v478_v31 = vadd.f32 %v477_v55, %v5649_v20  ;;  %v479_v33 = vpop.f32.mrb[27].mxu0 }
 0x3e4   :  { %v480_v59 = vadd.f32 %v479_v33, %v5652_v21 }
 0x3e5   :  { %844 = vst [vmem:[#allocation2 + $0xd0] sm:$0xff] %v478_v31 }
 0x3e6   :  { %845 = vst [vmem:[#allocation2 + $0xd8] sm:$0xff] %v480_v59  ;;  %v483_v28 = vpop.f32.mrb[28].mxu0 }
 0x3e7   :  { %v484_v63 = vadd.f32 %v483_v28, %v5649_v20  ;;  %v485_v2 = vpop.f32.mrb[29].mxu0 }
 0x3e8   :  { %v486_v27 = vadd.f32 %v485_v2, %v5652_v21 }
 0x3e9   :  { %846 = vst [vmem:[#allocation2 + $0xe0] sm:$0xff] %v484_v63 }
 0x3ea   :  { %847 = vst [vmem:[#allocation2 + $0xe8] sm:$0xff] %v486_v27  ;;  %v489_v5 = vpop.f32.mrb[30].mxu0 }
 0x3eb   :  { %v490_v41 = vadd.f32 %v489_v5, %v5649_v20  ;;  %v491_v42 = vpop.f32.mrb[31].mxu0 }
 0x3ec   :  { %v492_v6 = vadd.f32 %v491_v42, %v5652_v21 }
 0x3ed   :  { %848 = vst [vmem:[#allocation2 + $0xf0] sm:$0xff] %v490_v41 }
 0x3ee   :  { %849 = vst [vmem:[#allocation2 + $0xf8] sm:$0xff] %v492_v6  ;;  %v495_v48 = vpop.f32.mrb[32].mxu0 }
 0x3ef   :  { %v496_v49 = vadd.f32 %v495_v48, %v5649_v20  ;;  %v497_v53 = vpop.f32.mrb[33].mxu0 }
 0x3f1   :  { %850 = vst [vmem:[#allocation2 + $0x100] sm:$0xff] %v496_v49 }
 0x434   :  { %v1292_v10 = vpop.permute.xlu1 %1291 }
 0x435   :  { %v1294_v11 = vmul.f32 %v6130_v9, %v1292_v10  ;;  %v498_v10 = vadd.f32 %v497_v53, %v5652_v21 }
 0x437   :  { %1296 = vrot.lane.b32.xlu1 %v1294_v11, %s5331_s22  ;;  %851 = vst [vmem:[#allocation2 + $0x108] sm:$0xff] %v498_v10  ;;  %v501_v11 = vpop.f32.mrb[34].mxu0 }
 0x438   :  { %v502_v15 = vadd.f32 %v501_v11, %v5649_v20  ;;  %v503_v16 = vpop.f32.mrb[35].mxu0 }
 0x439   :  { %v504_v22 = vadd.f32 %v503_v16, %v5652_v21  ;;  %v507_v23 = vpop.f32.mrb[36].mxu0 }
 0x43a   :  { %852 = vst [vmem:[#allocation2 + $0x110] sm:$0xff] %v502_v15  ;;  %v508_v24 = vadd.f32 %v507_v23, %v5649_v20  ;;  %v509_v25 = vpop.f32.mrb[37].mxu0 }
 0x43b   :  { %853 = vst [vmem:[#allocation2 + $0x118] sm:$0xff] %v504_v22  ;;  %v510_v30 = vadd.f32 %v509_v25, %v5652_v21  ;;  %v513_v32 = vpop.f32.mrb[38].mxu0 }
 0x43c   :  { %854 = vst [vmem:[#allocation2 + $0x120] sm:$0xff] %v508_v24  ;;  %v514_v35 = vadd.f32 %v513_v32, %v5649_v20  ;;  %v515_v36 = vpop.f32.mrb[39].mxu0 }
 0x43d   :  { %855 = vst [vmem:[#allocation2 + $0x128] sm:$0xff] %v510_v30  ;;  %v516_v37 = vadd.f32 %v515_v36, %v5652_v21  ;;  %v519_v38 = vpop.f32.mrb[40].mxu0 }
 0x43e   :  { %856 = vst [vmem:[#allocation2 + $0x130] sm:$0xff] %v514_v35  ;;  %v520_v39 = vadd.f32 %v519_v38, %v5649_v20  ;;  %v521_v40 = vpop.f32.mrb[41].mxu0 }
 0x43f   :  { %857 = vst [vmem:[#allocation2 + $0x138] sm:$0xff] %v516_v37  ;;  %v522_v43 = vadd.f32 %v521_v40, %v5652_v21  ;;  %v525_v44 = vpop.f32.mrb[42].mxu0 }
 0x440   :  { %858 = vst [vmem:[#allocation2 + $0x140] sm:$0xff] %v520_v39  ;;  %v526_v45 = vadd.f32 %v525_v44, %v5649_v20 }
 0x441   :  { %859 = vst [vmem:[#allocation2 + $0x148] sm:$0xff] %v522_v43 }
 0x442   :  { %860 = vst [vmem:[#allocation2 + $0x150] sm:$0xff] %v526_v45 }
 0x444   :  { %v1397_v51 = vpop.permute.xlu0 %1396 }
 0x445   :  { %v1399_v54 = vmul.f32 %v6142_v47, %v1397_v51  ;;  %v527_v51 = vpop.f32.mrb[43].mxu0 }
 0x446   :  { %v531_v55 = vpop.f32.mrb[44].mxu0 }
 0x447   :  { %1401 = vrot.lane.b32.xlu0 %v1399_v54, %s5331_s22  ;;  %v528_v54 = vadd.f32 %v527_v51, %v5652_v21  ;;  %v532_v31 = vadd.f32 %v531_v55, %v5649_v20  ;;  %v533_v33 = vpop.f32.mrb[45].mxu0 }
 0x448   :  { %v534_v59 = vadd.f32 %v533_v33, %v5652_v21  ;;  %v537_v28 = vpop.f32.mrb[46].mxu0 }
 0x449   :  { %861 = vst [vmem:[#allocation2 + $0x158] sm:$0xff] %v528_v54  ;;  %862 = vst [vmem:[#allocation2 + $0x160] sm:$0xff] %v532_v31  ;;  %v538_v63 = vadd.f32 %v537_v28, %v5649_v20  ;;  %v539_v2 = vpop.f32.mrb[47].mxu0 }
 0x44a   :  { %863 = vst [vmem:[#allocation2 + $0x168] sm:$0xff] %v534_v59  ;;  %v540_v27 = vadd.f32 %v539_v2, %v5652_v21  ;;  %v543_v5 = vpop.f32.mrb[48].mxu0 }
 0x44b   :  { %864 = vst [vmem:[#allocation2 + $0x170] sm:$0xff] %v538_v63  ;;  %v544_v41 = vadd.f32 %v543_v5, %v5649_v20  ;;  %v545_v42 = vpop.f32.mrb[49].mxu0 }
 0x44c   :  { %865 = vst [vmem:[#allocation2 + $0x178] sm:$0xff] %v540_v27  ;;  %v546_v6 = vadd.f32 %v545_v42, %v5652_v21  ;;  %v549_v48 = vpop.f32.mrb[50].mxu0 }
 0x44d   :  { %866 = vst [vmem:[#allocation2 + $0x180] sm:$0xff] %v544_v41  ;;  %v550_v49 = vadd.f32 %v549_v48, %v5649_v20  ;;  %v551_v53 = vpop.f32.mrb[51].mxu0 }
 0x44e   :  { %867 = vst [vmem:[#allocation2 + $0x188] sm:$0xff] %v546_v6  ;;  %v552_v10 = vadd.f32 %v551_v53, %v5652_v21  ;;  %v555_v11 = vpop.f32.mrb[52].mxu0 }
 0x44f   :  { %868 = vst [vmem:[#allocation2 + $0x190] sm:$0xff] %v550_v49  ;;  %v556_v15 = vadd.f32 %v555_v11, %v5649_v20  ;;  %v557_v16 = vpop.f32.mrb[53].mxu0 }
 0x450   :  { %869 = vst [vmem:[#allocation2 + $0x198] sm:$0xff] %v552_v10  ;;  %v558_v22 = vadd.f32 %v557_v16, %v5652_v21  ;;  %v561_v23 = vpop.f32.mrb[54].mxu0 }
 0x451   :  { %870 = vst [vmem:[#allocation2 + $0x1a0] sm:$0xff] %v556_v15  ;;  %v562_v24 = vadd.f32 %v561_v23, %v5649_v20  ;;  %v563_v25 = vpop.f32.mrb[55].mxu0 }
 0x452   :  { %871 = vst [vmem:[#allocation2 + $0x1a8] sm:$0xff] %v558_v22  ;;  %v564_v30 = vadd.f32 %v563_v25, %v5652_v21  ;;  %v567_v32 = vpop.f32.mrb[56].mxu0 }
 0x453   :  { %872 = vst [vmem:[#allocation2 + $0x1b0] sm:$0xff] %v562_v24  ;;  %v568_v35 = vadd.f32 %v567_v32, %v5649_v20  ;;  %v569_v36 = vpop.f32.mrb[57].mxu0 }
 0x454   :  { %873 = vst [vmem:[#allocation2 + $0x1b8] sm:$0xff] %v564_v30  ;;  %v570_v37 = vadd.f32 %v569_v36, %v5652_v21  ;;  %v573_v38 = vpop.f32.mrb[58].mxu0 }
 0x455   :  { %874 = vst [vmem:[#allocation2 + $0x1c0] sm:$0xff] %v568_v35  ;;  %v574_v39 = vadd.f32 %v573_v38, %v5649_v20  ;;  %v575_v40 = vpop.f32.mrb[59].mxu0  ;;  %v1289_v38 = vmul.f32 0.0, %v6130_v9 }
 0x456   :  { %875 = vst [vmem:[#allocation2 + $0x1c8] sm:$0xff] %v570_v37  ;;  %v576_v43 = vadd.f32 %v575_v40, %v5652_v21  ;;  %v579_v44 = vpop.f32.mrb[60].mxu0 }
 0x457   :  { %876 = vst [vmem:[#allocation2 + $0x1d0] sm:$0xff] %v574_v39  ;;  %v580_v45 = vadd.f32 %v579_v44, %v5649_v20  ;;  %v581_v51 = vpop.f32.mrb[61].mxu0 }
 0x458   :  { %877 = vst [vmem:[#allocation2 + $0x1d8] sm:$0xff] %v576_v43  ;;  %v582_v54 = vadd.f32 %v581_v51, %v5652_v21  ;;  %v585_v55 = vpop.f32.mrb[62].mxu0 }
 0x459   :  { %878 = vst [vmem:[#allocation2 + $0x1e0] sm:$0xff] %v580_v45  ;;  %v586_v31 = vadd.f32 %v585_v55, %v5649_v20  ;;  %v587_v33 = vpop.f32.mrb[63].mxu0 }
 0x45a   :  { %879 = vst [vmem:[#allocation2 + $0x1e8] sm:$0xff] %v582_v54  ;;  %v588_v59 = vadd.f32 %v587_v33, %v5652_v21  ;;  %v591_v28 = vpop.f32.mrb[64].mxu0 }
 0x45b   :  { %880 = vst [vmem:[#allocation2 + $0x1f0] sm:$0xff] %v586_v31  ;;  %v592_v63 = vadd.f32 %v591_v28, %v5649_v20  ;;  %v593_v2 = vpop.f32.mrb[65].mxu0 }
 0x45c   :  { %881 = vst [vmem:[#allocation2 + $0x1f8] sm:$0xff] %v588_v59  ;;  %v594_v27 = vadd.f32 %v593_v2, %v5652_v21  ;;  %v597_v5 = vpop.f32.mrb[66].mxu0 }
 0x45d   :  { %882 = vst [vmem:[#allocation2 + $0x200] sm:$0xff] %v592_v63  ;;  %v598_v41 = vadd.f32 %v597_v5, %v5649_v20  ;;  %v599_v42 = vpop.f32.mrb[67].mxu0 }
 0x45e   :  { %883 = vst [vmem:[#allocation2 + $0x208] sm:$0xff] %v594_v27  ;;  %v600_v6 = vadd.f32 %v599_v42, %v5652_v21  ;;  %v603_v48 = vpop.f32.mrb[68].mxu0 }
 0x45f   :  { %884 = vst [vmem:[#allocation2 + $0x210] sm:$0xff] %v598_v41  ;;  %v604_v49 = vadd.f32 %v603_v48, %v5649_v20  ;;  %v605_v53 = vpop.f32.mrb[69].mxu0 }
 0x460   :  { %885 = vst [vmem:[#allocation2 + $0x218] sm:$0xff] %v600_v6  ;;  %v606_v10 = vadd.f32 %v605_v53, %v5652_v21  ;;  %v609_v11 = vpop.f32.mrb[70].mxu0  ;;  %v1394_v6 = vmul.f32 %v6142_v47, %v5802_v29 }
 0x461   :  { %886 = vst [vmem:[#allocation2 + $0x220] sm:$0xff] %v604_v49  ;;  %v610_v15 = vadd.f32 %v609_v11, %v5649_v20  ;;  %v611_v16 = vpop.f32.mrb[71].mxu0  ;;  %v4226_v11 = vmul.f32 -1.442695, %v6068_v34 }
 0x462   :  { %887 = vst [vmem:[#allocation2 + $0x228] sm:$0xff] %v606_v10  ;;  %v612_v22 = vadd.f32 %v611_v16, %v5652_v21  ;;  %v4223_v10 = vmul.f32 -1.442695, %v6043_v58  ;;  %v6215_v58 = vmov 0.0  }
 0x463   :  { %888 = vst [vmem:[#allocation2 + $0x230] sm:$0xff] %v610_v15 }
 0x464   :  { %889 = vst [vmem:[#allocation2 + $0x238] sm:$0xff] %v612_v22 }
 0x499   :  { %v615_v23 = vpop.f32.mrb[72].mxu0 }
 0x49a   :  { %v616_v24 = vadd.f32 %v615_v23, %v5649_v20  ;;  %v617_v25 = vpop.f32.mrb[73].mxu0 }
 0x49b   :  { %v618_v30 = vadd.f32 %v617_v25, %v5652_v21 }
 0x49c   :  { %890 = vst [vmem:[#allocation2 + $0x240] sm:$0xff] %v616_v24 }
 0x49d   :  { %891 = vst [vmem:[#allocation2 + $0x248] sm:$0xff] %v618_v30  ;;  %v621_v32 = vpop.f32.mrb[74].mxu0  ;;  %v6211_v30 = vmov 0.0  }
 0x49e   :  { %v622_v35 = vadd.f32 %v621_v32, %v5649_v20  ;;  %v623_v36 = vpop.f32.mrb[75].mxu0  ;;  %v6213_v32 = vmov 0.0  }
 0x49f   :  { %v624_v37 = vadd.f32 %v623_v36, %v5652_v21 }
 0x4a0   :  { %892 = vst [vmem:[#allocation2 + $0x250] sm:$0xff] %v622_v35 }
 0x4a1   :  { %893 = vst [vmem:[#allocation2 + $0x258] sm:$0xff] %v624_v37  ;;  %v627_v40 = vpop.f32.mrb[76].mxu0 }
 0x4a2   :  { %v628_v44 = vadd.f32 %v627_v40, %v5649_v20  ;;  %v629_v45 = vpop.f32.mrb[77].mxu0 }
 0x4a3   :  { %v630_v51 = vadd.f32 %v629_v45, %v5652_v21 }
 0x4a4   :  { %894 = vst [vmem:[#allocation2 + $0x260] sm:$0xff] %v628_v44 }
 0x4a5   :  { %895 = vst [vmem:[#allocation2 + $0x268] sm:$0xff] %v630_v51  ;;  %v633_v54 = vpop.f32.mrb[78].mxu0 }
 0x4a6   :  { %v634_v55 = vadd.f32 %v633_v54, %v5649_v20  ;;  %v635_v31 = vpop.f32.mrb[79].mxu0 }
 0x4a7   :  { %v636_v33 = vadd.f32 %v635_v31, %v5652_v21 }
 0x4a8   :  { %896 = vst [vmem:[#allocation2 + $0x270] sm:$0xff] %v634_v55 }
 0x4a9   :  { %v1297_v39 = vpop.permute.xlu1 %1296  ;;  %897 = vst [vmem:[#allocation2 + $0x278] sm:$0xff] %v636_v33  ;;  %v639_v9 = vpop.f32.mrb[80].mxu0 }
 0x4aa   :  { %v1299_v43 = vadd.f32 %v1297_v39, %v1289_v38   ;;  %v640_v59 = vadd.f32 %v639_v9, %v5649_v20  ;;  %v641_v28 = vpop.f32.mrb[81].mxu0 }
 0x4ab   :  { %v642_v63 = vadd.f32 %v641_v28, %v5652_v21 }
 0x4ac   :  { %5070 = vtanh.f32 %v1299_v43  ;;  %898 = vst [vmem:[#allocation2 + $0x280] sm:$0xff] %v640_v59 }
 0x4ad   :  { %899 = vst [vmem:[#allocation2 + $0x288] sm:$0xff] %v642_v63  ;;  %v645_v2 = vpop.f32.mrb[82].mxu0 }
 0x4ae   :  { %v646_v5 = vadd.f32 %v645_v2, %v5649_v20  ;;  %v647_v41 = vpop.f32.mrb[83].mxu0 }
 0x4af   :  { %v648_v42 = vadd.f32 %v647_v41, %v5652_v21 }
 0x4b0   :  { %900 = vst [vmem:[#allocation2 + $0x290] sm:$0xff] %v646_v5 }
 0x4b1   :  { %901 = vst [vmem:[#allocation2 + $0x298] sm:$0xff] %v648_v42 }
 0x4b6   :  { %v5071_v27 = vpop.eup %5070 }
 0x4b7   :  { %1302 = vrot.lane.b32.xlu1 %v5071_v27, %s5331_s22 }
 0x4b9   :  { %v1402_v48 = vpop.permute.xlu0 %1401 }
 0x4ba   :  { %v1404_v49 = vadd.f32 %v1402_v48, %v1394_v6  }
 0x4bc   :  { %5072 = vtanh.f32 %v1404_v49 }
 0x4bd   :  { %5074 = vpow2.f32 %v4223_v10 }
 0x4be   :  { %5076 = vpow2.f32 %v4226_v11 }
 0x4c6   :  { %v5073_v53 = vpop.eup %5072 }
 0x4c7   :  { %1407 = vrot.lane.b32.xlu0 %v5073_v53, %s5331_s22  ;;  %v5075_v20 = vpop.eup %5074 }
 0x4c8   :  { %v1283_v15 = vadd.f32 1.0, %v5075_v20  ;;  %v5077_v21 = vpop.eup %5076 }
 0x4c9   :  { %v1388_v22 = vadd.f32 1.0, %v5077_v21 }
 0x4ca   :  { %5078 = vrcp.f32 %v1283_v15 }
 0x4cb   :  { %5080 = vrcp.f32 %v1388_v22 }
 0x4d4   :  { %v5079_v16 = vpop.eup %5078 }
 0x4d5   :  { %v5081_v23 = vpop.eup %5080 }
 0x529   :  { %v1303_v29 = vpop.permute.xlu1 %1302 }
 0x52a   :  { %v1305_v47 = vmul.f32 %v5079_v16, %v1303_v29  }
 0x539   :  { %v1408_v24 = vpop.permute.xlu0 %1407 }
 0x53a   :  { %v1410_v25 = vmul.f32 %v5081_v23, %v1408_v24  }
 0x53b LB: > { %v7227_v17 = vld [vmem:[#allocation4_spill] sm:$0xff]  ;;  %v7228_v19 = vld [vmem:[#allocation5_spill] sm:$0xff]  ;;  %7229 = vst [vmem:[#allocation24_spill] sm:$0xff] %v5300_v30  ;;  %v4231_v35 = vld [vmem:[%s7164_s1 + $0x98] sm:$0xff]  ;;  %v7173_v44 = vmov 0.0   ;;  %v7232_v52 = vmov 0.0   ;;  %v5304_v32 = vphi %v6213_v32, %v7250_v32   ;;  %v5300_v30 = vphi %v6211_v30, %v7249_v30   ;;  %s5328_s0 = sphi %s6225_s0, %s1416_s0   ;;  %v5324_v25 = vphi %v1410_v25, %v7254_v25   ;;  %v5320_v49 = vphi %v1404_v49, %v3432_v49   ;;  %v5316_v47 = vphi %v1305_v47, %v7253_v47   ;;  %v5312_v43 = vphi %v1299_v43, %v7252_v43   ;;  %v5308_v58 = vphi %v6215_v58, %v7251_v58  }
 0x53c   : > { %v4229_v34 = vld [vmem:[%s7164_s1 + $0x88] sm:$0xff]  ;;  %v4228_v36 = vld [vmem:[%s7164_s1 + $0x80] sm:$0xff]  ;;  %v4230_v38 = vld [vmem:[%s7164_s1 + $0x90] sm:$0xff]  ;;  %1521 = vmatprep.mubr.f32.mxu0 %v7173_v44  ;;  %1744 = vmatprep.mubr.f32.mxu1 %v7173_v44  ;;  %s6647_s18 = sshll.u32 %s5328_s0, 5  ;;  %s5333_s28 = smov 64  }
 0x53d   : > { %v6260_v37 = vpack.c.bf16 %v4231_v35, %v4229_v34  ;;  %v4233_v39 = vld [vmem:[%s7164_s1 + $0xa8] sm:$0xff]  ;;  %v4235_v40 = vld [vmem:[%s7164_s1 + $0xb8] sm:$0xff]  ;;  %v6273_v45 = vpack.c.bf16 %v4230_v38, %v4228_v36  ;;  %v4232_v54 = vld [vmem:[%s7164_s1 + $0xa0] sm:$0xff]  ;;  %s4411_s19 = sadd.s32 16, %s6647_s18  ;;  %s4414_s29 = sadd.s32 24, %s6647_s18 }
 0x53e   : > { %v6275_v51 = vpack.c.bf16 %v4235_v40, %v4233_v39  ;;  %v4234_v55 = vld [vmem:[%s7164_s1 + $0xb0] sm:$0xff]  ;;  %v4237_v31 = vld [vmem:[%s7164_s1 + $0xc8] sm:$0xff]  ;;  %v4239_v33 = vld [vmem:[%s7164_s1 + $0xd8] sm:$0xff]  ;;  %s1875_s20 = sshra.s32 %s4411_s19, 3  ;;  %s2370_s30 = sshra.s32 %s4414_s29, 3 }
 0x53f   : > { %4507 = vmatprep.subr.bf16.mxu0 %v6260_v37  ;;  %v6291_v9 = vpack.c.bf16 %v4234_v55, %v4232_v54  ;;  %v6294_v59 = vpack.c.bf16 %v4239_v33, %v4237_v31  ;;  %v4236_v28 = vld [vmem:[%s7164_s1 + $0xc0] sm:$0xff]  ;;  %v4238_v63 = vld [vmem:[%s7164_s1 + $0xd0] sm:$0xff]  ;;  %v4241_v2 = vld [vmem:[%s7164_s1 + $0xe8] sm:$0xff]  ;;  %s4412_s21 = sshll.u32 %s1875_s20, 4  ;;  %s4415_s7 = sshll.u32 %s2370_s30, 4 }
 0x540   : > { %4509 = vmatpush1.bf16.msra.mxu0 %v6273_v45  ;;  %v4243_v27 = vld [vmem:[%s7164_s1 + $0xf8] sm:$0xff]  ;;  %v6309_v5 = vpack.c.bf16 %v4238_v63, %v4236_v28  ;;  %v4240_v42 = vld [vmem:[%s7164_s1 + $0xe0] sm:$0xff]  ;;  %v4242_v6 = vld [vmem:[%s7164_s1 + $0xf0] sm:$0xff]  ;;  %s1879_s25 = scalar_lea.vmem [#allocation2], %s4412_s21  ;;  %s2374_s8 = scalar_lea.vmem [#allocation2], %s4415_s7 }
 0x541   : > { %4511 = vmatprep.subr.bf16.mxu0 %v6275_v51  ;;  %v6312_v41 = vpack.c.bf16 %v4243_v27, %v4241_v2  ;;  %v4247_v48 = vld [vmem:[%s7168_s2 + $0x88] sm:$0xff]  ;;  %v4249_v53 = vld [vmem:[%s7168_s2 + $0x98] sm:$0xff]  ;;  %v6333_v11 = vpack.c.bf16 %v4242_v6, %v4240_v42  ;;  %v4246_v15 = vld [vmem:[%s7168_s2 + $0x80] sm:$0xff]  ;;  %s4227_s9 = sshll.u32 %s5328_s0, 2  ;;  %s4417_s5 = sadd.s32 32, %s6647_s18 }
 0x542   : > { %v4266_v10 = vld [vmem:[%s7164_s1 + $0x108] sm:$0xff]  ;;  %v4268_v20 = vld [vmem:[%s7164_s1 + $0x118] sm:$0xff]  ;;  %v4265_v16 = vld [vmem:[%s7164_s1 + $0x100] sm:$0xff]  ;;  %v6347_v22 = vpack.c.bf16 %v4249_v53, %v4247_v48  ;;  %s6828_s12 = scalar_lea.vmem %s7165_s4, %s4227_s9  ;;  %s2850_s13 = sshra.s32 %s4417_s5, 3 }
 0x543   : > { %7230 = vst [vmem:[#allocation25_spill] sm:$0xff] %v6333_v11  ;;  %v6338_v21 = vpack.c.bf16 %v4268_v20, %v4266_v10  ;;  %v4267_v29 = vld [vmem:[%s7164_s1 + $0x110] sm:$0xff]  ;;  %v4270_v34 = vld [vmem:[%s7164_s1 + $0x128] sm:$0xff]  ;;  %v4272_v35 = vld [vmem:[%s7164_s1 + $0x138] sm:$0xff]  ;;  %s4418_s14 = sshll.u32 %s2850_s13, 4  ;;  %s4420_s16 = sadd.s32 40, %s6647_s18 }
 0x544   : > { %4513 = vmatpush1.bf16.msra.mxu0 %v6291_v9  ;;  %7231 = vst [vmem:[#allocation26_spill] sm:$0xff] %v6347_v22  ;;  %v4248_v23 = vld [vmem:[%s7168_s2 + $0x90] sm:$0xff]  ;;  %v6352_v24 = vpack.c.bf16 %v4267_v29, %v4265_v16  ;;  %v4251_v36 = vld [vmem:[%s7168_s2 + $0xa8] sm:$0xff]  ;;  %v4253_v38 = vld [vmem:[%s7168_s2 + $0xb8] sm:$0xff]  ;;  %v6367_v39 = vpack.c.bf16 %v4272_v35, %v4270_v34  ;;  %s2854_s15 = scalar_lea.vmem [#allocation2], %s4418_s14  ;;  %s3329_s17 = sshra.s32 %s4420_s16, 3 }
 0x545   : > { %4515 = vmatprep.subr.bf16.mxu0 %v6294_v59  ;;  %4539 = vmatprep.subr.bf16.mxu1 %v6338_v21  ;;  %v4269_v40 = vld [vmem:[%s7164_s1 + $0x120] sm:$0xff]  ;;  %v4271_v54 = vld [vmem:[%s7164_s1 + $0x130] sm:$0xff]  ;;  %v6377_v55 = vpack.c.bf16 %v4248_v23, %v4246_v15  ;;  %v4274_v28 = vld [vmem:[%s7164_s1 + $0x148] sm:$0xff]  ;;  %v6392_v2 = vpack.c.bf16 %v4253_v38, %v4251_v36  ;;  %s4421_s19 = sshll.u32 %s3329_s17, 4  ;;  %s1416_s0 = sadd.s32 1, %s5328_s0  }
 0x546   : > { %4541 = vmatpush1.bf16.msra.mxu1 %v6352_v24  ;;  %v4250_v31 = vld [vmem:[%s7168_s2 + $0xa0] sm:$0xff]  ;;  %v6383_v33 = vpack.c.bf16 %v4271_v54, %v4269_v40  ;;  %v4276_v63 = vld [vmem:[%s7164_s1 + $0x158] sm:$0xff]  ;;  %v4252_v27 = vld [vmem:[%s7168_s2 + $0xb0] sm:$0xff]  ;;  %s3333_s20 = scalar_lea.vmem [#allocation2], %s4421_s19  ;;  %p1413_p0 = scmp.ge.s32.totalorder %s1416_s0, 17  }
 0x547   : > { %4543 = vmatprep.subr.bf16.mxu1 %v6367_v39  ;;  %v6397_v42 = vpack.c.bf16 %v4276_v63, %v4274_v28  ;;  %v4273_v6 = vld [vmem:[%s7164_s1 + $0x140] sm:$0xff]  ;;  %v4275_v48 = vld [vmem:[%s7164_s1 + $0x150] sm:$0xff]  ;;  %v4255_v53 = vld [vmem:[%s7168_s2 + $0xc8] sm:$0xff]  ;;  %v6423_v29 = vpack.c.bf16 %v4252_v27, %v4250_v31  ;;  %vm4065_vm1 = vcmask (%p1413_p0), 7168  }
 0x548   : > { %4517 = vmatpush1.bf16.msra.mxu0 %v6309_v5  ;;  %v4257_v10 = vld [vmem:[%s7168_s2 + $0xd8] sm:$0xff]  ;;  %v4278_v20 = vld [vmem:[%s7164_s1 + $0x168] sm:$0xff]  ;;  %v6417_v15 = vpack.c.bf16 %v4275_v48, %v4273_v6  ;;  %v4254_v23 = vld [vmem:[%s7168_s2 + $0xc0] sm:$0xff] }
 0x549   : > { %4519 = vmatprep.subr.bf16.mxu0 %v6312_v41  ;;  %v4280_v16 = vld [vmem:[%s7164_s1 + $0x178] sm:$0xff]  ;;  %v4277_v35 = vld [vmem:[%s7164_s1 + $0x160] sm:$0xff]  ;;  %v4279_v36 = vld [vmem:[%s7164_s1 + $0x170] sm:$0xff]  ;;  %v6438_v38 = vpack.c.bf16 %v4257_v10, %v4255_v53 }
 0x54a   : > { %4545 = vmatpush1.bf16.msra.mxu1 %v6383_v33  ;;  %v6429_v34 = vpack.c.bf16 %v4280_v16, %v4278_v20  ;;  %v4256_v40 = vld [vmem:[%s7168_s2 + $0xd0] sm:$0xff]  ;;  %v4284_v54 = vld [vmem:[%s7168_s2 + $0x108] sm:$0xff]  ;;  %v4286_v31 = vld [vmem:[%s7168_s2 + $0x118] sm:$0xff]  ;;  %v6457_v27 = vpack.c.bf16 %v4279_v36, %v4277_v35 }
 0x54b   : > { %4547 = vmatprep.subr.bf16.mxu1 %v6397_v42  ;;  %v4259_v28 = vld [vmem:[%s7168_s2 + $0xe8] sm:$0xff]  ;;  %v4261_v63 = vld [vmem:[%s7168_s2 + $0xf8] sm:$0xff]  ;;  %v6460_v6 = vpack.c.bf16 %v4256_v40, %v4254_v23  ;;  %v4258_v48 = vld [vmem:[%s7168_s2 + $0xe0] sm:$0xff]  ;;  %v6466_v53 = vpack.c.bf16 %v4286_v31, %v4284_v54 }
 0x54c   : > { %4521 = vmatpush1.bf16.msra.mxu0 %v6333_v11  ;;  %v4283_v10 = vld [vmem:[%s7168_s2 + $0x100] sm:$0xff]  ;;  %v4285_v20 = vld [vmem:[%s7168_s2 + $0x110] sm:$0xff]  ;;  %v6475_v16 = vpack.c.bf16 %v4261_v63, %v4259_v28  ;;  %v4288_v35 = vld [vmem:[%s7168_s2 + $0x128] sm:$0xff] }
 0x54d   : > { %4523 = vmatprep.subr.bf16.mxu0 %v6347_v22  ;;  %v4260_v23 = vld [vmem:[%s7168_s2 + $0xf0] sm:$0xff]  ;;  %v4290_v36 = vld [vmem:[%s7168_s2 + $0x138] sm:$0xff]  ;;  %v1883_v40 = vld [vmem:[%s7168_s2 + $0x8] sm:$0xff]  ;;  %v6493_v31 = vpack.c.bf16 %v4285_v20, %v4283_v10 }
 0x54e   : > { %4549 = vmatpush1.bf16.msra.mxu1 %v6417_v15  ;;  %v1885_v54 = vld [vmem:[%s7168_s2 + $0x18] sm:$0xff]  ;;  %v6496_v28 = vpack.c.bf16 %v4260_v23, %v4258_v48  ;;  %v6499_v63 = vpack.c.bf16 %v4290_v36, %v4288_v35  ;;  %v4287_v3 = vld [vmem:[%s7168_s2 + $0x120] sm:$0xff]  ;;  %v1884_v20 = vld [vmem:[%s7168_s2 + $0x10] sm:$0xff] }
 0x54f   : > { %4245 = vmatmul.mubr.msk.f32.vlgmr.msra.gmra.mrb[0].mxu0 %vm122_vm0, %v5324_v25  ;;  %4551 = vmatprep.subr.bf16.mxu1 %v6429_v34  ;;  %v6508_v10 = vpack.c.bf16 %v1885_v54, %v1883_v40  ;;  %v1882_v48 = vld [vmem:[%s7168_s2] sm:$0xff]  ;;  %v1887_v23 = vld [vmem:[%s7168_s2 + $0x28] sm:$0xff]  ;;  %v1889_v35 = vld [vmem:[%s7168_s2 + $0x38] sm:$0xff] }
 0x550   : > { %4525 = vmatpush1.bf16.msra.mxu0 %v6377_v55  ;;  %1611 = vmatprep.mubr.f32.mxu0 %v7173_v44  ;;  %v4289_v44 = vld [vmem:[%s7168_s2 + $0x130] sm:$0xff]  ;;  %v4292_v36 = vld [vmem:[%s7168_s2 + $0x148] sm:$0xff]  ;;  %v4294_v40 = vld [vmem:[%s7168_s2 + $0x158] sm:$0xff]  ;;  %v6535_v12 = vpack.c.bf16 %v1884_v20, %v1882_v48 }
 0x551   : > { %4527 = vmatprep.subr.bf16.mxu0 %v6392_v2  ;;  %v6531_v54 = vpack.c.bf16 %v4289_v44, %v4287_v3  ;;  %v1886_v4 = vld [vmem:[%s7168_s2 + $0x20] sm:$0xff]  ;;  %v4293_v3 = vld [vmem:[%s7168_s2 + $0x150] sm:$0xff]  ;;  %v6548_v44 = vpack.c.bf16 %v1889_v35, %v1887_v23  ;;  %v6553_v20 = vpack.c.bf16 %v4294_v40, %v4292_v36  ;;  %v4296_v62 = vld [vmem:[%s7168_s2 + $0x168] sm:$0xff] }
 0x552   : > { %4553 = vmatpush1.bf16.msra.mxu1 %v6457_v27  ;;  %v4291_v18 = vld [vmem:[%s7168_s2 + $0x140] sm:$0xff]  ;;  %v1888_v48 = vld [vmem:[%s7168_s2 + $0x30] sm:$0xff]  ;;  %v4298_v14 = vld [vmem:[%s7168_s2 + $0x178] sm:$0xff] }
 0x553   : > { %4555 = vmatprep.subr.bf16.mxu1 %v6466_v53  ;;  %v1891_v61 = vld [vmem:[%s7168_s2 + $0x48] sm:$0xff]  ;;  %v1893_v23 = vld [vmem:[%s7168_s2 + $0x58] sm:$0xff]  ;;  %v6570_v35 = vpack.c.bf16 %v4293_v3, %v4291_v18  ;;  %v6573_v36 = vpack.c.bf16 %v1888_v48, %v1886_v4  ;;  %v6576_v40 = vpack.c.bf16 %v4298_v14, %v4296_v62  ;;  %v4295_v13 = vld [vmem:[%s7168_s2 + $0x160] sm:$0xff] }
 0x554   : > { %4529 = vmatpush1.bf16.msra.mxu0 %v6423_v29  ;;  %v6585_v18 = vpack.c.bf16 %v1893_v23, %v1891_v61  ;;  %v1890_v4 = vld [vmem:[%s7168_s2 + $0x40] sm:$0xff]  ;;  %v1892_v14 = vld [vmem:[%s7168_s2 + $0x50] sm:$0xff]  ;;  %v1895_v62 = vld [vmem:[%s7168_s2 + $0x68] sm:$0xff] }
 0x555   : > { %4531 = vmatprep.subr.bf16.mxu0 %v6438_v38  ;;  %4282 = vmatmul.mubr.msk.f32.vlgmr.msra.gmra.mrb[0].mxu1 %vm122_vm0, %v5316_v47  ;;  %v1897_v3 = vld [vmem:[%s7168_s2 + $0x78] sm:$0xff]  ;;  %v6604_v48 = vpack.c.bf16 %v1892_v14, %v1890_v4  ;;  %v1894_v57 = vld [vmem:[%s7168_s2 + $0x60] sm:$0xff]  ;;  %v1896_v8 = vld [vmem:[%s7168_s2 + $0x70] sm:$0xff] }
 0x556   : > { %4557 = vmatpush1.bf16.msra.mxu1 %v6493_v31  ;;  %1835 = vmatprep.mubr.f32.mxu1 %v7232_v52  ;;  %v6608_v23 = vpack.c.bf16 %v1897_v3, %v1895_v62  ;;  %v1880_v4 = vld [vmem:[%s1879_s25] sm:$0xff]  ;;  %v1881_v14 = vld [vmem:[%s1879_s25 + $0x8] sm:$0xff] }
 0x557   : > { %4559 = vmatprep.subr.bf16.mxu1 %v6499_v63  ;;  %v4281_v62 = vld [vmem:[%s7170_s3 + $0x4] sm:$0x3] }
 0x558   : > { %4533 = vmatpush1.bf16.msra.mxu0 %v6460_v6  ;;  %v6660_v46 = vrot.slane %v4281_v62, %v7228_v19 }
 0x559   : > { %4535 = vmatprep.subr.bf16.mxu0 %v6475_v16 }
 0x55a   : > { %4561 = vmatpush1.bf16.msra.mxu1 %v6531_v54  ;;  %7234 = vst [vmem:[#allocation28_spill] sm:$0xff] %v6660_v46 }
 0x55b   : > { %4563 = vmatprep.subr.bf16.mxu1 %v6553_v20 }
 0x55c   : > { %4537 = vmatpush1.bf16.msra.mxu0 %v6496_v28 }
 0x55d   : > { %4571 = vmatprep.subr.bf16.mxu0 %v6508_v10 }
 0x55e   : > { %4565 = vmatpush1.bf16.msra.mxu1 %v6570_v35 }
 0x55f   : > { %4262 = vmatmul.mubr.msk.f32.vlgmr.msra.gmra.mrb[0].mxu0 %vm122_vm0, %v5316_v47  ;;  %v4297_v47 = vld [vmem:[%s7168_s2 + $0x170] sm:$0xff]  ;;  %4567 = vmatprep.subr.bf16.mxu1 %v6576_v40 }
 0x560   : > { %4573 = vmatpush1.bf16.msra.mxu0 %v6535_v12  ;;  %1962 = vmatprep.mubr.f32.mxu0 %v7232_v52  ;;  %v6601_v61 = vpack.c.bf16 %v4297_v47, %v4295_v13  ;;  %v6618_v13 = vpack.c.bf16 %v1896_v8, %v1894_v57  ;;  %v4244_v47 = vld [vmem:[%s7170_s3 + $0x2] sm:$0x3] }
 0x561   : > { %4575 = vmatprep.subr.bf16.mxu0 %v6548_v44  ;;  %v6657_v3 = vrot.slane %v4244_v47, %v7228_v19 }
 0x562   : > { %4569 = vmatpush1.bf16.msra.mxu1 %v6601_v61 }
 0x563   : > { %4587 = vmatprep.subr.bf16.mxu1 %v6260_v37  ;;  %7233 = vst [vmem:[#allocation27_spill] sm:$0xff] %v6657_v3 }
 0x564   : > { %4577 = vmatpush1.bf16.msra.mxu0 %v6573_v36 }
 0x565   : > { %4579 = vmatprep.subr.bf16.mxu0 %v6585_v18  ;;  %4299 = vmatmul.mubr.msk.f32.vlgmr.msra.gmra.mrb[0].mxu1 %vm122_vm0, %v5308_v58 }
 0x566   : > { %4589 = vmatpush1.bf16.msra.mxu1 %v6273_v45  ;;  %2079 = vmatprep.mubr.f32.mxu1 %v7232_v52 }
 0x567   : > { %4591 = vmatprep.subr.bf16.mxu1 %v6275_v51 }
 0x568   : > { %4581 = vmatpush1.bf16.msra.mxu0 %v6604_v48 }
 0x569   : > { %4583 = vmatprep.subr.bf16.mxu0 %v6608_v23 }
 0x56a   : > { %4593 = vmatpush1.bf16.msra.mxu1 %v6291_v9 }
 0x56b   : > { %4595 = vmatprep.subr.bf16.mxu1 %v6294_v59 }
 0x56c   : > { %4585 = vmatpush1.bf16.msra.mxu0 %v6618_v13 }
 0x56d   : > { %4619 = vmatprep.subr.bf16.mxu0 %v6338_v21 }
 0x56e   : > { %4597 = vmatpush1.bf16.msra.mxu1 %v6309_v5 }
 0x56f   : > { %4305 = vmatmul.mubr.msk.f32.vlgmr.msra.gmra.mrb[2].mxu0 %vm122_vm0, %v5324_v25  ;;  %4599 = vmatprep.subr.bf16.mxu1 %v6312_v41 }
 0x570   : > { %4621 = vmatpush1.bf16.msra.mxu0 %v6352_v24  ;;  %2256 = vmatprep.mubr.f32.mxu0 %v7232_v52 }
 0x571   : > { %4623 = vmatprep.subr.bf16.mxu0 %v6367_v39 }
 0x572   : > { %4601 = vmatpush1.bf16.msra.mxu1 %v6333_v11 }
 0x573   : > { %4603 = vmatprep.subr.bf16.mxu1 %v6347_v22 }
 0x574   : > { %4625 = vmatpush1.bf16.msra.mxu0 %v6383_v33 }
 0x575   : > { %4627 = vmatprep.subr.bf16.mxu0 %v6397_v42 }
 0x578   : > { %4629 = vmatpush1.bf16.msra.mxu0 %v6417_v15 }
 0x579   : > { %4631 = vmatprep.subr.bf16.mxu0 %v6429_v34 }
 0x57c   : > { %4633 = vmatpush1.bf16.msra.mxu0 %v6457_v27 }
 0x57d   : > { %4635 = vmatprep.subr.bf16.mxu0 %v6466_v53 }
 0x632   : > { %v1613_v8 = vpop.f32.mrb[0].mxu0 }
 0x633   : > { %v1615_v57 = vpop.f32.mrb[1].mxu0 }
 0x634   : > { %v4935_v0 = vadd.f32 %v1615_v57, %v6657_v3 }
 0x638   : > { %v1837_v25 = vpop.f32.mrb[0].mxu1 }
 0x639   : > { %v1839_v58 = vpop.f32.mrb[1].mxu1 }
 0x63a   : > { %v6664_v26 = vadd.f32 %v1839_v58, %v6660_v46 }
 0x642   : > { %v1964_v56 = vpop.f32.mrb[2].mxu0 }
 0x643   : > { %v1969_v7 = vadd.f32 %v1964_v56, %v1880_v4  ;;  %v1966_v50 = vpop.f32.mrb[3].mxu0  ;;  %v6671_v56 = vrot.slane %v4244_v47, %v7227_v17 }
 0x644   : > { %v1970_v1 = vadd.f32 %v1966_v50, %v1881_v14 }
 0x645   : > { %7235 = vst [vmem:[#allocation29_spill] sm:$0xff] %v6671_v56  ;;  %v4934_v57 = vadd.f32 %v1613_v8, %v6671_v56  ;;  %v4306_v58 = vmul.f32 -1.442695, %v1969_v7  ;;  %v6677_v7 = vrot.slane %v4281_v62, %v7227_v17 }
 0x646   : > { %5082 = vtanh.f32 %v1970_v1 }
 0x647   : > { %5084 = vtanh.f32 %v4935_v0  ;;  %v4263_v4 = vmul.f32 -1.442695, %v4934_v57  ;;  %v4936_v8 = vadd.f32 %v1837_v25, %v6677_v7 }
 0x648   : > { %5086 = vtanh.f32 %v6664_v26 }
 0x649   : > { %5088 = vpow2.f32 %v4306_v58  ;;  %v4300_v57 = vmul.f32 -1.442695, %v4936_v8  ;;  %v4264_v8 = vmul.f32 -1.442695, %v4935_v0 }
 0x64a   : > { %5090 = vpow2.f32 %v4263_v4 }
 0x650   : > { %v5083_v60 = vpop.eup %5082 }
 0x651   : > { %1986 = vrot.lane.b32.xlu0 %v5083_v60, %s5333_s28  ;;  %v5085_v30 = vpop.eup %5084 }
 0x652   : > { %v5087_v50 = vpop.eup %5086 }
 0x653   : > { %v5089_v14 = vpop.eup %5088 }
 0x654   : > { %v1977_v19 = vadd.f32 1.0, %v5089_v14  ;;  %v5091_v46 = vpop.eup %5090 }
 0x655   : > { %1635 = vrot.lane.b32.xlu0 %v5085_v30, %s5333_s28  ;;  %v1626_v3 = vadd.f32 1.0, %v5091_v46 }
 0x656   : > { %5092 = vrcp.f32 %v1977_v19 }
 0x657   : > { %5094 = vrcp.f32 %v1626_v3 }
 0x658   : > { %5096 = vpow2.f32 %v4300_v57 }
 0x659   : > { %1859 = vrot.lane.b32.xlu0 %v5087_v50, %s5333_s28 }
 0x660   : > { %v5093_v60 = vpop.eup %5092 }
 0x661   : > { %v5095_v50 = vpop.eup %5094  ;;  %v1984_v3 = vmul.f32 %v5320_v49, %v5093_v60 }
 0x662   : > { %v5097_v46 = vpop.eup %5096 }
 0x663   : > { %v1850_v19 = vadd.f32 1.0, %v5097_v46 }
 0x665   : > { %5098 = vrcp.f32 %v1850_v19 }
 0x66f   : > { %v5099_v25 = vpop.eup %5098 }
 0x6c3   : > { %v1987_v30 = vpop.permute.xlu0 %1986 }
 0x6c4   : > { %v1989_v22 = vmul.f32 %v5093_v60, %v1987_v30  ;;  %v4307_v60 = vmul.f32 -1.442695, %v1970_v1 }
 0x6c6   : > { %1991 = vrot.lane.b32.xlu1 %v1989_v22, %s5333_s28  ;;  %v1633_v22 = vmul.f32 %v5312_v43, %v5095_v50 }
 0x6c7   : > { %v1636_v47 = vpop.permute.xlu0 %1635 }
 0x6c8   : > { %v1638_v11 = vmul.f32 %v5095_v50, %v1636_v47 }
 0x6ca   : > { %1640 = vrot.lane.b32.xlu1 %v1638_v11, %s5333_s28 }
 0x6cb   : > { %v1860_v30 = vpop.permute.xlu0 %1859 }
 0x6cc   : > { %v1862_v47 = vmul.f32 %v5099_v25, %v1860_v30 }
 0x738   : > { %v1992_v58 = vpop.permute.xlu1 %1991 }
 0x739   : > { %v6681_v4 = vadd.f32 %v1992_v58, %v1984_v3 }
 0x73b   : > { %5100 = vtanh.f32 %v6681_v4 }
 0x73c   : > { %v1641_v11 = vpop.permute.xlu1 %1640 }
 0x73d   : > { %v6685_v14 = vadd.f32 %v1641_v11, %v1633_v22  ;;  %v1857_v22 = vmul.f32 %v5304_v32, %v5099_v25  ;;  %v4301_v25 = vmul.f32 -1.442695, %v6664_v26  ;;  %v7236_v26 = vld [vmem:[#allocation25_spill] sm:$0xff] }
 0x73f   : > { %5102 = vtanh.f32 %v6685_v14 }
 0x740   : > { %5104 = vpow2.f32 %v4307_v60 }
 0x741   : > { %5106 = vpow2.f32 %v4264_v8 }
 0x745   : > { %v5101_v62 = vpop.eup %5100 }
 0x746   : > { %1997 = vrot.lane.b32.xlu1 %v5101_v62, %s5333_s28 }
 0x749   : > { %v5103_v49 = vpop.eup %5102 }
 0x74a   : > { %1646 = vrot.lane.b32.xlu0 %v5103_v49, %s5333_s28  ;;  %1864 = vrot.lane.b32.xlu1 %v1862_v47, %s5333_s28  ;;  %v5105_v43 = vpop.eup %5104 }
 0x74b   : > { %v1978_v50 = vadd.f32 1.0, %v5105_v43  ;;  %v5107_v57 = vpop.eup %5106 }
 0x74c   : > { %v1627_v46 = vadd.f32 1.0, %v5107_v57 }
 0x74d   : > { %5108 = vrcp.f32 %v1978_v50  ;;  %v7237_v50 = vld [vmem:[#allocation26_spill] sm:$0xff] }
 0x74e   : > { %5110 = vrcp.f32 %v1627_v46 }
 0x757   : > { %v5109_v19 = vpop.eup %5108 }
 0x758   : > { %v5111_v11 = vpop.eup %5110 }
 0x7b8   : > { %v1998_v3 = vpop.permute.xlu1 %1997 }
 0x7b9   : > { %v2000_v58 = vmul.f32 %v5109_v19, %v1998_v3  ;;  %v7238_v19 = vld [vmem:[#allocation27_spill] sm:$0xff] }
 0x7bb   : > { %4309 = vmatmul.mubr.msk.f32.vlgmr.msra.gmra.mrb[2].mxu1 %vm122_vm0, %v2000_v58 }
 0x7bc   : > { %4605 = vmatpush1.bf16.msra.mxu1 %v6377_v55  ;;  %v1865_v1 = vpop.permute.xlu1 %1864  ;;  %v1647_v0 = vpop.permute.xlu0 %1646  ;;  %2153 = vmatprep.mubr.f32.mxu1 %v7232_v52 }
 0x7bd   : > { %v6695_v62 = vadd.f32 %v1865_v1, %v1857_v22  ;;  %v1649_v30 = vmul.f32 %v5111_v11, %v1647_v0  ;;  %4607 = vmatprep.subr.bf16.mxu1 %v6392_v2  ;;  %v2375_v22 = vld [vmem:[%s2374_s8] sm:$0xff]  ;;  %v2376_v11 = vld [vmem:[%s2374_s8 + $0x8] sm:$0xff] }
 0x7bf   : > { %5112 = vtanh.f32 %v6695_v62  ;;  %4313 = vmatmul.mubr.msk.f32.vlgmr.msra.gmra.mrb[4].mxu0 %vm122_vm0, %v1649_v30 }
 0x7c0   : > { %4609 = vmatpush1.bf16.msra.mxu1 %v6423_v29  ;;  %4637 = vmatpush1.bf16.msra.mxu0 %v6493_v31  ;;  %5114 = vpow2.f32 %v4301_v25 }
 0x7c1   : > { %4611 = vmatprep.subr.bf16.mxu1 %v6438_v38  ;;  %4639 = vmatprep.subr.bf16.mxu0 %v6499_v63 }
 0x7c2   : > { %2330 = vmatprep.mubr.f32.mxu0 %v7232_v52 }
 0x7c4   : > { %4613 = vmatpush1.bf16.msra.mxu1 %v6460_v6  ;;  %4641 = vmatpush1.bf16.msra.mxu0 %v6531_v54 }
 0x7c5   : > { %4615 = vmatprep.subr.bf16.mxu1 %v6475_v16  ;;  %4643 = vmatprep.subr.bf16.mxu0 %v6553_v20 }
 0x7c8   : > { %4617 = vmatpush1.bf16.msra.mxu1 %v6496_v28  ;;  %4645 = vmatpush1.bf16.msra.mxu0 %v6570_v35 }
 0x7c9   : > { %v5113_v32 = vpop.eup %5112  ;;  %4651 = vmatprep.subr.bf16.mxu1 %v6508_v10  ;;  %4647 = vmatprep.subr.bf16.mxu0 %v6576_v40 }
 0x7ca   : > { %1870 = vrot.lane.b32.xlu0 %v5113_v32, %s5333_s28  ;;  %v5115_v47 = vpop.eup %5114 }
 0x7cb   : > { %4310 = vmatmul.mubr.msk.f32.vlgmr.msra.gmra.mrb[2].mxu1 %vm122_vm0, %v1649_v30  ;;  %v1851_v49 = vadd.f32 1.0, %v5115_v47 }
 0x7cc   : > { %4653 = vmatpush1.bf16.msra.mxu1 %v6535_v12  ;;  %2441 = vmatprep.mubr.f32.mxu1 %v7232_v52 }
 0x7cd   : > { %4655 = vmatprep.subr.bf16.mxu1 %v6548_v44  ;;  %4649 = vmatpush1.bf16.msra.mxu0 %v6601_v61  ;;  %5116 = vrcp.f32 %v1851_v49 }
 0x7ce   : > { %4667 = vmatprep.subr.bf16.mxu0 %v6260_v37 }
 0x7d0   : > { %4657 = vmatpush1.bf16.msra.mxu1 %v6573_v36 }
 0x7d1   : > { %4659 = vmatprep.subr.bf16.mxu1 %v6585_v18 }
 0x7d4   : > { %4661 = vmatpush1.bf16.msra.mxu1 %v6604_v48 }
 0x7d5   : > { %4663 = vmatprep.subr.bf16.mxu1 %v6608_v23 }
 0x7d7   : > { %v5117_v60 = vpop.eup %5116 }
 0x7d8   : > { %4665 = vmatpush1.bf16.msra.mxu1 %v6618_v13 }
 0x7d9   : > { %4699 = vmatprep.subr.bf16.mxu1 %v6338_v21 }
 0x7db   : > { %4320 = vmatmul.mubr.msk.f32.vlgmr.msra.gmra.mrb[4].mxu1 %vm122_vm0, %v2000_v58 }
 0x7dc   : > { %4701 = vmatpush1.bf16.msra.mxu1 %v6352_v24  ;;  %2736 = vmatprep.mubr.f32.mxu1 %v7232_v52 }
 0x7dd   : > { %4703 = vmatprep.subr.bf16.mxu1 %v6367_v39 }
 0x7e0   : > { %4705 = vmatpush1.bf16.msra.mxu1 %v6383_v33 }
 0x7e1   : > { %4707 = vmatprep.subr.bf16.mxu1 %v6397_v42 }
 0x7e4   : > { %4709 = vmatpush1.bf16.msra.mxu1 %v6417_v15 }
 0x7e5   : > { %4711 = vmatprep.subr.bf16.mxu1 %v6429_v34 }
 0x7e8   : > { %4713 = vmatpush1.bf16.msra.mxu1 %v6457_v27 }
 0x7e9   : > { %4715 = vmatprep.subr.bf16.mxu1 %v6466_v53 }
 0x83c   : > { %v1871_v8 = vpop.permute.xlu0 %1870 }
 0x83d   : > { %v6737_v43 = vmul.f32 %v5117_v60, %v1871_v8 }
 0x83f   : > { %4314 = vmatmul.mubr.msk.f32.vlgmr.msra.gmra.mrb[4].mxu0 %vm122_vm0, %v6737_v43 }
 0x840   : > { %4669 = vmatpush1.bf16.msra.mxu0 %v6273_v45  ;;  %2559 = vmatprep.mubr.f32.mxu0 %v7232_v52 }
 0x841   : > { %4671 = vmatprep.subr.bf16.mxu0 %v6275_v51 }
 0x844   : > { %4673 = vmatpush1.bf16.msra.mxu0 %v6291_v9 }
 0x845   : > { %4675 = vmatprep.subr.bf16.mxu0 %v6294_v59 }
 0x848   : > { %4677 = vmatpush1.bf16.msra.mxu0 %v6309_v5 }
 0x849   : > { %4679 = vmatprep.subr.bf16.mxu0 %v6312_v41 }
 0x84c   : > { %4681 = vmatpush1.bf16.msra.mxu0 %v7236_v26 }
 0x84d   : > { %4683 = vmatprep.subr.bf16.mxu0 %v7237_v50 }
 0x89e   : > { %v2155_v57 = vpop.f32.mrb[2].mxu1 }
 0x89f   : > { %v2157_v46 = vpop.f32.mrb[3].mxu1  ;;  %v4938_v47 = vadd.f32 %v2155_v57, %v6671_v56 }
 0x8a0   : > { %v6751_v3 = vadd.f32 %v2157_v46, %v7238_v19 }
 0x8a1   : > { %v4311_v49 = vmul.f32 -1.442695, %v4938_v47 }
 0x8a2   : > { %5118 = vtanh.f32 %v6751_v3 }
 0x8ac   : > { %v5119_v58 = vpop.eup %5118 }
 0x8ad   : > { %2177 = vrot.lane.b32.xlu0 %v5119_v58, %s5333_s28  ;;  %v7239_v58 = vld [vmem:[#allocation28_spill] sm:$0xff] }
 0x8ae   : > { %v2443_v1 = vpop.f32.mrb[4].mxu1 }
 0x8af   : > { %v2448_v0 = vadd.f32 %v2443_v1, %v2375_v22  ;;  %v2445_v30 = vpop.f32.mrb[5].mxu1 }
 0x8b0   : > { %v2449_v32 = vadd.f32 %v2445_v30, %v2376_v11 }
 0x8b1   : > { %v4321_v60 = vmul.f32 -1.442695, %v2448_v0 }
 0x8b2   : > { %5120 = vtanh.f32 %v2449_v32 }
 0x8b3   : > { %5122 = vpow2.f32 %v4311_v49 }
 0x8b4   : > { %5124 = vpow2.f32 %v4321_v60 }
 0x8bc   : > { %v5121_v25 = vpop.eup %5120 }
 0x8bd   : > { %2465 = vrot.lane.b32.xlu1 %v5121_v25, %s5333_s28  ;;  %v5123_v8 = vpop.eup %5122 }
 0x8be   : > { %v2168_v19 = vadd.f32 1.0, %v5123_v8  ;;  %v5125_v22 = vpop.eup %5124 }
 0x8bf   : > { %v2456_v30 = vadd.f32 1.0, %v5125_v22 }
 0x912   : > { %v2332_v46 = vpop.f32.mrb[4].mxu0 }
 0x913   : > { %v2334_v17 = vpop.f32.mrb[5].mxu0 }
 0x914   : > { %v6759_v50 = vadd.f32 %v2334_v17, %v7239_v58  ;;  %v4940_v17 = vadd.f32 %v2332_v46, %v6677_v7 }
 0x916   : > { %5126 = vtanh.f32 %v6759_v50  ;;  %v4315_v60 = vmul.f32 -1.442695, %v4940_v17 }
 0x917   : > { %5128 = vrcp.f32 %v2168_v19 }
 0x918   : > { %5130 = vrcp.f32 %v2456_v30 }
 0x919   : > { %5132 = vpow2.f32 %v4315_v60 }
 0x91f   : > { %v2178_v1 = vpop.permute.xlu0 %2177 }
 0x920   : > { %v5127_v11 = vpop.eup %5126 }
 0x921   : > { %2354 = vrot.lane.b32.xlu1 %v5127_v11, %s5333_s28  ;;  %v5129_v57 = vpop.eup %5128 }
 0x922   : > { %v2180_v25 = vmul.f32 %v5129_v57, %v2178_v1  ;;  %v5131_v0 = vpop.eup %5130  ;;  %v2175_v1 = vmul.f32 %v5129_v57, %v6685_v14  ;;  %v4312_v14 = vmul.f32 -1.442695, %v6751_v3  ;;  %v4322_v57 = vmul.f32 -1.442695, %v2449_v32 }
 0x923   : > { %v5133_v19 = vpop.eup %5132 }
 0x924   : > { %v2345_v8 = vadd.f32 1.0, %v5133_v19 }
 0x925   : > { %2182 = vrot.lane.b32.xlu1 %v2180_v25, %s5333_s28 }
 0x926   : > { %5134 = vrcp.f32 %v2345_v8 }
 0x92f   : > { %v2466_v47 = vpop.permute.xlu1 %2465 }
 0x930   : > { %v2468_v49 = vmul.f32 %v5131_v0, %v2466_v47  ;;  %v5135_v22 = vpop.eup %5134  ;;  %v2463_v47 = vmul.f32 %v5131_v0, %v6681_v4 }
 0x931   : > { %v2352_v19 = vmul.f32 %v5135_v22, %v6695_v62 }
 0x932   : > { %2470 = vrot.lane.b32.xlu0 %v2468_v49, %s5333_s28 }
 0x993   : > { %v2355_v56 = vpop.permute.xlu1 %2354 }
 0x994   : > { %v2357_v11 = vmul.f32 %v5135_v22, %v2355_v56 }
 0x996   : > { %2359 = vrot.lane.b32.xlu0 %v2357_v11, %s5333_s28 }
 0x997   : > { %v2183_v30 = vpop.permute.xlu1 %2182 }
 0x998   : > { %v6768_v25 = vadd.f32 %v2183_v30, %v2175_v1 }
 0x99a   : > { %5136 = vtanh.f32 %v6768_v25 }
 0x9a4   : > { %v5137_v46 = vpop.eup %5136  ;;  %v2471_v49 = vpop.permute.xlu0 %2470 }
 0x9a5   : > { %v6772_v17 = vadd.f32 %v2471_v49, %v2463_v47  ;;  %2188 = vrot.lane.b32.xlu0 %v5137_v46, %s5333_s28 }
 0x9a7   : > { %5138 = vtanh.f32 %v6772_v17 }
 0x9a8   : > { %5140 = vpow2.f32 %v4312_v14 }
 0x9a9   : > { %5142 = vpow2.f32 %v4322_v57  ;;  %v7242_v57 = vld [vmem:[#allocation27_spill] sm:$0xff] }
 0x9b1   : > { %v5139_v56 = vpop.eup %5138 }
 0x9b2   : > { %2476 = vrot.lane.b32.xlu1 %v5139_v56, %s5333_s28  ;;  %v5141_v60 = vpop.eup %5140 }
 0x9b3   : > { %v2169_v4 = vadd.f32 1.0, %v5141_v60  ;;  %v5143_v11 = vpop.eup %5142 }
 0x9b4   : > { %v2457_v30 = vadd.f32 1.0, %v5143_v11 }
 0xa08   : > { %v2360_v8 = vpop.permute.xlu0 %2359 }
 0xa09   : > { %v6779_v0 = vadd.f32 %v2360_v8, %v2352_v19 }
 0xa0b   : > { %5144 = vtanh.f32 %v6779_v0 }
 0xa0c   : > { %5146 = vrcp.f32 %v2169_v4 }
 0xa0d   : > { %5148 = vrcp.f32 %v2457_v30  ;;  %v7243_v30 = vld [vmem:[#allocation29_spill] sm:$0xff] }
 0xa15   : > { %v5145_v1 = vpop.eup %5144 }
 0xa16   : > { %2365 = vrot.lane.b32.xlu1 %v5145_v1, %s5333_s28  ;;  %v5147_v47 = vpop.eup %5146 }
 0xa17   : > { %v2189_v3 = vpop.permute.xlu0 %2188  ;;  %v5149_v62 = vpop.eup %5148 }
 0xa18   : > { %v2191_v46 = vmul.f32 %v5147_v47, %v2189_v3 }
 0xa1a   : > { %4330 = vmatmul.mubr.msk.f32.vlgmr.msra.gmra.mrb[6].mxu1 %vm122_vm0, %v2191_v46 }
 0xa1b   : > { %4717 = vmatpush1.bf16.msra.mxu1 %v6493_v31  ;;  %2810 = vmatprep.mubr.f32.mxu1 %v7232_v52 }
 0xa1c   : > { %4719 = vmatprep.subr.bf16.mxu1 %v6499_v63 }
 0xa1f   : > { %4721 = vmatpush1.bf16.msra.mxu1 %v6531_v54 }
 0xa20   : > { %4723 = vmatprep.subr.bf16.mxu1 %v6553_v20 }
 0xa23   : > { %4725 = vmatpush1.bf16.msra.mxu1 %v6570_v35 }
 0xa24   : > { %v2477_v32 = vpop.permute.xlu1 %2476  ;;  %4727 = vmatprep.subr.bf16.mxu1 %v6576_v40 }
 0xa25   : > { %v2479_v22 = vmul.f32 %v5149_v62, %v2477_v32 }
 0xa27   : > { %4326 = vmatmul.mubr.msk.f32.vlgmr.msra.gmra.mrb[6].mxu0 %vm122_vm0, %v2479_v22  ;;  %4729 = vmatpush1.bf16.msra.mxu1 %v6601_v61 }
 0xa28   : > { %4685 = vmatpush1.bf16.msra.mxu0 %v6377_v55  ;;  %2633 = vmatprep.mubr.f32.mxu0 %v7232_v52 }
 0xa29   : > { %4687 = vmatprep.subr.bf16.mxu0 %v6392_v2  ;;  %4747 = vmatprep.subr.bf16.mxu1 %v6260_v37  ;;  %v4316_v37 = vmul.f32 -1.442695, %v6759_v50 }
 0xa2b   : > { %5150 = vpow2.f32 %v4316_v37 }
 0xa2c   : > { %4689 = vmatpush1.bf16.msra.mxu0 %v6423_v29 }
 0xa2d   : > { %4691 = vmatprep.subr.bf16.mxu0 %v6438_v38 }
 0xa30   : > { %4693 = vmatpush1.bf16.msra.mxu0 %v6460_v6 }
 0xa31   : > { %4695 = vmatprep.subr.bf16.mxu0 %v6475_v16 }
 0xa34   : > { %4697 = vmatpush1.bf16.msra.mxu0 %v6496_v28 }
 0xa35   : > { %4731 = vmatprep.subr.bf16.mxu0 %v6508_v10 }
 0xa37   : > { %4327 = vmatmul.mubr.msk.f32.vlgmr.msra.gmra.mrb[6].mxu0 %vm122_vm0, %v2191_v46 }
 0xa38   : > { %4733 = vmatpush1.bf16.msra.mxu0 %v6535_v12  ;;  %2921 = vmatprep.mubr.f32.mxu0 %v7232_v52 }
 0xa39   : > { %4735 = vmatprep.subr.bf16.mxu0 %v6548_v44 }
 0xa3c   : > { %4737 = vmatpush1.bf16.msra.mxu0 %v6573_v36 }
 0xa3d   : > { %4739 = vmatprep.subr.bf16.mxu0 %v6585_v18 }
 0xa40   : > { %4741 = vmatpush1.bf16.msra.mxu0 %v6604_v48 }
 0xa41   : > { %4743 = vmatprep.subr.bf16.mxu0 %v6608_v23 }
 0xa44   : > { %4745 = vmatpush1.bf16.msra.mxu0 %v6618_v13 }
 0xa45   : > { %4779 = vmatprep.subr.bf16.mxu0 %v6338_v21  ;;  %v5151_v21 = vpop.eup %5150 }
 0xa47   : > { %4337 = vmatmul.mubr.msk.f32.vlgmr.msra.gmra.mrb[8].mxu0 %vm122_vm0, %v2479_v22 }
 0xa48   : > { %4781 = vmatpush1.bf16.msra.mxu0 %v6352_v24  ;;  %3215 = vmatprep.mubr.f32.mxu0 %v7232_v52  ;;  %v2346_v24 = vadd.f32 1.0, %v5151_v21 }
 0xa49   : > { %4783 = vmatprep.subr.bf16.mxu0 %v6367_v39  ;;  %v4308_v39 = vld [vmem:[%s6828_s12] ss:$0 sm:$0xff] }
 0xa4a   : > { %5152 = vrcp.f32 %v2346_v24 }
 0xa4c   : > { %4785 = vmatpush1.bf16.msra.mxu0 %v6383_v33  ;;  %v2009_v33 = vmul.f32 %v4308_v39, %v6737_v43  ;;  %v7241_v43 = vld [vmem:[#allocation26_spill] sm:$0xff] }
 0xa4d   : > { %4787 = vmatprep.subr.bf16.mxu0 %v6397_v42 }
 0xa50   : > { %4789 = vmatpush1.bf16.msra.mxu0 %v6417_v15  ;;  %v4325_v15 = vld [vmem:[%s6828_s12 + $0x1] ss:$0 sm:$0xff] }
 0xa51   : > { %4791 = vmatprep.subr.bf16.mxu0 %v6429_v34 }
 0xa54   : > { %4793 = vmatpush1.bf16.msra.mxu0 %v6457_v27  ;;  %v5153_v42 = vpop.eup %5152 }
 0xa55   : > { %4795 = vmatprep.subr.bf16.mxu0 %v6466_v53  ;;  %v7240_v53 = vld [vmem:[#allocation24_spill] sm:$0xff] }
 0xa56   : > { %v2010_v50 = vadd.f32 %v7240_v53, %v2009_v33 }
 0xa88   : > { %v2366_v34 = vpop.permute.xlu1 %2365 }
 0xa89   : > { %v2368_v27 = vmul.f32 %v5153_v42, %v2366_v34 }
 0xa8b   : > { %v2489_v49 = vmul.f32 %v4325_v15, %v2368_v27  ;;  %4331 = vmatmul.mubr.msk.f32.vlgmr.msra.gmra.mrb[6].mxu1 %vm122_vm0, %v2368_v27 }
 0xa8c   : > { %4749 = vmatpush1.bf16.msra.mxu1 %v6273_v45  ;;  %3038 = vmatprep.mubr.f32.mxu1 %v7232_v52 }
 0xa8d   : > { %v6837_v56 = vadd.f32 %v2489_v49, %v2010_v50  ;;  %4751 = vmatprep.subr.bf16.mxu1 %v6275_v51 }
 0xa90   : > { %4753 = vmatpush1.bf16.msra.mxu1 %v6291_v9  ;;  %v2855_v9 = vld [vmem:[%s2854_s15] sm:$0xff] }
 0xa91   : > { %4755 = vmatprep.subr.bf16.mxu1 %v6294_v59  ;;  %v2856_v59 = vld [vmem:[%s2854_s15 + $0x8] sm:$0xff] }
 0xa94   : > { %4757 = vmatpush1.bf16.msra.mxu1 %v6309_v5 }
 0xa95   : > { %4759 = vmatprep.subr.bf16.mxu1 %v6312_v41 }
 0xa98   : > { %4761 = vmatpush1.bf16.msra.mxu1 %v7236_v26 }
 0xa99   : > { %4763 = vmatprep.subr.bf16.mxu1 %v7241_v43 }
 0xb0a   : > { %v2635_v14 = vpop.f32.mrb[6].mxu0 }
 0xb0b   : > { %v2637_v45 = vpop.f32.mrb[7].mxu0  ;;  %v4942_v47 = vadd.f32 %v2635_v14, %v7243_v30 }
 0xb0c   : > { %v6847_v60 = vadd.f32 %v2637_v45, %v7242_v57 }
 0xb0d   : > { %v4328_v46 = vmul.f32 -1.442695, %v4942_v47 }
 0xb0e   : > { %5154 = vtanh.f32 %v6847_v60 }
 0xb18   : > { %v5155_v51 = vpop.eup %5154 }
 0xb19   : > { %2657 = vrot.lane.b32.xlu1 %v5155_v51, %s5333_s28 }
 0xb1a   : > { %v2923_v5 = vpop.f32.mrb[8].mxu0 }
 0xb1b   : > { %v2928_v41 = vadd.f32 %v2923_v5, %v2855_v9  ;;  %v2925_v26 = vpop.f32.mrb[9].mxu0 }
 0xb1c   : > { %v2929_v19 = vadd.f32 %v2925_v26, %v2856_v59 }
 0xb1d   : > { %v4338_v32 = vmul.f32 -1.442695, %v2928_v41 }
 0xb1e   : > { %5156 = vtanh.f32 %v2929_v19 }
 0xb28   : > { %v5157_v8 = vpop.eup %5156 }
 0xb29   : > { %2945 = vrot.lane.b32.xlu0 %v5157_v8, %s5333_s28 }
 0xb5e   : > { %v2812_v4 = vpop.f32.mrb[6].mxu1 }
 0xb5f   : > { %v2814_v11 = vpop.f32.mrb[7].mxu1  ;;  %v4944_v27 = vadd.f32 %v2812_v4, %v6677_v7 }
 0xb60   : > { %v6854_v1 = vadd.f32 %v2814_v11, %v7239_v58 }
 0xb61   : > { %v4332_v53 = vmul.f32 -1.442695, %v4944_v27 }
 0xb62   : > { %5158 = vtanh.f32 %v6854_v1 }
 0xb63   : > { %5160 = vpow2.f32 %v4328_v46  ;;  %v4329_v46 = vmul.f32 -1.442695, %v6847_v60 }
 0xb64   : > { %5162 = vpow2.f32 %v4338_v32 }
 0xb6c   : > { %v5159_v3 = vpop.eup %5158 }
 0xb6d   : > { %2834 = vrot.lane.b32.xlu0 %v5159_v3, %s5333_s28  ;;  %v5161_v62 = vpop.eup %5160 }
 0xb6e   : > { %v2648_v22 = vadd.f32 1.0, %v5161_v62  ;;  %v5163_v37 = vpop.eup %5162  ;;  %v4339_v62 = vmul.f32 -1.442695, %v2929_v19 }
 0xb6f   : > { %v2936_v33 = vadd.f32 1.0, %v5163_v37 }
 0xb70   : > { %5164 = vrcp.f32 %v2648_v22 }
 0xb71   : > { %5166 = vrcp.f32 %v2936_v33 }
 0xb72   : > { %5168 = vpow2.f32 %v4332_v53 }
 0xb7a   : > { %v5165_v21 = vpop.eup %5164 }
 0xb7b   : > { %v5167_v42 = vpop.eup %5166  ;;  %v2655_v51 = vmul.f32 %v5165_v21, %v6768_v25 }
 0xb7c   : > { %v5169_v50 = vpop.eup %5168  ;;  %v2943_v41 = vmul.f32 %v5167_v42, %v6772_v17 }
 0xb7d   : > { %v2825_v49 = vadd.f32 1.0, %v5169_v50 }
 0xb7f   : > { %5170 = vrcp.f32 %v2825_v49 }
 0xb89   : > { %v5171_v43 = vpop.eup %5170 }
 0xb8a   : > { %v2832_v25 = vmul.f32 %v5171_v43, %v6779_v0 }
 0xb8b   : > { %v2658_v24 = vpop.permute.xlu1 %2657 }
 0xb8c   : > { %v2660_v39 = vmul.f32 %v5165_v21, %v2658_v24 }
 0xb8e   : > { %2662 = vrot.lane.b32.xlu0 %v2660_v39, %s5333_s28 }
 0xb9b   : > { %v2946_v15 = vpop.permute.xlu0 %2945 }
 0xb9c   : > { %v2948_v34 = vmul.f32 %v5167_v42, %v2946_v15 }
 0xb9e   : > { %2950 = vrot.lane.b32.xlu1 %v2948_v34, %s5333_s28 }
 0xbdf   : > { %v2835_v14 = vpop.permute.xlu0 %2834 }
 0xbe0   : > { %v2837_v45 = vmul.f32 %v5171_v43, %v2835_v14 }
 0xbe2   : > { %2839 = vrot.lane.b32.xlu1 %v2837_v45, %s5333_s28 }
 0xc00   : > { %v2663_v9 = vpop.permute.xlu0 %2662 }
 0xc01   : > { %v6864_v59 = vadd.f32 %v2663_v9, %v2655_v51 }
 0xc03   : > { %5172 = vtanh.f32 %v6864_v59 }
 0xc0d   : > { %v5173_v5 = vpop.eup %5172 }
 0xc0e   : > { %2668 = vrot.lane.b32.xlu1 %v5173_v5, %s5333_s28 }
 0xc10   : > { %v2951_v26 = vpop.permute.xlu1 %2950 }
 0xc11   : > { %v6869_v8 = vadd.f32 %v2951_v26, %v2943_v41 }
 0xc13   : > { %5174 = vtanh.f32 %v6869_v8 }
 0xc1d   : > { %v5175_v4 = vpop.eup %5174 }
 0xc1e   : > { %2956 = vrot.lane.b32.xlu0 %v5175_v4, %s5333_s28 }
 0xc54   : > { %v2840_v11 = vpop.permute.xlu1 %2839 }
 0xc55   : > { %v6874_v47 = vadd.f32 %v2840_v11, %v2832_v25 }
 0xc57   : > { %5176 = vtanh.f32 %v6874_v47 }
 0xc58   : > { %5178 = vpow2.f32 %v4329_v46 }
 0xc59   : > { %5180 = vpow2.f32 %v4339_v62 }
 0xc61   : > { %v5177_v3 = vpop.eup %5176 }
 0xc62   : > { %2845 = vrot.lane.b32.xlu0 %v5177_v3, %s5333_s28  ;;  %v5179_v17 = vpop.eup %5178 }
 0xc63   : > { %v2649_v32 = vadd.f32 1.0, %v5179_v17  ;;  %v5181_v22 = vpop.eup %5180 }
 0xc64   : > { %v2937_v24 = vadd.f32 1.0, %v5181_v22 }
 0xc65   : > { %5182 = vrcp.f32 %v2649_v32 }
 0xc66   : > { %5184 = vrcp.f32 %v2937_v24 }
 0xc6f   : > { %v5183_v37 = vpop.eup %5182 }
 0xc70   : > { %v5185_v60 = vpop.eup %5184 }
 0xc80   : > { %v2669_v21 = vpop.permute.xlu1 %2668 }
 0xc81   : > { %v2671_v0 = vmul.f32 %v5183_v37, %v2669_v21 }
 0xc83   : > { %4347 = vmatmul.mubr.msk.f32.vlgmr.msra.gmra.mrb[10].mxu0 %vm122_vm0, %v2671_v0 }
 0xc84   : > { %4797 = vmatpush1.bf16.msra.mxu0 %v6493_v31  ;;  %3289 = vmatprep.mubr.f32.mxu0 %v7232_v52 }
 0xc85   : > { %4799 = vmatprep.subr.bf16.mxu0 %v6499_v63 }
 0xc88   : > { %4801 = vmatpush1.bf16.msra.mxu0 %v6531_v54 }
 0xc89   : > { %4803 = vmatprep.subr.bf16.mxu0 %v6553_v20 }
 0xc8c   : > { %4805 = vmatpush1.bf16.msra.mxu0 %v6570_v35 }
 0xc8d   : > { %4807 = vmatprep.subr.bf16.mxu0 %v6576_v40 }
 0xc90   : > { %v2957_v19 = vpop.permute.xlu0 %2956  ;;  %4809 = vmatpush1.bf16.msra.mxu0 %v6601_v61 }
 0xc91   : > { %v2959_v39 = vmul.f32 %v5185_v60, %v2957_v19 }
 0xc93   : > { %4343 = vmatmul.mubr.msk.f32.vlgmr.msra.gmra.mrb[8].mxu1 %vm122_vm0, %v2959_v39 }
 0xc94   : > { %4765 = vmatpush1.bf16.msra.mxu1 %v6377_v55  ;;  %3112 = vmatprep.mubr.f32.mxu1 %v7232_v52  ;;  %v4333_v55 = vmul.f32 -1.442695, %v6854_v1 }
 0xc95   : > { %4767 = vmatprep.subr.bf16.mxu1 %v6392_v2 }
 0xc96   : > { %5186 = vpow2.f32 %v4333_v55 }
 0xc98   : > { %4769 = vmatpush1.bf16.msra.mxu1 %v6423_v29  ;;  %v4342_v29 = vld [vmem:[%s6828_s12 + $0x2] ss:$0 sm:$0xff] }
 0xc99   : > { %4771 = vmatprep.subr.bf16.mxu1 %v6438_v38 }
 0xc9c   : > { %4773 = vmatpush1.bf16.msra.mxu1 %v6460_v6 }
 0xc9d   : > { %4775 = vmatprep.subr.bf16.mxu1 %v6475_v16 }
 0xca0   : > { %4777 = vmatpush1.bf16.msra.mxu1 %v6496_v28 }
 0xca1   : > { %4811 = vmatprep.subr.bf16.mxu1 %v6508_v10 }
 0xca3   : > { %4344 = vmatmul.mubr.msk.f32.vlgmr.msra.gmra.mrb[8].mxu1 %vm122_vm0, %v2671_v0 }
 0xca4   : > { %4813 = vmatpush1.bf16.msra.mxu1 %v6535_v12  ;;  %3400 = vmatprep.mubr.f32.mxu1 %v7232_v52  ;;  %v5187_v12 = vpop.eup %5186 }
 0xca5   : > { %4815 = vmatprep.subr.bf16.mxu1 %v6548_v44  ;;  %v2826_v52 = vadd.f32 1.0, %v5187_v12  ;;  %v3334_v44 = vld [vmem:[%s3333_s20] sm:$0xff] }
 0xca7   : > { %5188 = vrcp.f32 %v2826_v52 }
 0xca8   : > { %4817 = vmatpush1.bf16.msra.mxu1 %v6573_v36 }
 0xca9   : > { %4819 = vmatprep.subr.bf16.mxu1 %v6585_v18  ;;  %v3335_v18 = vld [vmem:[%s3333_s20 + $0x8] sm:$0xff] }
 0xcac   : > { %4821 = vmatpush1.bf16.msra.mxu1 %v6604_v48 }
 0xcad   : > { %4823 = vmatprep.subr.bf16.mxu1 %v6608_v23 }
 0xcb0   : > { %4825 = vmatpush1.bf16.msra.mxu1 %v6618_v13 }
 0xcb1   : > { %v5189_v2 = vpop.eup %5188 }
 0xcb3   : > { %4354 = vmatmul.mubr.msk.f32.vlgmr.msra.gmra.mrb[10].mxu1 %vm122_vm0, %v2959_v39 }
 0xcd4   : > { %v2846_v38 = vpop.permute.xlu0 %2845 }
 0xcd5   : > { %v2848_v6 = vmul.f32 %v5189_v2, %v2846_v38 }
 0xcd7   : > { %v2968_v16 = vmul.f32 %v4342_v29, %v2848_v6  ;;  %4348 = vmatmul.mubr.msk.f32.vlgmr.msra.gmra.mrb[10].mxu0 %vm122_vm0, %v2848_v6  ;;  %v4359_v29 = vld [vmem:[%s6828_s12 + $0x3] ss:$0 sm:$0xff] }
 0xcd9   : > { %v6912_v31 = vadd.f32 %v2968_v16, %v6837_v56 }
 0xd76   : > { %v3114_v28 = vpop.f32.mrb[8].mxu1 }
 0xd77   : > { %v3116_v63 = vpop.f32.mrb[9].mxu1 }
 0xd78   : > { %v6915_v10 = vadd.f32 %v3116_v63, %v7242_v57  ;;  %v4946_v57 = vadd.f32 %v3114_v28, %v7243_v30 }
 0xd7a   : > { %5190 = vtanh.f32 %v6915_v10  ;;  %v4345_v1 = vmul.f32 -1.442695, %v4946_v57  ;;  %v4346_v21 = vmul.f32 -1.442695, %v6915_v10  ;;  %v4367_v57 = vld [vmem:[%s7164_s1 + $0x118] sm:$0xff] (%p1413_p0) }
 0xd84   : > { %v5191_v54 = vpop.eup %5190 }
 0xd85   : > { %3136 = vrot.lane.b32.xlu0 %v5191_v54, %s5333_s28 }
 0xd86   : > { %v3402_v20 = vpop.f32.mrb[10].mxu1 }
 0xd87   : > { %v3407_v35 = vadd.f32 %v3402_v20, %v3334_v44  ;;  %v3404_v36 = vpop.f32.mrb[11].mxu1  ;;  %v7256_v44 = vld [vmem:[#allocation14_spill] sm:$0xff] (%p1413_p0)  ;;  %v7257_v20 = vld [vmem:[#allocation7_spill] sm:$0xff] (%p1413_p0) }
 0xd88   : > { %v3408_v23 = vadd.f32 %v3404_v36, %v3335_v18  ;;  %4843 = vmatprep.subr.bf16.mxu0 (%p1413_p0), %v7256_v44  ;;  %v7259_v36 = vld [vmem:[#allocation8_spill] sm:$0xff] (%p1413_p0)  ;;  %v7261_v18 = vmov (%p1413_p0), 0.0  }
 0xd89   : > { %v4355_v50 = vmul.f32 -1.442695, %v3407_v35  ;;  %v7258_v35 = vld [vmem:[#allocation15_spill] sm:$0xff] (%p1413_p0)  ;;  %3516 = vmatprep.mubr.f32.mxu1 (%p1413_p0), %v7261_v18  ;;  %3590 = vmatprep.mubr.f32.mxu0 (%p1413_p0), %v7261_v18 }
 0xd8a   : > { %v4356_v19 = vmul.f32 -1.442695, %v3408_v23  ;;  %4845 = vmatpush1.bf16.msra.mxu0 (%p1413_p0), %v7258_v35  ;;  %v4396_v35 = vld [vmem:[%s7168_s2 + $0x170] sm:$0xff] (%p1413_p0) }
 0xdaa   : > { %v3291_v40 = vpop.f32.mrb[10].mxu0 }
 0xdab   : > { %v3293_v61 = vpop.f32.mrb[11].mxu0  ;;  %v4948_v27 = vadd.f32 %v3291_v40, %v6677_v7  ;;  %v7260_v40 = vld [vmem:[#allocation16_spill] sm:$0xff] (%p1413_p0) }
 0xdac   : > { %v6921_v48 = vadd.f32 %v3293_v61, %v7239_v58  ;;  %4847 = vmatprep.subr.bf16.mxu0 (%p1413_p0), %v7260_v40  ;;  %v7262_v61 = vld [vmem:[#allocation9_spill] sm:$0xff] (%p1413_p0) }
 0xdad   : > { %v4349_v53 = vmul.f32 -1.442695, %v4948_v27  ;;  %v4366_v27 = vld [vmem:[%s7164_s1 + $0x110] sm:$0xff] (%p1413_p0) }
 0xdae   : > { %5192 = vtanh.f32 %v6921_v48  ;;  %v4350_v60 = vmul.f32 -1.442695, %v6921_v48  ;;  %v7263_v48 = vld [vmem:[#allocation17_spill] sm:$0xff] (%p1413_p0) }
 0xdaf   : > { %5194 = vtanh.f32 %v3408_v23  ;;  %4849 = vmatpush1.bf16.msra.mxu0 (%p1413_p0), %v7263_v48  ;;  %v7264_v23 = vld [vmem:[#allocation10_spill] sm:$0xff] (%p1413_p0)  ;;  %v7272_v48 = vld [vmem:[#allocation23_spill] sm:$0xff] (%p1413_p0) }
 0xdb0   : > { %5196 = vpow2.f32 %v4345_v1  ;;  %v7266_v1 = vld [vmem:[#allocation11_spill] sm:$0xff] (%p1413_p0) }
 0xdb8   : > { %v5193_v13 = vpop.eup %5192 }
 0xdb9   : > { %3313 = vrot.lane.b32.xlu1 %v5193_v13, %s5333_s28  ;;  %v5195_v56 = vpop.eup %5194  ;;  %v7265_v13 = vld [vmem:[#allocation18_spill] sm:$0xff] (%p1413_p0) }
 0xdba   : > { %v5197_v33 = vpop.eup %5196  ;;  %4851 = vmatprep.subr.bf16.mxu0 (%p1413_p0), %v7265_v13 }
 0xdbb   : > { %v3127_v42 = vadd.f32 1.0, %v5197_v33  ;;  %v7267_v33 = vld [vmem:[#allocation19_spill] sm:$0xff] (%p1413_p0) }
 0xdbc   :  { %4853 = vmatpush1.bf16.msra.mxu0 (%p1413_p0), %v7267_v33 }
 0xdbd   : > { %3424 = vrot.lane.b32.xlu1 %v5195_v56, %s5333_s28  ;;  %5198 = vrcp.f32 %v3127_v42  ;;  %v4365_v56 = vld [vmem:[%s7164_s1 + $0x108] sm:$0xff] (%p1413_p0)  ;;  %v7268_v42 = vld [vmem:[#allocation12_spill] sm:$0xff] (%p1413_p0) }
 0xdbe   : > { %5200 = vpow2.f32 %v4349_v53  ;;  %v4369_v53 = vld [vmem:[%s7164_s1 + $0x128] sm:$0xff] (%p1413_p0) }
 0xdbf   : > { %5202 = vpow2.f32 %v4355_v50  ;;  %v4371_v50 = vld [vmem:[%s7164_s1 + $0x138] sm:$0xff] (%p1413_p0) }
 0xdc7   : > { %v5199_v15 = vpop.eup %5198 }
 0xdc8   : > { %v5201_v49 = vpop.eup %5200  ;;  %v3134_v7 = vmul.f32 %v5199_v15, %v6864_v59 }
 0xdc9   : > { %v3304_v43 = vadd.f32 1.0, %v5201_v49  ;;  %v5203_v14 = vpop.eup %5202 }
 0xdca   : > { %v3415_v30 = vadd.f32 1.0, %v5203_v14 }
 0xdcb   : > { %5204 = vrcp.f32 %v3304_v43 }
 0xdcc   : > { %5206 = vrcp.f32 %v3415_v30 }
 0xdd5   : > { %v5205_v45 = vpop.eup %5204 }
 0xdd6   : > { %v5207_v5 = vpop.eup %5206  ;;  %v3311_v3 = vmul.f32 %v5205_v45, %v6874_v47 }
 0xdd7   : > { %v3422_v62 = vmul.f32 %v5207_v5, %v6869_v8 }
 0xdf7   : > { %v3137_v58 = vpop.permute.xlu0 %3136 }
 0xdf8   : > { %v3139_v34 = vmul.f32 %v5199_v15, %v3137_v58  ;;  %v7269_v15 = vld [vmem:[#allocation20_spill] sm:$0xff] (%p1413_p0) }
 0xdf9   :  { %4855 = vmatprep.subr.bf16.mxu0 (%p1413_p0), %v7269_v15 }
 0xdfa   : > { %3141 = vrot.lane.b32.xlu1 %v3139_v34, %s5333_s28  ;;  %v4364_v34 = vld [vmem:[%s7164_s1 + $0x100] sm:$0xff] (%p1413_p0) }
 0xdfb   :  { %v4860_v14 = vpack.c.bf16 (%p1413_p0), %v4366_v27, %v4364_v34  ;;  %v7274_v34 = vld [vmem:[#allocation5_spill] sm:$0xff] (%p1413_p0) }
 0xe2b   : > { %v3314_v51 = vpop.permute.xlu1 %3313 }
 0xe2c   : > { %v3316_v9 = vmul.f32 %v5205_v45, %v3314_v51  ;;  %v4368_v45 = vld [vmem:[%s7164_s1 + $0x120] sm:$0xff] (%p1413_p0)  ;;  %v4370_v51 = vld [vmem:[%s7164_s1 + $0x130] sm:$0xff] (%p1413_p0) }
 0xe2e   : > { %3318 = vrot.lane.b32.xlu0 %v3316_v9, %s5333_s28  ;;  %v4373_v9 = vld [vmem:[%s7164_s1 + $0x148] sm:$0xff] (%p1413_p0) }
 0xe2f   : > { %v3425_v41 = vpop.permute.xlu1 %3424 }
 0xe30   : > { %v3427_v26 = vmul.f32 %v5207_v5, %v3425_v41  ;;  %v4375_v5 = vld [vmem:[%s7164_s1 + $0x158] sm:$0xff] (%p1413_p0)  ;;  %v4864_v41 = vpack.c.bf16 (%p1413_p0), %v4370_v51, %v4368_v45  ;;  %v7275_v45 = vld [vmem:[#allocation4_spill] sm:$0xff] (%p1413_p0) }
 0xe32   : > { %3429 = vrot.lane.b32.xlu0 %v3427_v26, %s5333_s28  ;;  %v4866_v26 = vpack.c.bf16 (%p1413_p0), %v4375_v5, %v4373_v9 }
 0xe6c   : > { %v3142_v4 = vpop.permute.xlu1 %3141 }
 0xe6d   : > { %v6932_v43 = vadd.f32 %v3142_v4, %v3134_v7   ;;  %v4372_v7 = vld [vmem:[%s7164_s1 + $0x140] sm:$0xff] (%p1413_p0)  ;;  %v4374_v4 = vld [vmem:[%s7164_s1 + $0x150] sm:$0xff] (%p1413_p0) }
 0xe6f   : > { %v7244_v11 = vmov %v6932_v43 }
 0xe70   : > { %5208 = vtanh.f32 %v7244_v11  ;;  %v7252_v43 = vmov %v7244_v11 }
 0xe71   :  { %v7271_v43 = vld [vmem:[#allocation21_spill] sm:$0xff] (%p1413_p0) }
 0xe72   :  { %4857 = vmatpush1.bf16.msra.mxu0 (%p1413_p0), %v7271_v43 }
 0xe7a   : > { %v5209_v25 = vpop.eup %5208 }
 0xe7b   : > { %3147 = vrot.lane.b32.xlu0 %v5209_v25, %s5333_s28 }
 0xea0   : > { %v3319_v46 = vpop.permute.xlu0 %3318 }
 0xea1   : > { %v6937_v32 = vadd.f32 %v3319_v46, %v3311_v3   ;;  %v4379_v3 = vld [vmem:[%s7164_s1 + $0x178] sm:$0xff] (%p1413_p0)  ;;  %v4868_v46 = vpack.c.bf16 (%p1413_p0), %v4374_v4, %v4372_v7 }
 0xea3   : > { %v7245_v17 = vmov %v6937_v32 }
 0xea4   : > { %5210 = vtanh.f32 %v7245_v17  ;;  %v3430_v22 = vpop.permute.xlu0 %3429 }
 0xea5   : > { %v3432_v49 = vadd.f32 %v3430_v22, %v3422_v62   ;;  %v4376_v22 = vld [vmem:[%s7164_s1 + $0x160] sm:$0xff] (%p1413_p0) }
 0xea7   : > { %5212 = vtanh.f32 %v3432_v49  ;;  %v7270_v49 = vld [vmem:[#allocation13_spill] sm:$0xff] (%p1413_p0) }
 0xea8   : > { %5214 = vpow2.f32 %v4346_v21  ;;  %v4385_v21 = vld [vmem:[%s7168_s2 + $0x118] sm:$0xff] (%p1413_p0) }
 0xeae   : > { %v5211_v59 = vpop.eup %5210 }
 0xeaf   : > { %3324 = vrot.lane.b32.xlu1 %v5211_v59, %s5333_s28  ;;  %v4378_v59 = vld [vmem:[%s7164_s1 + $0x170] sm:$0xff] (%p1413_p0) }
 0xeb1   : > { %v5213_v37 = vpop.eup %5212 }
 0xeb2   : > { %v5215_v47 = vpop.eup %5214 }
 0xeb3   : > { %3435 = vrot.lane.b32.xlu1 %v5213_v37, %s5333_s28  ;;  %v3128_v0 = vadd.f32 1.0, %v5215_v47  ;;  %v4383_v37 = vld [vmem:[%s7168_s2 + $0x108] sm:$0xff] (%p1413_p0) }
 0xeb5   : > { %5216 = vrcp.f32 %v3128_v0  ;;  %v4874_v0 = vpack.c.bf16 (%p1413_p0), %v4385_v21, %v4383_v37 }
 0xeb6   : > { %5218 = vpow2.f32 %v4350_v60  ;;  %v4387_v60 = vld [vmem:[%s7168_s2 + $0x128] sm:$0xff] (%p1413_p0) }
 0xeb7   : > { %5220 = vpow2.f32 %v4356_v19  ;;  %v4389_v19 = vld [vmem:[%s7168_s2 + $0x138] sm:$0xff] (%p1413_p0) }
 0xebf   : > { %v5217_v32 = vpop.eup %5216 }
 0xec0   : > { %v5219_v39 = vpop.eup %5218 }
 0xec1   : > { %v3305_v55 = vadd.f32 1.0, %v5219_v39  ;;  %v5221_v12 = vpop.eup %5220 }
 0xec2   : > { %v3416_v52 = vadd.f32 1.0, %v5221_v12  ;;  %v4386_v12 = vld [vmem:[%s7168_s2 + $0x120] sm:$0xff] (%p1413_p0) }
 0xec3   : > { %5222 = vrcp.f32 %v3305_v55  ;;  %v7067_v55 = vpack.c.bf16 (%p1413_p0), %v4389_v19, %v4387_v60 }
 0xec4   : > { %5224 = vrcp.f32 %v3416_v52  ;;  %v4388_v52 = vld [vmem:[%s7168_s2 + $0x130] sm:$0xff] (%p1413_p0) }
 0xecd   : > { %v5223_v2 = vpop.eup %5222 }
 0xece   : > { %v5225_v28 = vpop.eup %5224 }
 0xeed   : > { %v3148_v24 = vpop.permute.xlu0 %3147 }
 0xeee   : > { %v6944_v47 = vmul.f32 %v5217_v32, %v3148_v24   ;;  %v7250_v32 = vmov %v7245_v17  ;;  %v4384_v24 = vld [vmem:[%s7168_s2 + $0x110] sm:$0xff] (%p1413_p0) }
 0xeef   :  { %v4382_v32 = vld [vmem:[%s7168_s2 + $0x100] sm:$0xff] (%p1413_p0) }
 0xef0   : > { %v7246_v8 = vmov %v6944_v47  ;;  %v7065_v39 = vpack.c.bf16 (%p1413_p0), %v4384_v24, %v4382_v32 }
 0xef1   : > { %v7253_v47 = vmov %v7246_v8  ;;  %4361 = vmatmul.mubr.msk.f32.vlgmr.msra.gmra.mrb[0].mxu0 (%p1413_p0), %vm122_vm0, %v7246_v8 }
 0xef2   :  { %3930 = vmatprep.mubr.f32.mxu0 (%p1413_p0), %v7261_v18  ;;  %v4872_v47 = vpack.c.bf16 (%p1413_p0), %v4378_v59, %v4376_v22 }
 0xf21   : > { %v3325_v38 = vpop.permute.xlu1 %3324 }
 0xf22   : > { %v6948_v58 = vmul.f32 %v5223_v2, %v3325_v38   ;;  %v4391_v2 = vld [vmem:[%s7168_s2 + $0x148] sm:$0xff] (%p1413_p0)  ;;  %v7084_v38 = vpack.c.bf16 (%p1413_p0), %v4388_v52, %v4386_v12 }
 0xf24   : > { %v7247_v6 = vmov %v6948_v58  ;;  %1415 = sbr.rel (!%p1413_p0) target bundleno = 1339 (0x53b), region = 70 }
 0xf25   : > { %v3447_v16 = vmul.f32 %v4359_v29, %v7247_v6  ;;  %v3436_v63 = vpop.permute.xlu1 %3435  ;;  %v7251_v58 = vmov %v7247_v6  ;;  %v4393_v29 = vld [vmem:[%s7168_s2 + $0x158] sm:$0xff] (%p1413_p0) }
 0xf26   : > { %v3438_v54 = vmul.f32 %v5225_v28, %v3436_v63   ;;  %v4858_v58 = vpack.c.bf16 (%p1413_p0), %v4367_v57, %v4365_v56  ;;  %v4390_v28 = vld [vmem:[%s7168_s2 + $0x140] sm:$0xff] (%p1413_p0)  ;;  %v4392_v63 = vld [vmem:[%s7168_s2 + $0x150] sm:$0xff] (%p1413_p0) }
 0xf27   : > { %v6952_v30 = vadd.f32 %v3447_v16, %v6912_v31   ;;  %v7255_v31 = vld [vmem:[#allocation6_spill] sm:$0xff] (%p1413_p0)  ;;  %v7088_v16 = vpack.c.bf16 (%p1413_p0), %v4393_v29, %v4391_v2 }
 0xf28   : > { %v7254_v25 = vmov %v3438_v54  ;;  %4827 = vmatprep.subr.bf16.mxu1 (%p1413_p0), %v7255_v31  ;;  %4891 = vmatprep.subr.bf16.mxu0 (%p1413_p0), %v4858_v58  ;;  %v7103_v31 = vpack.c.bf16 (%p1413_p0), %v4392_v63, %v4390_v28  ;;  %v7273_v57 = vld [vmem:[#allocation22_spill] sm:$0xff] (%p1413_p0) }
 0xf29   : > { %v7248_v10 = vmov %v6952_v30  ;;  %4829 = vmatpush1.bf16.msra.mxu1 (%p1413_p0), %v7257_v20  ;;  %4893 = vmatpush1.bf16.msra.mxu0 (%p1413_p0), %v4860_v14  ;;  %v4377_v25 = vld [vmem:[%s7164_s1 + $0x168] sm:$0xff] (%p1413_p0)  ;;  %v4394_v20 = vld [vmem:[%s7168_s2 + $0x160] sm:$0xff] (%p1413_p0) }
 0xf2a   : > { %v7249_v30 = vmov %v7248_v10  ;;  %4831 = vmatprep.subr.bf16.mxu1 (%p1413_p0), %v7259_v36  ;;  %v4870_v62 = vpack.c.bf16 (%p1413_p0), %v4379_v3, %v4377_v25  ;;  %v7115_v36 = vpack.c.bf16 (%p1413_p0), %v4396_v35, %v4394_v20 }
 0xf2b   :  { %v4862_v30 = vpack.c.bf16 %v4371_v50, %v4369_v53 }
 0xf2d   :  { %4833 = vmatpush1.bf16.msra.mxu1 %v7262_v61  ;;  %4895 = vmatprep.subr.bf16.mxu0 %v4862_v30 }
 0xf2e   :  { %4835 = vmatprep.subr.bf16.mxu1 %v7264_v23  ;;  %4897 = vmatpush1.bf16.msra.mxu0 %v4864_v41 }
 0xf2f   :  { %4899 = vmatprep.subr.bf16.mxu0 %v4866_v26 }
 0xf31   :  { %4837 = vmatpush1.bf16.msra.mxu1 %v7266_v1 }
 0xf32   :  { %4839 = vmatprep.subr.bf16.mxu1 %v7268_v42  ;;  %4901 = vmatpush1.bf16.msra.mxu0 %v4868_v46 }
 0xf33   :  { %4903 = vmatprep.subr.bf16.mxu0 %v4870_v62 }
 0xf35   :  { %4841 = vmatpush1.bf16.msra.mxu1 %v7270_v49 }
 0xf36   :  { %4859 = vmatprep.subr.bf16.mxu1 %v4858_v58  ;;  %4905 = vmatpush1.bf16.msra.mxu0 %v4872_v47  ;;  %v4380_v58 = vld [vmem:[%s7170_s3 + $0x4] sm:$0x3] }
 0xf37   :  { %4907 = vmatprep.subr.bf16.mxu0 %v4874_v0  ;;  %v3652_v51 = vrot.slane %v4380_v58, %v7275_v45 }
 0xf38   :  { %4360 = vmatmul.mubr.msk.f32.vlgmr.msra.gmra.mrb[0].mxu1 %vm122_vm0, %v3438_v54  ;;  %v4397_v54 = vld [vmem:[%s7168_s2 + $0x178] sm:$0xff] }
 0xf39   :  { %4861 = vmatpush1.bf16.msra.mxu1 %v4860_v14  ;;  %3723 = vmatprep.mubr.f32.mxu1 %v7261_v18 }
 0xf3a   :  { %4863 = vmatprep.subr.bf16.mxu1 %v4862_v30 }
 0xf3d   :  { %4865 = vmatpush1.bf16.msra.mxu1 %v4864_v41 }
 0xf3e   :  { %4867 = vmatprep.subr.bf16.mxu1 %v4866_v26 }
 0xf41   :  { %4869 = vmatpush1.bf16.msra.mxu1 %v4868_v46 }
 0xf42   :  { %4871 = vmatprep.subr.bf16.mxu1 %v4870_v62 }
 0xf45   :  { %4873 = vmatpush1.bf16.msra.mxu1 %v4872_v47 }
 0xf46   :  { %4875 = vmatprep.subr.bf16.mxu1 %v4874_v0 }
 0xf48   :  { %4381 = vmatmul.mubr.msk.f32.vlgmr.msra.gmra.mrb[2].mxu1 %vm122_vm0, %v7246_v8  ;;  %v4395_v8 = vld [vmem:[%s7168_s2 + $0x168] sm:$0xff] }
 0xf49   :  { %4877 = vmatpush1.bf16.msra.mxu1 %v7065_v39  ;;  %3814 = vmatprep.mubr.f32.mxu1 %v7261_v18  ;;  %v7106_v44 = vpack.c.bf16 %v4397_v54, %v4395_v8 }
 0xf4a   :  { %4879 = vmatprep.subr.bf16.mxu1 %v7067_v55 }
 0xf4d   :  { %4881 = vmatpush1.bf16.msra.mxu1 %v7084_v38 }
 0xf4e   :  { %4883 = vmatprep.subr.bf16.mxu1 %v7088_v16 }
 0xf51   :  { %4885 = vmatpush1.bf16.msra.mxu1 %v7103_v31 }
 0xf52   :  { %4887 = vmatprep.subr.bf16.mxu1 %v7106_v44 }
 0xf55   :  { %4889 = vmatpush1.bf16.msra.mxu1 %v7115_v36 }
 0xf58   :  { %4398 = vmatmul.mubr.msk.f32.vlgmr.msra.gmra.mrb[2].mxu1 %vm122_vm0, %v7247_v6  ;;  %v7128_v6 = vrot.slane %v4380_v58, %v7274_v34  ;;  %v4408_v58 = vld [vmem:[%s7165_s4 + $0x45] ss:$0 sm:$0xff] }
 0xfc4   :  { %v3592_v61 = vpop.f32.mrb[0].mxu0 }
 0xfc5   :  { %v3594_v56 = vpop.f32.mrb[1].mxu0 }
0x100b   :  { %v3518_v40 = vpop.f32.mrb[0].mxu1 }
0x100c   :  { %v3519_v23 = vadd.f32 %v3518_v40, %v7272_v48  ;;  %v3520_v13 = vpop.f32.mrb[1].mxu1 }
0x100d   :  { %v3521_v1 = vadd.f32 %v3520_v13, %v7273_v57 }
0x100e   :  { %v3597_v33 = vadd.f32 %v3592_v61, %v3519_v23 }
0x100f   :  { %v3598_v42 = vadd.f32 %v3594_v56, %v3521_v1 }
0x1010   :  { %v4362_v43 = vmul.f32 -1.442695, %v3597_v33  ;;  %v4402_v33 = vld [vmem:[%s7165_s4 + $0x44] ss:$0 sm:$0xff] }
0x1011   :  { %5226 = vtanh.f32 %v3598_v42  ;;  %v4363_v60 = vmul.f32 -1.442695, %v3598_v42 }
0x101b   :  { %v5227_v15 = vpop.eup %5226 }
0x101c   :  { %3614 = vrot.lane.b32.xlu0 %v5227_v15, %s5331_s22 }
0x102b   :  { %v3816_v27 = vpop.f32.mrb[2].mxu1 }
0x102c   :  { %v3818_v53 = vpop.f32.mrb[3].mxu1  ;;  %v4970_v9 = vadd.f32 %v3816_v27, %v3652_v51 }
0x102d   :  { %v4971_v50 = vadd.f32 %v3818_v53, %v7128_v6 }
0x102e   :  { %v4399_v5 = vmul.f32 -1.442695, %v4970_v9 }
0x102f   :  { %5228 = vtanh.f32 %v4971_v50 }
0x1030   :  { %5230 = vpow2.f32 %v4362_v43 }
0x1039   :  { %v5229_v49 = vpop.eup %5228 }
0x103a   :  { %3838 = vrot.lane.b32.xlu0 %v5229_v49, %s5331_s22  ;;  %v5231_v14 = vpop.eup %5230 }
0x103b   :  { %v3605_v30 = vadd.f32 1.0, %v5231_v14 }
0x103d   :  { %5232 = vrcp.f32 %v3605_v30 }
0x103e   :  { %5234 = vpow2.f32 %v4399_v5 }
0x1047   :  { %v5233_v41 = vpop.eup %5232 }
0x1048   :  { %v5235_v4 = vpop.eup %5234  ;;  %v3612_v22 = vmul.f32 %v5233_v41, %v7244_v11  ;;  %v4400_v11 = vmul.f32 -1.442695, %v4971_v50 }
0x1049   :  { %v3829_v25 = vadd.f32 1.0, %v5235_v4 }
0x104b   :  { %5236 = vrcp.f32 %v3829_v25 }
0x1055   :  { %v5237_v3 = vpop.eup %5236 }
0x1056   :  { %v3836_v47 = vmul.f32 %v5237_v3, %v7245_v17 }
0x108e   :  { %v3615_v26 = vpop.permute.xlu0 %3614 }
0x108f   :  { %v3617_v7 = vmul.f32 %v5233_v41, %v3615_v26 }
0x1091   :  { %3619 = vrot.lane.b32.xlu1 %v3617_v7, %s5331_s22 }
0x10ac   :  { %v3839_v46 = vpop.permute.xlu0 %3838 }
0x10ad   :  { %v3841_v62 = vmul.f32 %v5237_v3, %v3839_v46 }
0x10af   :  { %3843 = vrot.lane.b32.xlu1 %v3841_v62, %s5331_s22 }
0x1103   :  { %v3620_v59 = vpop.permute.xlu1 %3619 }
0x1104   :  { %v3622_v37 = vadd.f32 %v3620_v59, %v3612_v22 }
0x1106   :  { %5238 = vtanh.f32 %v3622_v37 }
0x1110   :  { %v5239_v21 = vpop.eup %5238 }
0x1111   :  { %3625 = vrot.lane.b32.xlu0 %v5239_v21, %s5331_s22 }
0x1121   :  { %v3844_v0 = vpop.permute.xlu1 %3843 }
0x1122   :  { %v3846_v32 = vadd.f32 %v3844_v0, %v3836_v47 }
0x1124   :  { %5240 = vtanh.f32 %v3846_v32 }
0x1125   :  { %5242 = vpow2.f32 %v4363_v60 }
0x112e   :  { %v5241_v24 = vpop.eup %5240 }
0x112f   :  { %3849 = vrot.lane.b32.xlu1 %v5241_v24, %s5331_s22  ;;  %v5243_v19 = vpop.eup %5242 }
0x1130   :  { %v3606_v12 = vadd.f32 1.0, %v5243_v19 }
0x1132   :  { %5244 = vrcp.f32 %v3606_v12 }
0x1133   :  { %5246 = vpow2.f32 %v4400_v11 }
0x113c   :  { %v5245_v52 = vpop.eup %5244 }
0x113d   :  { %v5247_v17 = vpop.eup %5246 }
0x113e   :  { %v3830_v28 = vadd.f32 1.0, %v5247_v17 }
0x1140   :  { %5248 = vrcp.f32 %v3830_v28 }
0x114a   :  { %v5249_v63 = vpop.eup %5248 }
0x1183   :  { %v3626_v2 = vpop.permute.xlu0 %3625 }
0x1184   :  { %v3628_v29 = vmul.f32 %v5245_v52, %v3626_v2 }
0x1186   :  { %4403 = vmatmul.mubr.msk.f32.vlgmr.msra.gmra.mrb[2].mxu0 %vm122_vm0, %v3628_v29 }
0x1187   :  { %4909 = vmatpush1.bf16.msra.mxu0 %v7065_v39  ;;  %4004 = vmatprep.mubr.f32.mxu0 %v7261_v18 }
0x1188   :  { %4911 = vmatprep.subr.bf16.mxu0 %v7067_v55 }
0x118b   :  { %4913 = vmatpush1.bf16.msra.mxu0 %v7084_v38 }
0x118c   :  { %4915 = vmatprep.subr.bf16.mxu0 %v7088_v16 }
0x118f   :  { %4917 = vmatpush1.bf16.msra.mxu0 %v7103_v31 }
0x1190   :  { %4919 = vmatprep.subr.bf16.mxu0 %v7106_v44 }
0x1193   :  { %4921 = vmatpush1.bf16.msra.mxu0 %v7115_v36 }
0x11a1   :  { %v3850_v8 = vpop.permute.xlu1 %3849 }
0x11a2   :  { %v3852_v39 = vmul.f32 %v5249_v63, %v3850_v8 }
0x11a4   :  { %4404 = vmatmul.mubr.msk.f32.vlgmr.msra.gmra.mrb[2].mxu0 %vm122_vm0, %v3852_v39  ;;  %v3861_v42 = vmul.f32 %v4402_v33, %v3852_v39 }
0x11a6   :  { %v3862_v53 = vadd.f32 %v3861_v42, %v7248_v10 }
0x1277   :  { %v4006_v18 = vpop.f32.mrb[2].mxu0 }
0x1278   :  { %v4008_v55 = vpop.f32.mrb[3].mxu0  ;;  %v4972_v54 = vadd.f32 %v4006_v18, %v3652_v51 }
0x1279   :  { %v4973_v38 = vadd.f32 %v4008_v55, %v7128_v6 }
0x127a   :  { %v4405_v31 = vmul.f32 -1.442695, %v4972_v54 }
0x127b   :  { %5250 = vtanh.f32 %v4973_v38  ;;  %v4406_v56 = vmul.f32 -1.442695, %v4973_v38 }
0x127c   :  { %5252 = vpow2.f32 %v4405_v31 }
0x1285   :  { %v5251_v16 = vpop.eup %5250 }
0x1286   :  { %4028 = vrot.lane.b32.xlu0 %v5251_v16, %s5331_s22  ;;  %v5253_v44 = vpop.eup %5252 }
0x1287   :  { %v4019_v20 = vadd.f32 1.0, %v5253_v44 }
0x1289   :  { %5254 = vrcp.f32 %v4019_v20 }
0x1293   :  { %v5255_v35 = vpop.eup %5254 }
0x1294   :  { %v4026_v61 = vmul.f32 %v5255_v35, %v3846_v32 }
0x12f8   :  { %v4029_v36 = vpop.permute.xlu0 %4028 }
0x12f9   :  { %v4031_v40 = vmul.f32 %v5255_v35, %v4029_v36 }
0x12fb   :  { %4033 = vrot.lane.b32.xlu1 %v4031_v40, %s5331_s22 }
0x136d   :  { %v4034_v48 = vpop.permute.xlu1 %4033 }
0x136e   :  { %v4036_v23 = vadd.f32 %v4034_v48, %v4026_v61 }
0x1370   :  { %5256 = vtanh.f32 %v4036_v23 }
0x1371   :  { %5258 = vpow2.f32 %v4406_v56 }
0x137a   :  { %v5257_v13 = vpop.eup %5256 }
0x137b   :  { %4039 = vrot.lane.b32.xlu0 %v5257_v13, %s5331_s22  ;;  %v5259_v57 = vpop.eup %5258  ;;  %s4056_s22 = sld [smem:[#allocation3]] }
0x137c   :  { %v4020_v1 = vadd.f32 1.0, %v5259_v57 }
0x137e   :  { %5260 = vrcp.f32 %v4020_v1 }
0x1381   :  { %v4057_v43 = vstv %s4056_s22 }
0x1388   :  { %v5261_v15 = vpop.eup %5260 }
0x13ed   :  { %v4040_v34 = vpop.permute.xlu0 %4039 }
0x13ee   :  { %v4042_v6 = vmul.f32 %v5261_v15, %v4040_v34 }
0x13f0   :  { %v4051_v27 = vmul.f32 %v4408_v58, %v4042_v6 }
0x13f2   :  { %v4052_v50 = vadd.f32 %v4051_v27, %v3862_v53 }
0x13f4   :  { %v4053_v49 = vsel %vm122_vm0, %v4052_v50, 0.0 }
0x13f5   :  { %4054 = vadd.xlane.f32.xlu1 %v4053_v49 }
0x1482   :  { %v4055_v14 = vpop.xlane.xlu1 %4054 }
0x1483   :  { %v4058_v30 = vadd.f32 %v4057_v43, %v4055_v14 }
0x1485   :  { %v4409_v45 = vmul.f32 -1.442695, %v4058_v30 }
0x1487   :  { %5262 = vpow2.f32 %v4409_v45 }
0x1491   :  { %v5263_v51 = vpop.eup %5262 }
0x1492   :  { %v4062_v9 = vadd.f32 1.0, %v5263_v51 }
0x1494   :  { %5264 = vrcp.f32 %v4062_v9 }
0x149e   :  { %v5265_v5 = vpop.eup %5264 }
0x149f   :  { %4066 = vst.msk [vmem:[%s7167_s6] sm:$0xff] %vm4065_vm1, %v5265_v5 }

</bundles_post_ra>
